<compile_context>
chip_gen: v5e
topology: v5e:2x2
jax: 0.10.0
libtpu: 0.0.40
codegen_flags: <defaults>
</compile_context>

<pallas_src>
import math

import jax
import jax.numpy as jnp
from jax.experimental import pallas as pl
from jax.experimental.pallas import tpu as pltpu

LANE = 128  # padded output-channel width for the conv matmul kernels


def _round_up(a, b):
    return (a + b - 1) // b * b


def _pick_block_m(m):
    """M-axis block: >=2 blocks when worthwhile (TensorCore sharding), 16-aligned."""
    if m >= 1024:
        return 512
    if m >= 64:
        return _round_up((m + 1) // 2, 16)
    return _round_up(m, 16)


# ----------------------------------------------------------------------------
# Pallas kernel #1: tiled  out = relu(x @ w + b)  (used by conv1..conv3)
# ----------------------------------------------------------------------------
def _matmul_bias_relu_kernel(x_ref, w_ref, b_ref, o_ref):
    acc = jnp.dot(x_ref[...], w_ref[...], preferred_element_type=jnp.float32)
    acc = jnp.maximum(acc + b_ref[...], 0.0)          # f32 epilogue (v5e-safe)
    o_ref[...] = acc.astype(o_ref.dtype)


def _matmul_relu_call(x, w, b, block_m):
    """x: (Mpad, Kpad) bf16, w: (Kpad, 128) bf16, b: (1, 128) f32 -> (Mpad, 128) bf16."""
    m, k = x.shape
    kw_, nout = w.shape
    assert k == kw_ and m % block_m == 0
    return pl.pallas_call(
        _matmul_bias_relu_kernel,
        out_shape=jax.ShapeDtypeStruct((m, nout), jnp.bfloat16),
        grid=(m // block_m,),
        in_specs=[
            pl.BlockSpec((block_m, k), lambda i: (i, 0)),
            pl.BlockSpec((k, nout), lambda i: (0, 0)),
            pl.BlockSpec((1, nout), lambda i: (0, 0)),
        ],
        out_specs=pl.BlockSpec((block_m, nout), lambda i: (i, 0)),
        compiler_params=pltpu.CompilerParams(dimension_semantics=("parallel",)),
    )(x, w, b)


def conv_relu_nhwc(x, layer):
    """NHWC Conv2d(valid) + ReLU via im2col + one Pallas matmul call.

    x: (N, H, W, C_stored) bf16, real input channels = layer['cin'].
    Returns (N, OH, OW, 128) bf16 (real output channels = layer['cout'])."""
    n, h, w, _ = x.shape
    kh, kw, s, cin = layer["kh"], layer["kw"], layer["stride"], layer["cin"]
    xr = x[..., :cin]
    oh = (h - kh) // s + 1
    ow = (w - kw) // s + 1
    cols = [xr[:, i:i + s * oh:s, j:j + s * ow:s, :]
            for i in range(kh) for j in range(kw)]
    k = kh * kw * cin
    patches = jnp.stack(cols, axis=3).reshape(n * oh * ow, k)   # (kh,kw,cin) order
    m = n * oh * ow
    bm = _pick_block_m(m)
    mpad = _round_up(m, bm)
    patches = jnp.pad(patches, ((0, mpad - m), (0, layer["kpad"] - k)))
    patches = patches.astype(jnp.bfloat16)
    y = _matmul_relu_call(patches, layer["w"], layer["b"], bm)   # (mpad, 128) bf16
    return y[:m].reshape(n, oh, ow, LANE)


# ----------------------------------------------------------------------------
# Pallas kernel #2: fused tail
#   conv4 + ReLU + conv5 + ReLU + flatten
#   non-image Linear + ReLU + eval-BatchNorm1d (scale/shift)
#   combined MLP: (concat via split weight) Linear+ReLU x3, final Linear
# ----------------------------------------------------------------------------
def _tail_kernel(p4_ref, ni_ref,
                 w4_ref, b4_ref, w5_ref, b5_ref,
                 wni_ref, bni_ref, sni_ref, tni_ref,
                 w0a_ref, w0b_ref, b0_ref,
                 w1_ref, b1_ref, w2_ref, b2_ref,
                 w3_ref, b3_ref, o_ref):
    f32, bf16 = jnp.float32, jnp.bfloat16
    npos = p4_ref.shape[0]            # conv4 output positions (== conv5 taps)
    nb = p4_ref.shape[1]
    cout5 = w5_ref.shape[2]

    w4 = w4_ref[...]                  # (K4, C4) bf16
    b4 = b4_ref[...]                  # (1, C4)  f32

    # conv4 (per output position) fused with the conv5 accumulation.
    acc5 = jnp.zeros((nb, cout5), f32) + b5_ref[...]
    for p in range(npos):
        y4p = jnp.dot(p4_ref[p], w4, preferred_element_type=f32) + b4
        y4p = jnp.maximum(y4p, 0.0).astype(bf16)
        acc5 = acc5 + jnp.dot(y4p, w5_ref[p], preferred_element_type=f32)
    img_feat = jnp.maximum(acc5, 0.0)                 # == flatten(conv5 out), (nb, 64)

    # non-image path: Linear -> ReLU -> eval BatchNorm1d (fused scale/shift), f32.
    h_ni = jnp.dot(ni_ref[...], wni_ref[...], preferred_element_type=f32) + bni_ref[...]
    h_ni = jnp.maximum(h_ni, 0.0) * sni_ref[...] + tni_ref[...]

    # combined path; the concat is realized by splitting l0's weight rows.
    h = (jnp.dot(img_feat.astype(bf16), w0a_ref[...], preferred_element_type=f32)
         + jnp.dot(h_ni.astype(bf16), w0b_ref[...], preferred_element_type=f32)
         + b0_ref[...])
    h = jnp.maximum(h, 0.0)
    h = jnp.maximum(jnp.dot(h.astype(bf16), w1_ref[...],
                            preferred_element_type=f32) + b1_ref[...], 0.0)
    h = jnp.maximum(jnp.dot(h.astype(bf16), w2_ref[...],
                            preferred_element_type=f32) + b2_ref[...], 0.0)
    out = jnp.dot(h.astype(bf16), w3_ref[...], preferred_element_type=f32) + b3_ref[...]
    o_ref[...] = out.astype(o_ref.dtype)


def pallas_tail(p4, ni_in, t):
    nb = p4.shape[1]
    args = [p4, ni_in,
            t["w4"], t["b4"], t["w5"], t["b5"],
            t["wni"], t["bni"], t["sni"], t["tni"],
            t["w0a"], t["w0b"], t["b0"],
            t["w1"], t["b1"], t["w2"], t["b2"],
            t["w3"], t["b3"]]

    def full_spec(a):
        zeros = (0,) * a.ndim
        return pl.BlockSpec(a.shape, lambda i, z=zeros: z)

    return pl.pallas_call(
        _tail_kernel,
        out_shape=jax.ShapeDtypeStruct((nb, 1), jnp.float32),
        grid=(1,),
        in_specs=[full_spec(a) for a in args],
        out_specs=pl.BlockSpec((nb, 1), lambda i: (0, 0)),
    )(*args)


# ----------------------------------------------------------------------------
# Deterministic parameter init (PyTorch-style uniform; synthetic weights)
# ----------------------------------------------------------------------------
def _uniform(key, shape, fan_in):
    bound = 1.0 / math.sqrt(fan_in)
    return jax.random.uniform(key, shape, jnp.float32, -bound, bound)


def _conv_out(h, k, s):
    return (h - k) // s + 1


def init_params(key, img_c=3, img_h=66, img_w=66,
                actual_speed_features=1, gyro_features=1, use_gyro=True):
    conv_cfg = [
        (img_c, 24, 5, 2),
        (24, 36, 5, 2),
        (36, 48, 5, 2),
        (48, 64, 3, 1),
        (64, 64, 3, 1),
    ]
    keys = jax.random.split(key, 32)
    ki = iter(range(32))
    params = {}

    # BatchNorm2d(img_c) in eval mode (default running stats).
    params["bn2d"] = dict(
        gamma=jnp.ones((img_c,), jnp.float32),
        beta=jnp.zeros((img_c,), jnp.float32),
        mean=jnp.zeros((img_c,), jnp.float32),
        var=jnp.ones((img_c,), jnp.float32),
        eps=1e-5,
    )

    convs = []
    h, w = img_h, img_w
    for cin, cout, k, s in conv_cfg:
        fan_in = cin * k * k
        cw = _uniform(keys[next(ki)], (cout, cin, k, k), fan_in)
        cb = _uniform(keys[next(ki)], (cout,), fan_in)
        convs.append(dict(w=cw, b=cb, stride=s))
        h, w = _conv_out(h, k, s), _conv_out(w, k, s)
    params["convs"] = convs
    flattened_size = 64 * h * w

    non_image_in = actual_speed_features + (gyro_features if use_gyro else 0)
    params["ni_lin"] = dict(
        w=_uniform(keys[next(ki)], (32, non_image_in), non_image_in),
        b=_uniform(keys[next(ki)], (32,), non_image_in),
    )
    params["bn1d"] = dict(
        gamma=jnp.ones((32,), jnp.float32),
        beta=jnp.zeros((32,), jnp.float32),
        mean=jnp.zeros((32,), jnp.float32),
        var=jnp.ones((32,), jnp.float32),
        eps=1e-5,
    )

    combined_in = flattened_size + 32
    sizes = [(combined_in, 100), (100, 50), (50, 10), (10, 1)]
    combined = []
    for fi, fo in sizes:
        combined.append(dict(
            w=_uniform(keys[next(ki)], (fo, fi), fi),
            b=_uniform(keys[next(ki)], (fo,), fi),
        ))
    params["combined"] = combined
    params["use_gyro"] = use_gyro
    return params


# ----------------------------------------------------------------------------
# One-time parameter preparation: BN folds, weight transposes, padding, bf16.
# ----------------------------------------------------------------------------
def prepare_params(params, img_h, img_w):
    f32, bf16 = jnp.float32, jnp.bfloat16

    bn = params["bn2d"]
    s_c = bn["gamma"] / jnp.sqrt(bn["var"] + bn["eps"])
    t_c = bn["beta"] - bn["mean"] * s_c

    # Spatial bookkeeping for the conv stack.
    hs, ws = [img_h], [img_w]
    h, w = img_h, img_w
    for layer in params["convs"]:
        k, s = layer["w"].shape[2], layer["stride"]
        h, w = _conv_out(h, k, s), _conv_out(w, k, s)
        hs.append(h)
        ws.append(w)

    # TODO(synk): the fused tail assumes conv5's output spatial is 1x1 (true for
    # ~66x66 inputs); for larger images keep conv4/conv5 as standalone matmul calls.
    if hs[5] != 1 or ws[5] != 1:
        raise ValueError("tail fusion requires conv5 output spatial == 1x1")
    oh4, ow4 = hs[4], ws[4]

    # conv1..conv3 -> standalone Pallas matmul layers (Cout padded to 128).
    convs_prep = []
    for li in range(3):
        layer = params["convs"][li]
        w_t, b_t = layer["w"], layer["b"]
        cout, cin, kh, kw = w_t.shape
        if li == 0:  # fold eval-mode BatchNorm2d into conv1 (exact algebra)
            b_t = b_t + jnp.sum(w_t * t_c[None, :, None, None], axis=(1, 2, 3))
            w_t = w_t * s_c[None, :, None, None]
        k = kh * kw * cin
        kpad = _round_up(k, 128)
        w2 = w_t.transpose(2, 3, 1, 0).reshape(k, cout)          # (kh,kw,cin) x cout
        w2p = jnp.zeros((kpad, LANE), f32).at[:k, :cout].set(w2).astype(bf16)
        bp = jnp.zeros((1, LANE), f32).at[0, :cout].set(b_t)
        convs_prep.append(dict(w=w2p, b=bp, stride=layer["stride"],
                               kh=kh, kw=kw, cin=cin, cout=cout, kpad=kpad))

    # conv4 / conv5 (live inside the fused tail kernel; intermediates stay in VMEM).
    c4, c5 = params["convs"][3], params["convs"][4]
    cout4, cin4, kh4, kw4 = c4["w"].shape
    cout5, cin5, kh5, kw5 = c5["w"].shape
    w4 = c4["w"].transpose(2, 3, 1, 0).reshape(kh4 * kw4 * cin4, cout4).astype(bf16)
    b4 = c4["b"].reshape(1, cout4).astype(f32)
    w5 = c5["w"].transpose(2, 3, 1, 0).reshape(kh5 * kw5, cin5, cout5).astype(bf16)
    b5 = c5["b"].reshape(1, cout5).astype(f32)

    ni = params["ni_lin"]
    bn1 = params["bn1d"]
    s1 = bn1["gamma"] / jnp.sqrt(bn1["var"] + bn1["eps"])
    t1 = bn1["beta"] - bn1["mean"] * s1

    l0, l1, l2, l3 = params["combined"]
    w0 = l0["w"].T                                # (flattened + 32, 100); flattened == cout5
    tail = dict(
        w4=w4, b4=b4, w5=w5, b5=b5,
        wni=ni["w"].T.astype(f32), bni=ni["b"].reshape(1, -1).astype(f32),
        sni=s1.reshape(1, -1).astype(f32), tni=t1.reshape(1, -1).astype(f32),
        w0a=w0[:cout5].astype(bf16), w0b=w0[cout5:].astype(bf16),
        b0=l0["b"].reshape(1, -1).astype(f32),
        w1=l1["w"].T.astype(bf16), b1=l1["b"].reshape(1, -1).astype(f32),
        w2=l2["w"].T.astype(bf16), b2=l2["b"].reshape(1, -1).astype(f32),
        w3=l3["w"].T.astype(bf16), b3=l3["b"].reshape(1, -1).astype(f32),
    )
    meta = dict(kh4=kh4, kw4=kw4, oh4=oh4, ow4=ow4)
    return dict(convs=convs_prep, tail=tail, meta=meta)


# ----------------------------------------------------------------------------
# Forward pass (eval mode; Dropout is identity)
# ----------------------------------------------------------------------------
def make_forward(prep, use_gyro=True):
    convs = prep["convs"]
    tail = prep["tail"]
    meta = prep["meta"]

    def fwd(img, actual_speed, gyro=None):
        n = img.shape[0]
        # NCHW -> NHWC once; everything downstream stays NHWC.
        x = jnp.transpose(img, (0, 2, 3, 1)).astype(jnp.bfloat16)
        for layer in convs:                      # conv1..conv3 (+ReLU)
            x = conv_relu_nhwc(x, layer)

        # conv4 im2col glue (tiny): (oh4*ow4, N, kh4*kw4*cin4) in (kh,kw,cin) order.
        x3 = x[..., :convs[-1]["cout"]]
        kh4, kw4, oh4, ow4 = meta["kh4"], meta["kw4"], meta["oh4"], meta["ow4"]
        p4 = jnp.stack(
            [x3[:, oi:oi + kh4, oj:oj + kw4, :].reshape(n, -1)
             for oi in range(oh4) for oj in range(ow4)], axis=0)

        if use_gyro:
            ni_in = jnp.concatenate([actual_speed, gyro], axis=1)
        else:
            ni_in = actual_speed
        ni_in = ni_in.astype(jnp.float32)

        return pallas_tail(p4, ni_in, tail)

    return jax.jit(fwd)


# ----------------------------------------------------------------------------
if __name__ == "__main__":
    key = jax.random.PRNGKey(0)
    k_img, k_spd, k_gyr, k_par = jax.random.split(key, 4)

    N, IMG_C, IMG_H, IMG_W = 2, 3, 66, 66   # smallest-ish size the conv stack supports
    img = jax.random.normal(k_img, (N, IMG_C, IMG_H, IMG_W), jnp.float32)
    speed = jax.random.normal(k_spd, (N, 1), jnp.float32)
    gyro = jax.random.normal(k_gyr, (N, 1), jnp.float32)

    params = init_params(k_par, img_c=IMG_C, img_h=IMG_H, img_w=IMG_W)
    prep = prepare_params(params, IMG_H, IMG_W)
    forward = make_forward(prep, use_gyro=params["use_gyro"])

    out = jax.block_until_ready(forward(img, speed, gyro))
    assert out.shape == (N, 1) and out.dtype == jnp.float32
    assert bool(jnp.all(jnp.isfinite(out)))
    print("KERNEL_OK")
</pallas_src>

<mosaic_0001>
module attributes {stable_mosaic.version = 11 : i64} {
  func.func @_matmul_bias_relu_kernel(%arg0: i32, %arg1: memref<512x128xbf16, #tpu.memory_space<vmem>>, %arg2: memref<128x128xbf16, #tpu.memory_space<vmem>>, %arg3: memref<1x128xf32, #tpu.memory_space<vmem>>, %arg4: memref<512x128xbf16, #tpu.memory_space<vmem>>) attributes {dimension_semantics = [#tpu.dimension_semantics<parallel>], iteration_bounds = array<i64: 4>, scalar_prefetch = 0 : i64, scratch_operands = 0 : i64, tpu.core_type = #tpu.core_type<tc>, window_params = [{transform_indices = @transform_0, window_bounds = array<i64: 512, 128>}, {pipeline_mode = #tpu.pipeline_mode<synchronous>, transform_indices = @transform_1, window_bounds = array<i64: 128, 128>}, {pipeline_mode = #tpu.pipeline_mode<synchronous>, transform_indices = @transform_2, window_bounds = array<i64: 1, 128>}, {transform_indices = @transform_3, window_bounds = array<i64: 512, 128>}]} {
    %c0 = arith.constant 0 : index
    %c0_0 = arith.constant 0 : index
    %0 = vector.load %arg1[%c0, %c0_0] : memref<512x128xbf16, #tpu.memory_space<vmem>>, vector<512x128xbf16>
    %c0_1 = arith.constant 0 : index
    %c0_2 = arith.constant 0 : index
    %1 = vector.load %arg2[%c0_1, %c0_2] : memref<128x128xbf16, #tpu.memory_space<vmem>>, vector<128x128xbf16>
    %cst = arith.constant dense<0.000000e+00> : vector<512x128xf32>
    %2 = tpu.matmul %0, %1, %cst {dimension_numbers = #tpu.dot_dimension_numbers<[1], [0], [0], [1], [0, 0, 1, 1], [], []>} : vector<512x128xbf16>, vector<128x128xbf16>, vector<512x128xf32> -> vector<512x128xf32>
    %c0_3 = arith.constant 0 : index
    %c0_4 = arith.constant 0 : index
    %3 = vector.load %arg3[%c0_3, %c0_4] : memref<1x128xf32, #tpu.memory_space<vmem>>, vector<1x128xf32>
    %4 = vector.broadcast %3 : vector<1x128xf32> to vector<512x128xf32>
    %5 = arith.addf %2, %4 : vector<512x128xf32>
    %cst_5 = arith.constant 0.000000e+00 : f32
    %6 = vector.broadcast %cst_5 : f32 to vector<512x128xf32>
    %7 = arith.maximumf %5, %6 : vector<512x128xf32>
    %8 = arith.truncf %7 : vector<512x128xf32> to vector<512x128xbf16>
    %c0_6 = arith.constant 0 : index
    %c0_7 = arith.constant 0 : index
    %9 = vector.load %arg4[%c0_6, %c0_7] : memref<512x128xbf16, #tpu.memory_space<vmem>>, vector<512x128xbf16>
    tpu.vector_store %arg4[%c0_6, %c0_7], %8 {strides = array<i32>} : memref<512x128xbf16, #tpu.memory_space<vmem>>, vector<512x128xbf16>,
    return
  }
  func.func @transform_0(%arg0: i32) -> (i32, i32) {
    %c0_i32 = arith.constant 0 : i32
    %c0_i32_0 = arith.constant 0 : i32
    return %arg0, %c0_i32 : i32, i32
  }
  func.func @transform_1(%arg0: i32) -> (i32, i32) {
    %c0_i32 = arith.constant 0 : i32
    %c0_i32_0 = arith.constant 0 : i32
    %c0_i32_1 = arith.constant 0 : i32
    return %c0_i32, %c0_i32_0 : i32, i32
  }
  func.func @transform_2(%arg0: i32) -> (i32, i32) {
    %c0_i32 = arith.constant 0 : i32
    %c0_i32_0 = arith.constant 0 : i32
    %c0_i32_1 = arith.constant 0 : i32
    return %c0_i32, %c0_i32_0 : i32, i32
  }
  func.func @transform_3(%arg0: i32) -> (i32, i32) {
    %c0_i32 = arith.constant 0 : i32
    %c0_i32_0 = arith.constant 0 : i32
    return %arg0, %c0_i32 : i32, i32
  }
}

module attributes {stable_mosaic.version = 11 : i64} {
  func.func @_matmul_bias_relu_kernel(%arg0: i32, %arg1: memref<208x640xbf16, #tpu.memory_space<vmem>>, %arg2: memref<640x128xbf16, #tpu.memory_space<vmem>>, %arg3: memref<1x128xf32, #tpu.memory_space<vmem>>, %arg4: memref<208x128xbf16, #tpu.memory_space<vmem>>) attributes {dimension_semantics = [#tpu.dimension_semantics<parallel>], iteration_bounds = array<i64: 2>, scalar_prefetch = 0 : i64, scratch_operands = 0 : i64, tpu.core_type = #tpu.core_type<tc>, window_params = [{transform_indices = @transform_0, window_bounds = array<i64: 208, 640>}, {pipeline_mode = #tpu.pipeline_mode<synchronous>, transform_indices = @transform_1, window_bounds = array<i64: 640, 128>}, {pipeline_mode = #tpu.pipeline_mode<synchronous>, transform_indices = @transform_2, window_bounds = array<i64: 1, 128>}, {transform_indices = @transform_3, window_bounds = array<i64: 208, 128>}]} {
    %c0 = arith.constant 0 : index
    %c0_0 = arith.constant 0 : index
    %0 = vector.load %arg1[%c0, %c0_0] : memref<208x640xbf16, #tpu.memory_space<vmem>>, vector<208x640xbf16>
    %c0_1 = arith.constant 0 : index
    %c0_2 = arith.constant 0 : index
    %1 = vector.load %arg2[%c0_1, %c0_2] : memref<640x128xbf16, #tpu.memory_space<vmem>>, vector<640x128xbf16>
    %cst = arith.constant dense<0.000000e+00> : vector<208x128xf32>
    %2 = tpu.matmul %0, %1, %cst {dimension_numbers = #tpu.dot_dimension_numbers<[1], [0], [0], [1], [0, 0, 1, 1], [], []>} : vector<208x640xbf16>, vector<640x128xbf16>, vector<208x128xf32> -> vector<208x128xf32>
    %c0_3 = arith.constant 0 : index
    %c0_4 = arith.constant 0 : index
    %3 = vector.load %arg3[%c0_3, %c0_4] : memref<1x128xf32, #tpu.memory_space<vmem>>, vector<1x128xf32>
    %4 = vector.broadcast %3 : vector<1x128xf32> to vector<208x128xf32>
    %5 = arith.addf %2, %4 : vector<208x128xf32>
    %cst_5 = arith.constant 0.000000e+00 : f32
    %6 = vector.broadcast %cst_5 : f32 to vector<208x128xf32>
    %7 = arith.maximumf %5, %6 : vector<208x128xf32>
    %8 = arith.truncf %7 : vector<208x128xf32> to vector<208x128xbf16>
    %c0_6 = arith.constant 0 : index
    %c0_7 = arith.constant 0 : index
    %9 = vector.load %arg4[%c0_6, %c0_7] : memref<208x128xbf16, #tpu.memory_space<vmem>>, vector<208x128xbf16>
    tpu.vector_store %arg4[%c0_6, %c0_7], %8 {strides = array<i32>} : memref<208x128xbf16, #tpu.memory_space<vmem>>, vector<208x128xbf16>,
    return
  }
  func.func @transform_0(%arg0: i32) -> (i32, i32) {
    %c0_i32 = arith.constant 0 : i32
    %c0_i32_0 = arith.constant 0 : i32
    return %arg0, %c0_i32 : i32, i32
  }
  func.func @transform_1(%arg0: i32) -> (i32, i32) {
    %c0_i32 = arith.constant 0 : i32
    %c0_i32_0 = arith.constant 0 : i32
    %c0_i32_1 = arith.constant 0 : i32
    return %c0_i32, %c0_i32_0 : i32, i32
  }
  func.func @transform_2(%arg0: i32) -> (i32, i32) {
    %c0_i32 = arith.constant 0 : i32
    %c0_i32_0 = arith.constant 0 : i32
    %c0_i32_1 = arith.constant 0 : i32
    return %c0_i32, %c0_i32_0 : i32, i32
  }
  func.func @transform_3(%arg0: i32) -> (i32, i32) {
    %c0_i32 = arith.constant 0 : i32
    %c0_i32_0 = arith.constant 0 : i32
    return %arg0, %c0_i32 : i32, i32
  }
}

module attributes {stable_mosaic.version = 11 : i64} {
  func.func @_matmul_bias_relu_kernel(%arg0: i32, %arg1: memref<64x1024xbf16, #tpu.memory_space<vmem>>, %arg2: memref<1024x128xbf16, #tpu.memory_space<vmem>>, %arg3: memref<1x128xf32, #tpu.memory_space<vmem>>, %arg4: memref<64x128xbf16, #tpu.memory_space<vmem>>) attributes {dimension_semantics = [#tpu.dimension_semantics<parallel>], iteration_bounds = array<i64: 1>, scalar_prefetch = 0 : i64, scratch_operands = 0 : i64, tpu.core_type = #tpu.core_type<tc>, window_params = [{transform_indices = @transform_0, window_bounds = array<i64: 64, 1024>}, {pipeline_mode = #tpu.pipeline_mode<synchronous>, transform_indices = @transform_1, window_bounds = array<i64: 1024, 128>}, {pipeline_mode = #tpu.pipeline_mode<synchronous>, transform_indices = @transform_2, window_bounds = array<i64: 1, 128>}, {transform_indices = @transform_3, window_bounds = array<i64: 64, 128>}]} {
    %c0 = arith.constant 0 : index
    %c0_0 = arith.constant 0 : index
    %0 = vector.load %arg1[%c0, %c0_0] : memref<64x1024xbf16, #tpu.memory_space<vmem>>, vector<64x1024xbf16>
    %c0_1 = arith.constant 0 : index
    %c0_2 = arith.constant 0 : index
    %1 = vector.load %arg2[%c0_1, %c0_2] : memref<1024x128xbf16, #tpu.memory_space<vmem>>, vector<1024x128xbf16>
    %cst = arith.constant dense<0.000000e+00> : vector<64x128xf32>
    %2 = tpu.matmul %0, %1, %cst {dimension_numbers = #tpu.dot_dimension_numbers<[1], [0], [0], [1], [0, 0, 1, 1], [], []>} : vector<64x1024xbf16>, vector<1024x128xbf16>, vector<64x128xf32> -> vector<64x128xf32>
    %c0_3 = arith.constant 0 : index
    %c0_4 = arith.constant 0 : index
    %3 = vector.load %arg3[%c0_3, %c0_4] : memref<1x128xf32, #tpu.memory_space<vmem>>, vector<1x128xf32>
    %4 = vector.broadcast %3 : vector<1x128xf32> to vector<64x128xf32>
    %5 = arith.addf %2, %4 : vector<64x128xf32>
    %cst_5 = arith.constant 0.000000e+00 : f32
    %6 = vector.broadcast %cst_5 : f32 to vector<64x128xf32>
    %7 = arith.maximumf %5, %6 : vector<64x128xf32>
    %8 = arith.truncf %7 : vector<64x128xf32> to vector<64x128xbf16>
    %c0_6 = arith.constant 0 : index
    %c0_7 = arith.constant 0 : index
    %9 = vector.load %arg4[%c0_6, %c0_7] : memref<64x128xbf16, #tpu.memory_space<vmem>>, vector<64x128xbf16>
    tpu.vector_store %arg4[%c0_6, %c0_7], %8 {strides = array<i32>} : memref<64x128xbf16, #tpu.memory_space<vmem>>, vector<64x128xbf16>,
    return
  }
  func.func @transform_0(%arg0: i32) -> (i32, i32) {
    %c0_i32 = arith.constant 0 : i32
    %c0_i32_0 = arith.constant 0 : i32
    return %arg0, %c0_i32 : i32, i32
  }
  func.func @transform_1(%arg0: i32) -> (i32, i32) {
    %c0_i32 = arith.constant 0 : i32
    %c0_i32_0 = arith.constant 0 : i32
    %c0_i32_1 = arith.constant 0 : i32
    return %c0_i32, %c0_i32_0 : i32, i32
  }
  func.func @transform_2(%arg0: i32) -> (i32, i32) {
    %c0_i32 = arith.constant 0 : i32
    %c0_i32_0 = arith.constant 0 : i32
    %c0_i32_1 = arith.constant 0 : i32
    return %c0_i32, %c0_i32_0 : i32, i32
  }
  func.func @transform_3(%arg0: i32) -> (i32, i32) {
    %c0_i32 = arith.constant 0 : i32
    %c0_i32_0 = arith.constant 0 : i32
    return %arg0, %c0_i32 : i32, i32
  }
}

module attributes {stable_mosaic.version = 11 : i64} {
  func.func @_tail_kernel(%arg0: i32, %arg1: memref<9x2x432xbf16, #tpu.memory_space<vmem>>, %arg2: memref<2x2xf32, #tpu.memory_space<vmem>>, %arg3: memref<432x64xbf16, #tpu.memory_space<vmem>>, %arg4: memref<1x64xf32, #tpu.memory_space<vmem>>, %arg5: memref<9x64x64xbf16, #tpu.memory_space<vmem>>, %arg6: memref<1x64xf32, #tpu.memory_space<vmem>>, %arg7: memref<2x32xf32, #tpu.memory_space<vmem>>, %arg8: memref<1x32xf32, #tpu.memory_space<vmem>>, %arg9: memref<1x32xf32, #tpu.memory_space<vmem>>, %arg10: memref<1x32xf32, #tpu.memory_space<vmem>>, %arg11: memref<64x100xbf16, #tpu.memory_space<vmem>>, %arg12: memref<32x100xbf16, #tpu.memory_space<vmem>>, %arg13: memref<1x100xf32, #tpu.memory_space<vmem>>, %arg14: memref<100x50xbf16, #tpu.memory_space<vmem>>, %arg15: memref<1x50xf32, #tpu.memory_space<vmem>>, %arg16: memref<50x10xbf16, #tpu.memory_space<vmem>>, %arg17: memref<1x10xf32, #tpu.memory_space<vmem>>, %arg18: memref<10x1xbf16, #tpu.memory_space<vmem>>, %arg19: memref<1x1xf32, #tpu.memory_space<vmem>>, %arg20: memref<2x1xf32, #tpu.memory_space<vmem>>) attributes {dimension_semantics = [#tpu.dimension_semantics<arbitrary>], iteration_bounds = array<i64: 1>, scalar_prefetch = 0 : i64, scratch_operands = 0 : i64, tpu.core_type = #tpu.core_type<tc>, window_params = [{pipeline_mode = #tpu.pipeline_mode<synchronous>, transform_indices = @transform_0, window_bounds = array<i64: 9, 2, 432>}, {pipeline_mode = #tpu.pipeline_mode<synchronous>, transform_indices = @transform_1, window_bounds = array<i64: 2, 2>}, {pipeline_mode = #tpu.pipeline_mode<synchronous>, transform_indices = @transform_2, window_bounds = array<i64: 432, 64>}, {pipeline_mode = #tpu.pipeline_mode<synchronous>, transform_indices = @transform_3, window_bounds = array<i64: 1, 64>}, {pipeline_mode = #tpu.pipeline_mode<synchronous>, transform_indices = @transform_4, window_bounds = array<i64: 9, 64, 64>}, {pipeline_mode = #tpu.pipeline_mode<synchronous>, transform_indices = @transform_5, window_bounds = array<i64: 1, 64>}, {pipeline_mode = #tpu.pipeline_mode<synchronous>, transform_indices = @transform_6, window_bounds = array<i64: 2, 32>}, {pipeline_mode = #tpu.pipeline_mode<synchronous>, transform_indices = @transform_7, window_bounds = array<i64: 1, 32>}, {pipeline_mode = #tpu.pipeline_mode<synchronous>, transform_indices = @transform_8, window_bounds = array<i64: 1, 32>}, {pipeline_mode = #tpu.pipeline_mode<synchronous>, transform_indices = @transform_9, window_bounds = array<i64: 1, 32>}, {pipeline_mode = #tpu.pipeline_mode<synchronous>, transform_indices = @transform_10, window_bounds = array<i64: 64, 100>}, {pipeline_mode = #tpu.pipeline_mode<synchronous>, transform_indices = @transform_11, window_bounds = array<i64: 32, 100>}, {pipeline_mode = #tpu.pipeline_mode<synchronous>, transform_indices = @transform_12, window_bounds = array<i64: 1, 100>}, {pipeline_mode = #tpu.pipeline_mode<synchronous>, transform_indices = @transform_13, window_bounds = array<i64: 100, 50>}, {pipeline_mode = #tpu.pipeline_mode<synchronous>, transform_indices = @transform_14, window_bounds = array<i64: 1, 50>}, {pipeline_mode = #tpu.pipeline_mode<synchronous>, transform_indices = @transform_15, window_bounds = array<i64: 50, 10>}, {pipeline_mode = #tpu.pipeline_mode<synchronous>, transform_indices = @transform_16, window_bounds = array<i64: 1, 10>}, {pipeline_mode = #tpu.pipeline_mode<synchronous>, transform_indices = @transform_17, window_bounds = array<i64: 10, 1>}, {pipeline_mode = #tpu.pipeline_mode<synchronous>, transform_indices = @transform_18, window_bounds = array<i64: 1, 1>}, {pipeline_mode = #tpu.pipeline_mode<synchronous>, transform_indices = @transform_19, window_bounds = array<i64: 2, 1>}]} {
    %c0 = arith.constant 0 : index
    %c0_0 = arith.constant 0 : index
    %0 = vector.load %arg3[%c0, %c0_0] : memref<432x64xbf16, #tpu.memory_space<vmem>>, vector<432x64xbf16>
    %c0_1 = arith.constant 0 : index
    %c0_2 = arith.constant 0 : index
    %1 = vector.load %arg4[%c0_1, %c0_2] : memref<1x64xf32, #tpu.memory_space<vmem>>, vector<1x64xf32>
    %cst = arith.constant 0.000000e+00 : f32
    %2 = vector.broadcast %cst : f32 to vector<2x64xf32>
    %c0_3 = arith.constant 0 : index
    %c0_4 = arith.constant 0 : index
    %3 = vector.load %arg6[%c0_3, %c0_4] : memref<1x64xf32, #tpu.memory_space<vmem>>, vector<1x64xf32>
    %4 = vector.broadcast %3 : vector<1x64xf32> to vector<2x64xf32>
    %5 = arith.addf %2, %4 : vector<2x64xf32>
    %c0_5 = arith.constant 0 : index
    %c0_6 = arith.constant 0 : index
    %c0_7 = arith.constant 0 : index
    %6 = vector.load %arg1[%c0_5, %c0_6, %c0_7] : memref<9x2x432xbf16, #tpu.memory_space<vmem>>, vector<1x2x432xbf16>
    %7 = vector.shape_cast %6 : vector<1x2x432xbf16> to vector<2x432xbf16>
    %cst_8 = arith.constant dense<0.000000e+00> : vector<2x64xf32>
    %8 = tpu.matmul %7, %0, %cst_8 {dimension_numbers = #tpu.dot_dimension_numbers<[1], [0], [0], [1], [0, 0, 1, 1], [], []>} : vector<2x432xbf16>, vector<432x64xbf16>, vector<2x64xf32> -> vector<2x64xf32>
    %9 = vector.broadcast %1 : vector<1x64xf32> to vector<2x64xf32>
    %10 = arith.addf %8, %9 : vector<2x64xf32>
    %cst_9 = arith.constant 0.000000e+00 : f32
    %11 = vector.broadcast %cst_9 : f32 to vector<2x64xf32>
    %12 = arith.maximumf %10, %11 : vector<2x64xf32>
    %13 = arith.truncf %12 : vector<2x64xf32> to vector<2x64xbf16>
    %c0_10 = arith.constant 0 : index
    %c0_11 = arith.constant 0 : index
    %c0_12 = arith.constant 0 : index
    %14 = vector.load %arg5[%c0_10, %c0_11, %c0_12] : memref<9x64x64xbf16, #tpu.memory_space<vmem>>, vector<1x64x64xbf16>
    %15 = vector.shape_cast %14 : vector<1x64x64xbf16> to vector<64x64xbf16>
    %cst_13 = arith.constant dense<0.000000e+00> : vector<2x64xf32>
    %16 = tpu.matmul %13, %15, %cst_13 {dimension_numbers = #tpu.dot_dimension_numbers<[1], [0], [0], [1], [0, 0, 1, 1], [], []>} : vector<2x64xbf16>, vector<64x64xbf16>, vector<2x64xf32> -> vector<2x64xf32>
    %17 = arith.addf %5, %16 : vector<2x64xf32>
    %c1 = arith.constant 1 : index
    %c0_14 = arith.constant 0 : index
    %c0_15 = arith.constant 0 : index
    %18 = vector.load %arg1[%c1, %c0_14, %c0_15] : memref<9x2x432xbf16, #tpu.memory_space<vmem>>, vector<1x2x432xbf16>
    %19 = vector.shape_cast %18 : vector<1x2x432xbf16> to vector<2x432xbf16>
    %cst_16 = arith.constant dense<0.000000e+00> : vector<2x64xf32>
    %20 = tpu.matmul %19, %0, %cst_16 {dimension_numbers = #tpu.dot_dimension_numbers<[1], [0], [0], [1], [0, 0, 1, 1], [], []>} : vector<2x432xbf16>, vector<432x64xbf16>, vector<2x64xf32> -> vector<2x64xf32>
    %21 = vector.broadcast %1 : vector<1x64xf32> to vector<2x64xf32>
    %22 = arith.addf %20, %21 : vector<2x64xf32>
    %cst_17 = arith.constant 0.000000e+00 : f32
    %23 = vector.broadcast %cst_17 : f32 to vector<2x64xf32>
    %24 = arith.maximumf %22, %23 : vector<2x64xf32>
    %25 = arith.truncf %24 : vector<2x64xf32> to vector<2x64xbf16>
    %c1_18 = arith.constant 1 : index
    %c0_19 = arith.constant 0 : index
    %c0_20 = arith.constant 0 : index
    %26 = vector.load %arg5[%c1_18, %c0_19, %c0_20] : memref<9x64x64xbf16, #tpu.memory_space<vmem>>, vector<1x64x64xbf16>
    %27 = vector.shape_cast %26 : vector<1x64x64xbf16> to vector<64x64xbf16>
    %cst_21 = arith.constant dense<0.000000e+00> : vector<2x64xf32>
    %28 = tpu.matmul %25, %27, %cst_21 {dimension_numbers = #tpu.dot_dimension_numbers<[1], [0], [0], [1], [0, 0, 1, 1], [], []>} : vector<2x64xbf16>, vector<64x64xbf16>, vector<2x64xf32> -> vector<2x64xf32>
    %29 = arith.addf %17, %28 : vector<2x64xf32>
    %c2 = arith.constant 2 : index
    %c0_22 = arith.constant 0 : index
    %c0_23 = arith.constant 0 : index
    %30 = vector.load %arg1[%c2, %c0_22, %c0_23] : memref<9x2x432xbf16, #tpu.memory_space<vmem>>, vector<1x2x432xbf16>
    %31 = vector.shape_cast %30 : vector<1x2x432xbf16> to vector<2x432xbf16>
    %cst_24 = arith.constant dense<0.000000e+00> : vector<2x64xf32>
    %32 = tpu.matmul %31, %0, %cst_24 {dimension_numbers = #tpu.dot_dimension_numbers<[1], [0], [0], [1], [0, 0, 1, 1], [], []>} : vector<2x432xbf16>, vector<432x64xbf16>, vector<2x64xf32> -> vector<2x64xf32>
    %33 = vector.broadcast %1 : vector<1x64xf32> to vector<2x64xf32>
    %34 = arith.addf %32, %33 : vector<2x64xf32>
    %cst_25 = arith.constant 0.000000e+00 : f32
    %35 = vector.broadcast %cst_25 : f32 to vector<2x64xf32>
    %36 = arith.maximumf %34, %35 : vector<2x64xf32>
    %37 = arith.truncf %36 : vector<2x64xf32> to vector<2x64xbf16>
    %c2_26 = arith.constant 2 : index
    %c0_27 = arith.constant 0 : index
    %c0_28 = arith.constant 0 : index
    %38 = vector.load %arg5[%c2_26, %c0_27, %c0_28] : memref<9x64x64xbf16, #tpu.memory_space<vmem>>, vector<1x64x64xbf16>
    %39 = vector.shape_cast %38 : vector<1x64x64xbf16> to vector<64x64xbf16>
    %cst_29 = arith.constant dense<0.000000e+00> : vector<2x64xf32>
    %40 = tpu.matmul %37, %39, %cst_29 {dimension_numbers = #tpu.dot_dimension_numbers<[1], [0], [0], [1], [0, 0, 1, 1], [], []>} : vector<2x64xbf16>, vector<64x64xbf16>, vector<2x64xf32> -> vector<2x64xf32>
    %41 = arith.addf %29, %40 : vector<2x64xf32>
    %c3 = arith.constant 3 : index
    %c0_30 = arith.constant 0 : index
    %c0_31 = arith.constant 0 : index
    %42 = vector.load %arg1[%c3, %c0_30, %c0_31] : memref<9x2x432xbf16, #tpu.memory_space<vmem>>, vector<1x2x432xbf16>
    %43 = vector.shape_cast %42 : vector<1x2x432xbf16> to vector<2x432xbf16>
    %cst_32 = arith.constant dense<0.000000e+00> : vector<2x64xf32>
    %44 = tpu.matmul %43, %0, %cst_32 {dimension_numbers = #tpu.dot_dimension_numbers<[1], [0], [0], [1], [0, 0, 1, 1], [], []>} : vector<2x432xbf16>, vector<432x64xbf16>, vector<2x64xf32> -> vector<2x64xf32>
    %45 = vector.broadcast %1 : vector<1x64xf32> to vector<2x64xf32>
    %46 = arith.addf %44, %45 : vector<2x64xf32>
    %cst_33 = arith.constant 0.000000e+00 : f32
    %47 = vector.broadcast %cst_33 : f32 to vector<2x64xf32>
    %48 = arith.maximumf %46, %47 : vector<2x64xf32>
    %49 = arith.truncf %48 : vector<2x64xf32> to vector<2x64xbf16>
    %c3_34 = arith.constant 3 : index
    %c0_35 = arith.constant 0 : index
    %c0_36 = arith.constant 0 : index
    %50 = vector.load %arg5[%c3_34, %c0_35, %c0_36] : memref<9x64x64xbf16, #tpu.memory_space<vmem>>, vector<1x64x64xbf16>
    %51 = vector.shape_cast %50 : vector<1x64x64xbf16> to vector<64x64xbf16>
    %cst_37 = arith.constant dense<0.000000e+00> : vector<2x64xf32>
    %52 = tpu.matmul %49, %51, %cst_37 {dimension_numbers = #tpu.dot_dimension_numbers<[1], [0], [0], [1], [0, 0, 1, 1], [], []>} : vector<2x64xbf16>, vector<64x64xbf16>, vector<2x64xf32> -> vector<2x64xf32>
    %53 = arith.addf %41, %52 : vector<2x64xf32>
    %c4 = arith.constant 4 : index
    %c0_38 = arith.constant 0 : index
    %c0_39 = arith.constant 0 : index
    %54 = vector.load %arg1[%c4, %c0_38, %c0_39] : memref<9x2x432xbf16, #tpu.memory_space<vmem>>, vector<1x2x432xbf16>
    %55 = vector.shape_cast %54 : vector<1x2x432xbf16> to vector<2x432xbf16>
    %cst_40 = arith.constant dense<0.000000e+00> : vector<2x64xf32>
    %56 = tpu.matmul %55, %0, %cst_40 {dimension_numbers = #tpu.dot_dimension_numbers<[1], [0], [0], [1], [0, 0, 1, 1], [], []>} : vector<2x432xbf16>, vector<432x64xbf16>, vector<2x64xf32> -> vector<2x64xf32>
    %57 = vector.broadcast %1 : vector<1x64xf32> to vector<2x64xf32>
    %58 = arith.addf %56, %57 : vector<2x64xf32>
    %cst_41 = arith.constant 0.000000e+00 : f32
    %59 = vector.broadcast %cst_41 : f32 to vector<2x64xf32>
    %60 = arith.maximumf %58, %59 : vector<2x64xf32>
    %61 = arith.truncf %60 : vector<2x64xf32> to vector<2x64xbf16>
    %c4_42 = arith.constant 4 : index
    %c0_43 = arith.constant 0 : index
    %c0_44 = arith.constant 0 : index
    %62 = vector.load %arg5[%c4_42, %c0_43, %c0_44] : memref<9x64x64xbf16, #tpu.memory_space<vmem>>, vector<1x64x64xbf16>
    %63 = vector.shape_cast %62 : vector<1x64x64xbf16> to vector<64x64xbf16>
    %cst_45 = arith.constant dense<0.000000e+00> : vector<2x64xf32>
    %64 = tpu.matmul %61, %63, %cst_45 {dimension_numbers = #tpu.dot_dimension_numbers<[1], [0], [0], [1], [0, 0, 1, 1], [], []>} : vector<2x64xbf16>, vector<64x64xbf16>, vector<2x64xf32> -> vector<2x64xf32>
    %65 = arith.addf %53, %64 : vector<2x64xf32>
    %c5 = arith.constant 5 : index
    %c0_46 = arith.constant 0 : index
    %c0_47 = arith.constant 0 : index
    %66 = vector.load %arg1[%c5, %c0_46, %c0_47] : memref<9x2x432xbf16, #tpu.memory_space<vmem>>, vector<1x2x432xbf16>
    %67 = vector.shape_cast %66 : vector<1x2x432xbf16> to vector<2x432xbf16>
    %cst_48 = arith.constant dense<0.000000e+00> : vector<2x64xf32>
    %68 = tpu.matmul %67, %0, %cst_48 {dimension_numbers = #tpu.dot_dimension_numbers<[1], [0], [0], [1], [0, 0, 1, 1], [], []>} : vector<2x432xbf16>, vector<432x64xbf16>, vector<2x64xf32> -> vector<2x64xf32>
    %69 = vector.broadcast %1 : vector<1x64xf32> to vector<2x64xf32>
    %70 = arith.addf %68, %69 : vector<2x64xf32>
    %cst_49 = arith.constant 0.000000e+00 : f32
    %71 = vector.broadcast %cst_49 : f32 to vector<2x64xf32>
    %72 = arith.maximumf %70, %71 : vector<2x64xf32>
    %73 = arith.truncf %72 : vector<2x64xf32> to vector<2x64xbf16>
    %c5_50 = arith.constant 5 : index
    %c0_51 = arith.constant 0 : index
    %c0_52 = arith.constant 0 : index
    %74 = vector.load %arg5[%c5_50, %c0_51, %c0_52] : memref<9x64x64xbf16, #tpu.memory_space<vmem>>, vector<1x64x64xbf16>
    %75 = vector.shape_cast %74 : vector<1x64x64xbf16> to vector<64x64xbf16>
    %cst_53 = arith.constant dense<0.000000e+00> : vector<2x64xf32>
    %76 = tpu.matmul %73, %75, %cst_53 {dimension_numbers = #tpu.dot_dimension_numbers<[1], [0], [0], [1], [0, 0, 1, 1], [], []>} : vector<2x64xbf16>, vector<64x64xbf16>, vector<2x64xf32> -> vector<2x64xf32>
    %77 = arith.addf %65, %76 : vector<2x64xf32>
    %c6 = arith.constant 6 : index
    %c0_54 = arith.constant 0 : index
    %c0_55 = arith.constant 0 : index
    %78 = vector.load %arg1[%c6, %c0_54, %c0_55] : memref<9x2x432xbf16, #tpu.memory_space<vmem>>, vector<1x2x432xbf16>
    %79 = vector.shape_cast %78 : vector<1x2x432xbf16> to vector<2x432xbf16>
    %cst_56 = arith.constant dense<0.000000e+00> : vector<2x64xf32>
    %80 = tpu.matmul %79, %0, %cst_56 {dimension_numbers = #tpu.dot_dimension_numbers<[1], [0], [0], [1], [0, 0, 1, 1], [], []>} : vector<2x432xbf16>, vector<432x64xbf16>, vector<2x64xf32> -> vector<2x64xf32>
    %81 = vector.broadcast %1 : vector<1x64xf32> to vector<2x64xf32>
    %82 = arith.addf %80, %81 : vector<2x64xf32>
    %cst_57 = arith.constant 0.000000e+00 : f32
    %83 = vector.broadcast %cst_57 : f32 to vector<2x64xf32>
    %84 = arith.maximumf %82, %83 : vector<2x64xf32>
    %85 = arith.truncf %84 : vector<2x64xf32> to vector<2x64xbf16>
    %c6_58 = arith.constant 6 : index
    %c0_59 = arith.constant 0 : index
    %c0_60 = arith.constant 0 : index
    %86 = vector.load %arg5[%c6_58, %c0_59, %c0_60] : memref<9x64x64xbf16, #tpu.memory_space<vmem>>, vector<1x64x64xbf16>
    %87 = vector.shape_cast %86 : vector<1x64x64xbf16> to vector<64x64xbf16>
    %cst_61 = arith.constant dense<0.000000e+00> : vector<2x64xf32>
    %88 = tpu.matmul %85, %87, %cst_61 {dimension_numbers = #tpu.dot_dimension_numbers<[1], [0], [0], [1], [0, 0, 1, 1], [], []>} : vector<2x64xbf16>, vector<64x64xbf16>, vector<2x64xf32> -> vector<2x64xf32>
    %89 = arith.addf %77, %88 : vector<2x64xf32>
    %c7 = arith.constant 7 : index
    %c0_62 = arith.constant 0 : index
    %c0_63 = arith.constant 0 : index
    %90 = vector.load %arg1[%c7, %c0_62, %c0_63] : memref<9x2x432xbf16, #tpu.memory_space<vmem>>, vector<1x2x432xbf16>
    %91 = vector.shape_cast %90 : vector<1x2x432xbf16> to vector<2x432xbf16>
    %cst_64 = arith.constant dense<0.000000e+00> : vector<2x64xf32>
    %92 = tpu.matmul %91, %0, %cst_64 {dimension_numbers = #tpu.dot_dimension_numbers<[1], [0], [0], [1], [0, 0, 1, 1], [], []>} : vector<2x432xbf16>, vector<432x64xbf16>, vector<2x64xf32> -> vector<2x64xf32>
    %93 = vector.broadcast %1 : vector<1x64xf32> to vector<2x64xf32>
    %94 = arith.addf %92, %93 : vector<2x64xf32>
    %cst_65 = arith.constant 0.000000e+00 : f32
    %95 = vector.broadcast %cst_65 : f32 to vector<2x64xf32>
    %96 = arith.maximumf %94, %95 : vector<2x64xf32>
    %97 = arith.truncf %96 : vector<2x64xf32> to vector<2x64xbf16>
    %c7_66 = arith.constant 7 : index
    %c0_67 = arith.constant 0 : index
    %c0_68 = arith.constant 0 : index
    %98 = vector.load %arg5[%c7_66, %c0_67, %c0_68] : memref<9x64x64xbf16, #tpu.memory_space<vmem>>, vector<1x64x64xbf16>
    %99 = vector.shape_cast %98 : vector<1x64x64xbf16> to vector<64x64xbf16>
    %cst_69 = arith.constant dense<0.000000e+00> : vector<2x64xf32>
    %100 = tpu.matmul %97, %99, %cst_69 {dimension_numbers = #tpu.dot_dimension_numbers<[1], [0], [0], [1], [0, 0, 1, 1], [], []>} : vector<2x64xbf16>, vector<64x64xbf16>, vector<2x64xf32> -> vector<2x64xf32>
    %101 = arith.addf %89, %100 : vector<2x64xf32>
    %c8 = arith.constant 8 : index
    %c0_70 = arith.constant 0 : index
    %c0_71 = arith.constant 0 : index
    %102 = vector.load %arg1[%c8, %c0_70, %c0_71] : memref<9x2x432xbf16, #tpu.memory_space<vmem>>, vector<1x2x432xbf16>
    %103 = vector.shape_cast %102 : vector<1x2x432xbf16> to vector<2x432xbf16>
    %cst_72 = arith.constant dense<0.000000e+00> : vector<2x64xf32>
    %104 = tpu.matmul %103, %0, %cst_72 {dimension_numbers = #tpu.dot_dimension_numbers<[1], [0], [0], [1], [0, 0, 1, 1], [], []>} : vector<2x432xbf16>, vector<432x64xbf16>, vector<2x64xf32> -> vector<2x64xf32>
    %105 = vector.broadcast %1 : vector<1x64xf32> to vector<2x64xf32>
    %106 = arith.addf %104, %105 : vector<2x64xf32>
    %cst_73 = arith.constant 0.000000e+00 : f32
    %107 = vector.broadcast %cst_73 : f32 to vector<2x64xf32>
    %108 = arith.maximumf %106, %107 : vector<2x64xf32>
    %109 = arith.truncf %108 : vector<2x64xf32> to vector<2x64xbf16>
    %c8_74 = arith.constant 8 : index
    %c0_75 = arith.constant 0 : index
    %c0_76 = arith.constant 0 : index
    %110 = vector.load %arg5[%c8_74, %c0_75, %c0_76] : memref<9x64x64xbf16, #tpu.memory_space<vmem>>, vector<1x64x64xbf16>
    %111 = vector.shape_cast %110 : vector<1x64x64xbf16> to vector<64x64xbf16>
    %cst_77 = arith.constant dense<0.000000e+00> : vector<2x64xf32>
    %112 = tpu.matmul %109, %111, %cst_77 {dimension_numbers = #tpu.dot_dimension_numbers<[1], [0], [0], [1], [0, 0, 1, 1], [], []>} : vector<2x64xbf16>, vector<64x64xbf16>, vector<2x64xf32> -> vector<2x64xf32>
    %113 = arith.addf %101, %112 : vector<2x64xf32>
    %cst_78 = arith.constant 0.000000e+00 : f32
    %114 = vector.broadcast %cst_78 : f32 to vector<2x64xf32>
    %115 = arith.maximumf %113, %114 : vector<2x64xf32>
    %c0_79 = arith.constant 0 : index
    %c0_80 = arith.constant 0 : index
    %116 = vector.load %arg2[%c0_79, %c0_80] : memref<2x2xf32, #tpu.memory_space<vmem>>, vector<2x2xf32>
    %c0_81 = arith.constant 0 : index
    %c0_82 = arith.constant 0 : index
    %117 = vector.load %arg7[%c0_81, %c0_82] : memref<2x32xf32, #tpu.memory_space<vmem>>, vector<2x32xf32>
    %cst_83 = arith.constant dense<0.000000e+00> : vector<2x32xf32>
    %118 = tpu.matmul %116, %117, %cst_83 {dimension_numbers = #tpu.dot_dimension_numbers<[1], [0], [0], [1], [0, 0, 1, 1], [], []>} : vector<2x2xf32>, vector<2x32xf32>, vector<2x32xf32> -> vector<2x32xf32>
    %c0_84 = arith.constant 0 : index
    %c0_85 = arith.constant 0 : index
    %119 = vector.load %arg8[%c0_84, %c0_85] : memref<1x32xf32, #tpu.memory_space<vmem>>, vector<1x32xf32>
    %120 = vector.broadcast %119 : vector<1x32xf32> to vector<2x32xf32>
    %121 = arith.addf %118, %120 : vector<2x32xf32>
    %cst_86 = arith.constant 0.000000e+00 : f32
    %122 = vector.broadcast %cst_86 : f32 to vector<2x32xf32>
    %123 = arith.maximumf %121, %122 : vector<2x32xf32>
    %c0_87 = arith.constant 0 : index
    %c0_88 = arith.constant 0 : index
    %124 = vector.load %arg9[%c0_87, %c0_88] : memref<1x32xf32, #tpu.memory_space<vmem>>, vector<1x32xf32>
    %125 = vector.broadcast %124 : vector<1x32xf32> to vector<2x32xf32>
    %126 = arith.mulf %123, %125 : vector<2x32xf32>
    %c0_89 = arith.constant 0 : index
    %c0_90 = arith.constant 0 : index
    %127 = vector.load %arg10[%c0_89, %c0_90] : memref<1x32xf32, #tpu.memory_space<vmem>>, vector<1x32xf32>
    %128 = vector.broadcast %127 : vector<1x32xf32> to vector<2x32xf32>
    %129 = arith.addf %126, %128 : vector<2x32xf32>
    %130 = arith.truncf %115 : vector<2x64xf32> to vector<2x64xbf16>
    %c0_91 = arith.constant 0 : index
    %c0_92 = arith.constant 0 : index
    %131 = vector.load %arg11[%c0_91, %c0_92] : memref<64x100xbf16, #tpu.memory_space<vmem>>, vector<64x100xbf16>
    %cst_93 = arith.constant dense<0.000000e+00> : vector<2x100xf32>
    %132 = tpu.matmul %130, %131, %cst_93 {dimension_numbers = #tpu.dot_dimension_numbers<[1], [0], [0], [1], [0, 0, 1, 1], [], []>} : vector<2x64xbf16>, vector<64x100xbf16>, vector<2x100xf32> -> vector<2x100xf32>
    %133 = arith.truncf %129 : vector<2x32xf32> to vector<2x32xbf16>
    %c0_94 = arith.constant 0 : index
    %c0_95 = arith.constant 0 : index
    %134 = vector.load %arg12[%c0_94, %c0_95] : memref<32x100xbf16, #tpu.memory_space<vmem>>, vector<32x100xbf16>
    %cst_96 = arith.constant dense<0.000000e+00> : vector<2x100xf32>
    %135 = tpu.matmul %133, %134, %cst_96 {dimension_numbers = #tpu.dot_dimension_numbers<[1], [0], [0], [1], [0, 0, 1, 1], [], []>} : vector<2x32xbf16>, vector<32x100xbf16>, vector<2x100xf32> -> vector<2x100xf32>
    %136 = arith.addf %132, %135 : vector<2x100xf32>
    %c0_97 = arith.constant 0 : index
    %c0_98 = arith.constant 0 : index
    %137 = vector.load %arg13[%c0_97, %c0_98] : memref<1x100xf32, #tpu.memory_space<vmem>>, vector<1x100xf32>
    %138 = vector.broadcast %137 : vector<1x100xf32> to vector<2x100xf32>
    %139 = arith.addf %136, %138 : vector<2x100xf32>
    %cst_99 = arith.constant 0.000000e+00 : f32
    %140 = vector.broadcast %cst_99 : f32 to vector<2x100xf32>
    %141 = arith.maximumf %139, %140 : vector<2x100xf32>
    %142 = arith.truncf %141 : vector<2x100xf32> to vector<2x100xbf16>
    %c0_100 = arith.constant 0 : index
    %c0_101 = arith.constant 0 : index
    %143 = vector.load %arg14[%c0_100, %c0_101] : memref<100x50xbf16, #tpu.memory_space<vmem>>, vector<100x50xbf16>
    %cst_102 = arith.constant dense<0.000000e+00> : vector<2x50xf32>
    %144 = tpu.matmul %142, %143, %cst_102 {dimension_numbers = #tpu.dot_dimension_numbers<[1], [0], [0], [1], [0, 0, 1, 1], [], []>} : vector<2x100xbf16>, vector<100x50xbf16>, vector<2x50xf32> -> vector<2x50xf32>
    %c0_103 = arith.constant 0 : index
    %c0_104 = arith.constant 0 : index
    %145 = vector.load %arg15[%c0_103, %c0_104] : memref<1x50xf32, #tpu.memory_space<vmem>>, vector<1x50xf32>
    %146 = vector.broadcast %145 : vector<1x50xf32> to vector<2x50xf32>
    %147 = arith.addf %144, %146 : vector<2x50xf32>
    %cst_105 = arith.constant 0.000000e+00 : f32
    %148 = vector.broadcast %cst_105 : f32 to vector<2x50xf32>
    %149 = arith.maximumf %147, %148 : vector<2x50xf32>
    %150 = arith.truncf %149 : vector<2x50xf32> to vector<2x50xbf16>
    %c0_106 = arith.constant 0 : index
    %c0_107 = arith.constant 0 : index
    %151 = vector.load %arg16[%c0_106, %c0_107] : memref<50x10xbf16, #tpu.memory_space<vmem>>, vector<50x10xbf16>
    %cst_108 = arith.constant dense<0.000000e+00> : vector<2x10xf32>
    %152 = tpu.matmul %150, %151, %cst_108 {dimension_numbers = #tpu.dot_dimension_numbers<[1], [0], [0], [1], [0, 0, 1, 1], [], []>} : vector<2x50xbf16>, vector<50x10xbf16>, vector<2x10xf32> -> vector<2x10xf32>
    %c0_109 = arith.constant 0 : index
    %c0_110 = arith.constant 0 : index
    %153 = vector.load %arg17[%c0_109, %c0_110] : memref<1x10xf32, #tpu.memory_space<vmem>>, vector<1x10xf32>
    %154 = vector.broadcast %153 : vector<1x10xf32> to vector<2x10xf32>
    %155 = arith.addf %152, %154 : vector<2x10xf32>
    %cst_111 = arith.constant 0.000000e+00 : f32
    %156 = vector.broadcast %cst_111 : f32 to vector<2x10xf32>
    %157 = arith.maximumf %155, %156 : vector<2x10xf32>
    %158 = arith.truncf %157 : vector<2x10xf32> to vector<2x10xbf16>
    %c0_112 = arith.constant 0 : index
    %c0_113 = arith.constant 0 : index
    %159 = vector.load %arg18[%c0_112, %c0_113] : memref<10x1xbf16, #tpu.memory_space<vmem>>, vector<10x1xbf16>
    %cst_114 = arith.constant dense<0.000000e+00> : vector<2x1xf32>
    %160 = tpu.matmul %158, %159, %cst_114 {dimension_numbers = #tpu.dot_dimension_numbers<[1], [0], [0], [1], [0, 0, 1, 1], [], []>} : vector<2x10xbf16>, vector<10x1xbf16>, vector<2x1xf32> -> vector<2x1xf32>
    %c0_115 = arith.constant 0 : index
    %c0_116 = arith.constant 0 : index
    %161 = vector.load %arg19[%c0_115, %c0_116] : memref<1x1xf32, #tpu.memory_space<vmem>>, vector<1x1xf32>
    %162 = vector.broadcast %161 : vector<1x1xf32> to vector<2x1xf32>
    %163 = arith.addf %160, %162 : vector<2x1xf32>
    %c0_117 = arith.constant 0 : index
    %c0_118 = arith.constant 0 : index
    %164 = vector.load %arg20[%c0_117, %c0_118] : memref<2x1xf32, #tpu.memory_space<vmem>>, vector<2x1xf32>
    tpu.vector_store %arg20[%c0_117, %c0_118], %163 {strides = array<i32>} : memref<2x1xf32, #tpu.memory_space<vmem>>, vector<2x1xf32>,
    return
  }
  func.func @transform_0(%arg0: i32) -> (i32, i32, i32) {
    %c0_i32 = arith.constant 0 : i32
    %c0_i32_0 = arith.constant 0 : i32
    %c0_i32_1 = arith.constant 0 : i32
    %c0_i32_2 = arith.constant 0 : i32
    return %c0_i32, %c0_i32_0, %c0_i32_1 : i32, i32, i32
  }
  func.func @transform_1(%arg0: i32) -> (i32, i32) {
    %c0_i32 = arith.constant 0 : i32
    %c0_i32_0 = arith.constant 0 : i32
    %c0_i32_1 = arith.constant 0 : i32
    return %c0_i32, %c0_i32_0 : i32, i32
  }
  func.func @transform_2(%arg0: i32) -> (i32, i32) {
    %c0_i32 = arith.constant 0 : i32
    %c0_i32_0 = arith.constant 0 : i32
    %c0_i32_1 = arith.constant 0 : i32
    return %c0_i32, %c0_i32_0 : i32, i32
  }
  func.func @transform_3(%arg0: i32) -> (i32, i32) {
    %c0_i32 = arith.constant 0 : i32
    %c0_i32_0 = arith.constant 0 : i32
    %c0_i32_1 = arith.constant 0 : i32
    return %c0_i32, %c0_i32_0 : i32, i32
  }
  func.func @transform_4(%arg0: i32) -> (i32, i32, i32) {
    %c0_i32 = arith.constant 0 : i32
    %c0_i32_0 = arith.constant 0 : i32
    %c0_i32_1 = arith.constant 0 : i32
    %c0_i32_2 = arith.constant 0 : i32
    return %c0_i32, %c0_i32_0, %c0_i32_1 : i32, i32, i32
  }
  func.func @transform_5(%arg0: i32) -> (i32, i32) {
    %c0_i32 = arith.constant 0 : i32
    %c0_i32_0 = arith.constant 0 : i32
    %c0_i32_1 = arith.constant 0 : i32
    return %c0_i32, %c0_i32_0 : i32, i32
  }
  func.func @transform_6(%arg0: i32) -> (i32, i32) {
    %c0_i32 = arith.constant 0 : i32
    %c0_i32_0 = arith.constant 0 : i32
    %c0_i32_1 = arith.constant 0 : i32
    return %c0_i32, %c0_i32_0 : i32, i32
  }
  func.func @transform_7(%arg0: i32) -> (i32, i32) {
    %c0_i32 = arith.constant 0 : i32
    %c0_i32_0 = arith.constant 0 : i32
    %c0_i32_1 = arith.constant 0 : i32
    return %c0_i32, %c0_i32_0 : i32, i32
  }
  func.func @transform_8(%arg0: i32) -> (i32, i32) {
    %c0_i32 = arith.constant 0 : i32
    %c0_i32_0 = arith.constant 0 : i32
    %c0_i32_1 = arith.constant 0 : i32
    return %c0_i32, %c0_i32_0 : i32, i32
  }
  func.func @transform_9(%arg0: i32) -> (i32, i32) {
    %c0_i32 = arith.constant 0 : i32
    %c0_i32_0 = arith.constant 0 : i32
    %c0_i32_1 = arith.constant 0 : i32
    return %c0_i32, %c0_i32_0 : i32, i32
  }
  func.func @transform_10(%arg0: i32) -> (i32, i32) {
    %c0_i32 = arith.constant 0 : i32
    %c0_i32_0 = arith.constant 0 : i32
    %c0_i32_1 = arith.constant 0 : i32
    return %c0_i32, %c0_i32_0 : i32, i32
  }
  func.func @transform_11(%arg0: i32) -> (i32, i32) {
    %c0_i32 = arith.constant 0 : i32
    %c0_i32_0 = arith.constant 0 : i32
    %c0_i32_1 = arith.constant 0 : i32
    return %c0_i32, %c0_i32_0 : i32, i32
  }
  func.func @transform_12(%arg0: i32) -> (i32, i32) {
    %c0_i32 = arith.constant 0 : i32
    %c0_i32_0 = arith.constant 0 : i32
    %c0_i32_1 = arith.constant 0 : i32
    return %c0_i32, %c0_i32_0 : i32, i32
  }
  func.func @transform_13(%arg0: i32) -> (i32, i32) {
    %c0_i32 = arith.constant 0 : i32
    %c0_i32_0 = arith.constant 0 : i32
    %c0_i32_1 = arith.constant 0 : i32
    return %c0_i32, %c0_i32_0 : i32, i32
  }
  func.func @transform_14(%arg0: i32) -> (i32, i32) {
    %c0_i32 = arith.constant 0 : i32
    %c0_i32_0 = arith.constant 0 : i32
    %c0_i32_1 = arith.constant 0 : i32
    return %c0_i32, %c0_i32_0 : i32, i32
  }
  func.func @transform_15(%arg0: i32) -> (i32, i32) {
    %c0_i32 = arith.constant 0 : i32
    %c0_i32_0 = arith.constant 0 : i32
    %c0_i32_1 = arith.constant 0 : i32
    return %c0_i32, %c0_i32_0 : i32, i32
  }
  func.func @transform_16(%arg0: i32) -> (i32, i32) {
    %c0_i32 = arith.constant 0 : i32
    %c0_i32_0 = arith.constant 0 : i32
    %c0_i32_1 = arith.constant 0 : i32
    return %c0_i32, %c0_i32_0 : i32, i32
  }
  func.func @transform_17(%arg0: i32) -> (i32, i32) {
    %c0_i32 = arith.constant 0 : i32
    %c0_i32_0 = arith.constant 0 : i32
    %c0_i32_1 = arith.constant 0 : i32
    return %c0_i32, %c0_i32_0 : i32, i32
  }
  func.func @transform_18(%arg0: i32) -> (i32, i32) {
    %c0_i32 = arith.constant 0 : i32
    %c0_i32_0 = arith.constant 0 : i32
    %c0_i32_1 = arith.constant 0 : i32
    return %c0_i32, %c0_i32_0 : i32, i32
  }
  func.func @transform_19(%arg0: i32) -> (i32, i32) {
    %c0_i32 = arith.constant 0 : i32
    %c0_i32_0 = arith.constant 0 : i32
    %c0_i32_1 = arith.constant 0 : i32
    return %c0_i32, %c0_i32_0 : i32, i32
  }
}

</mosaic_0001>

<bundles_post_ra>
// kernel: fwd.4
= control target key start
LH: loop header
LB: loop body
LE: loop exit
PB: predicated region body
PF: predicated region fallthrough
CT: control target
= control target key end

     0   :  { %s1378_s12 = smov 0   ;;  %s1563_s0 = inlined_call_operand.vmem [shape: bf16[2048,128], index: 0, kind: input, shape index: {}]   ;;  %s1564_s1 = inlined_call_operand.vmem [shape: bf16[128,128], index: 1, kind: input, shape index: {}]   ;;  %s1565_s2 = inlined_call_operand.vmem [shape: f32[1,128], index: 2, kind: input, shape index: {}]   ;;  %s1566_s3 = inlined_call_operand.vmem [shape: bf16[2048,128], index: 3, kind: output, shape index: {}]  }
   0x1 LB: > { %s915_s13 = sadd.s32 4294967295, %s1356_s12   ;;  %p919_p0 = scmp.ge.s32.totalorder %s1356_s12, 1  ;;  %s1356_s12 = sphi %s1378_s12, %s13_s12  }
   0x2   : > { %p138_p1 = scmp.lt.s32.totalorder %s1356_s12, 5 }
   0x4   : > { %p139_p2 = pnand %p919_p0, %p138_p1 }
   0x5   : > { %s920_s22 = sshll.u32 (!%p139_p2), %s915_s13, 6 }
   0x6   : > { %142 = sbr.rel (%p139_p2) target bundleno = 304 (0x130), region = 32  ;;  %p163_p3 = scmp.lt.s32.totalorder (!%p139_p2), %s920_s22, 255 }
   0xb   : > { %v1125_v0 = vld [vmem:[%s1564_s1 + $0x38] sm:$0xff]  ;;  %v1124_v1 = vld [vmem:[%s1564_s1 + $0x30] sm:$0xff]  ;;  %v1123_v2 = vld [vmem:[%s1564_s1 + $0x28] sm:$0xff]  ;;  %s1568_s22 = smov (!%p163_p3, %s920_s22), 255 }
   0xc   : > { %498 = vmatpush.bf16.msra.mxu0 %v1125_v0  ;;  %1317 = vmatpush.bf16.msra.mxu1 %v1125_v0  ;;  %v1122_v3 = vld [vmem:[%s1564_s1 + $0x20] sm:$0xff]  ;;  %v1121_v4 = vld [vmem:[%s1564_s1 + $0x18] sm:$0xff]  ;;  %v1120_v5 = vld [vmem:[%s1564_s1 + $0x10] sm:$0xff]  ;;  %s921_s29 = sshll.u32 %s1568_s22, 2 }
   0xd   : > { %1318 = vmatpush.bf16.msra.mxu2 %v1125_v0  ;;  %1319 = vmatpush.bf16.msra.mxu3 %v1125_v0  ;;  %v1119_v6 = vld [vmem:[%s1564_s1 + $0x8] sm:$0xff]  ;;  %v1118_v7 = vld [vmem:[%s1564_s1] sm:$0xff]  ;;  %s1418_s7 = scalar_lea.vmem %s1563_s0, %s921_s29  ;;  %s1466_s13 = scalar_lea.vmem %s1566_s3, %s921_s29 }
   0xe   : > { %v1086_v8 = vld [vmem:[%s1418_s7] sm:$0xff]  ;;  %v1087_v12 = vld [vmem:[%s1418_s7 + $0x8] sm:$0xff]  ;;  %v1088_v16 = vld [vmem:[%s1418_s7 + $0x10] sm:$0xff] }
   0xf   : > { %v1094_v9 = vld [vmem:[%s1418_s7 + $0x40] sm:$0xff]  ;;  %v1095_v13 = vld [vmem:[%s1418_s7 + $0x48] sm:$0xff]  ;;  %v1096_v17 = vld [vmem:[%s1418_s7 + $0x50] sm:$0xff] }
  0x10   : > { %499 = vmatpush.bf16.msra.mxu0 %v1124_v1  ;;  %1320 = vmatpush.bf16.msra.mxu1 %v1124_v1  ;;  %v1102_v10 = vld [vmem:[%s1418_s7 + $0x80] sm:$0xff]  ;;  %v1103_v14 = vld [vmem:[%s1418_s7 + $0x88] sm:$0xff]  ;;  %v1104_v18 = vld [vmem:[%s1418_s7 + $0x90] sm:$0xff] }
  0x11   : > { %1321 = vmatpush.bf16.msra.mxu2 %v1124_v1  ;;  %1322 = vmatpush.bf16.msra.mxu3 %v1124_v1  ;;  %v1110_v11 = vld [vmem:[%s1418_s7 + $0xc0] sm:$0xff]  ;;  %v1111_v15 = vld [vmem:[%s1418_s7 + $0xc8] sm:$0xff]  ;;  %v1112_v19 = vld [vmem:[%s1418_s7 + $0xd0] sm:$0xff] }
  0x12   : > { %v1089_v20 = vld [vmem:[%s1418_s7 + $0x18] sm:$0xff]  ;;  %v1090_v24 = vld [vmem:[%s1418_s7 + $0x20] sm:$0xff]  ;;  %v1091_v28 = vld [vmem:[%s1418_s7 + $0x28] sm:$0xff] }
  0x13   : > { %v1097_v21 = vld [vmem:[%s1418_s7 + $0x58] sm:$0xff]  ;;  %v1098_v25 = vld [vmem:[%s1418_s7 + $0x60] sm:$0xff]  ;;  %v1099_v29 = vld [vmem:[%s1418_s7 + $0x68] sm:$0xff] }
  0x14   : > { %500 = vmatpush.bf16.msra.mxu0 %v1123_v2  ;;  %1323 = vmatpush.bf16.msra.mxu1 %v1123_v2  ;;  %v1105_v22 = vld [vmem:[%s1418_s7 + $0x98] sm:$0xff]  ;;  %v1106_v26 = vld [vmem:[%s1418_s7 + $0xa0] sm:$0xff]  ;;  %v1107_v30 = vld [vmem:[%s1418_s7 + $0xa8] sm:$0xff] }
  0x15   : > { %1324 = vmatpush.bf16.msra.mxu2 %v1123_v2  ;;  %1325 = vmatpush.bf16.msra.mxu3 %v1123_v2  ;;  %v1113_v23 = vld [vmem:[%s1418_s7 + $0xd8] sm:$0xff]  ;;  %v1114_v27 = vld [vmem:[%s1418_s7 + $0xe0] sm:$0xff]  ;;  %v1115_v31 = vld [vmem:[%s1418_s7 + $0xe8] sm:$0xff] }
  0x16   : > { %v1092_v32 = vld [vmem:[%s1418_s7 + $0x30] sm:$0xff]  ;;  %v1093_v36 = vld [vmem:[%s1418_s7 + $0x38] sm:$0xff]  ;;  %v1455_v42 = vld [vmem:[%s1565_s2] ss:$0 sm:$0xff] }
  0x17   : > { %v1100_v33 = vld [vmem:[%s1418_s7 + $0x70] sm:$0xff]  ;;  %v1101_v37 = vld [vmem:[%s1418_s7 + $0x78] sm:$0xff] }
  0x18   : > { %501 = vmatpush.bf16.msra.mxu0 %v1122_v3  ;;  %1326 = vmatpush.bf16.msra.mxu1 %v1122_v3  ;;  %v1108_v34 = vld [vmem:[%s1418_s7 + $0xb0] sm:$0xff]  ;;  %v1109_v38 = vld [vmem:[%s1418_s7 + $0xb8] sm:$0xff] }
  0x19   : > { %1327 = vmatpush.bf16.msra.mxu2 %v1122_v3  ;;  %1328 = vmatpush.bf16.msra.mxu3 %v1122_v3  ;;  %v1116_v35 = vld [vmem:[%s1418_s7 + $0xf0] sm:$0xff]  ;;  %v1117_v39 = vld [vmem:[%s1418_s7 + $0xf8] sm:$0xff] }
  0x1c   : > { %502 = vmatpush.bf16.msra.mxu0 %v1121_v4  ;;  %1329 = vmatpush.bf16.msra.mxu1 %v1121_v4 }
  0x1d   : > { %1330 = vmatpush.bf16.msra.mxu2 %v1121_v4  ;;  %1331 = vmatpush.bf16.msra.mxu3 %v1121_v4 }
  0x20   : > { %503 = vmatpush.bf16.msra.mxu0 %v1120_v5  ;;  %1332 = vmatpush.bf16.msra.mxu1 %v1120_v5 }
  0x21   : > { %1333 = vmatpush.bf16.msra.mxu2 %v1120_v5  ;;  %1334 = vmatpush.bf16.msra.mxu3 %v1120_v5 }
  0x24   : > { %504 = vmatpush.bf16.msra.mxu0 %v1119_v6  ;;  %1335 = vmatpush.bf16.msra.mxu1 %v1119_v6 }
  0x25   : > { %1336 = vmatpush.bf16.msra.mxu2 %v1119_v6  ;;  %1337 = vmatpush.bf16.msra.mxu3 %v1119_v6 }
  0x28   : > { %505 = vmatpush.bf16.msra.mxu0 %v1118_v7  ;;  %1338 = vmatpush.bf16.msra.mxu1 %v1118_v7 }
  0x29   : > { %1339 = vmatpush.bf16.msra.mxu2 %v1118_v7  ;;  %1340 = vmatpush.bf16.msra.mxu3 %v1118_v7 }
  0x2b   : > { %506 = vmatmul.bf16.vlgmr.msra.gmra.mxu0 %v1086_v8  ;;  %546 = vmatmul.bf16.vlgmr.msra.gmra.mxu1 %v1094_v9 }
  0x2c   : > { %586 = vmatmul.bf16.vlgmr.msra.gmra.mxu2 %v1102_v10  ;;  %626 = vmatmul.bf16.vlgmr.msra.gmra.mxu3 %v1110_v11 }
  0x3b   : > { %511 = vmatmul.bf16.gmra.mxu0 %v1087_v12  ;;  %551 = vmatmul.bf16.gmra.mxu1 %v1095_v13 }
  0x3c   : > { %591 = vmatmul.bf16.gmra.mxu2 %v1103_v14  ;;  %631 = vmatmul.bf16.gmra.mxu3 %v1111_v15 }
  0x4b   : > { %516 = vmatmul.bf16.gmra.mxu0 %v1088_v16  ;;  %556 = vmatmul.bf16.gmra.mxu1 %v1096_v17 }
  0x4c   : > { %596 = vmatmul.bf16.gmra.mxu2 %v1104_v18  ;;  %636 = vmatmul.bf16.gmra.mxu3 %v1112_v19 }
  0x5b   : > { %521 = vmatmul.bf16.gmra.mxu0 %v1089_v20  ;;  %561 = vmatmul.bf16.gmra.mxu1 %v1097_v21 }
  0x5c   : > { %601 = vmatmul.bf16.gmra.mxu2 %v1105_v22  ;;  %641 = vmatmul.bf16.gmra.mxu3 %v1113_v23 }
  0x6b   : > { %526 = vmatmul.bf16.gmra.mxu0 %v1090_v24  ;;  %566 = vmatmul.bf16.gmra.mxu1 %v1098_v25 }
  0x6c   : > { %606 = vmatmul.bf16.gmra.mxu2 %v1106_v26  ;;  %646 = vmatmul.bf16.gmra.mxu3 %v1114_v27 }
  0x7b   : > { %531 = vmatmul.bf16.gmra.mxu0 %v1091_v28  ;;  %571 = vmatmul.bf16.gmra.mxu1 %v1099_v29 }
  0x7c   : > { %611 = vmatmul.bf16.gmra.mxu2 %v1107_v30  ;;  %651 = vmatmul.bf16.gmra.mxu3 %v1115_v31 }
  0x8b   : > { %536 = vmatmul.bf16.gmra.mxu0 %v1092_v32  ;;  %576 = vmatmul.bf16.gmra.mxu1 %v1100_v33 }
  0x8c   : > { %616 = vmatmul.bf16.gmra.mxu2 %v1108_v34  ;;  %656 = vmatmul.bf16.gmra.mxu3 %v1116_v35 }
  0x9b   : > { %541 = vmatmul.bf16.gmra.mxu0 %v1093_v36  ;;  %581 = vmatmul.bf16.gmra.mxu1 %v1101_v37 }
  0x9c   : > { %621 = vmatmul.bf16.gmra.mxu2 %v1109_v38  ;;  %661 = vmatmul.bf16.gmra.mxu3 %v1117_v39 }
  0xa8   : > { %v507_v40 = vpop.f32.mrf.mxu0  ;;  %v547_v41 = vpop.f32.mrf.mxu1 }
  0xa9   : > { %v508_v43 = vadd.f32 %v1455_v42, %v507_v40  ;;  %v548_v44 = vadd.f32 %v1455_v42, %v547_v41 }
  0xab   : > { %v667_v51 = vmax.f32 %v508_v43, 0.0  ;;  %v683_v52 = vmax.f32 %v548_v44, 0.0 }
  0xaf   : > { %v587_v45 = vpop.f32.mrf.mxu2  ;;  %v627_v46 = vpop.f32.mrf.mxu3 }
  0xb0   : > { %v509_v47 = vpop.f32.mrf.mxu0  ;;  %v549_v48 = vpop.f32.mrf.mxu1  ;;  %v588_v57 = vadd.f32 %v1455_v42, %v587_v45  ;;  %v628_v58 = vadd.f32 %v1455_v42, %v627_v46 }
  0xb1   : > { %v510_v49 = vadd.f32 %v1455_v42, %v509_v47  ;;  %v550_v50 = vadd.f32 %v1455_v42, %v549_v48 }
  0xb2   : > { %v699_v1 = vmax.f32 %v588_v57, 0.0  ;;  %v715_v2 = vmax.f32 %v628_v58, 0.0 }
  0xb3   : > { %v668_v53 = vmax.f32 %v510_v49, 0.0  ;;  %v684_v54 = vmax.f32 %v550_v50, 0.0 }
  0xb5   : > { %v1129_v55 = vpack.c.bf16 %v668_v53, %v667_v51  ;;  %v1169_v56 = vpack.c.bf16 %v684_v54, %v683_v52 }
  0xb7   : > { %1130 = vst [vmem:[%s1466_s13] sm:$0xff] %v1129_v55   ;;  %v589_v59 = vpop.f32.mrf.mxu2  ;;  %v629_v60 = vpop.f32.mrf.mxu3 }
  0xb8   : > { %1293 = vst [vmem:[%s1466_s13 + $0x40] sm:$0xff] %v1169_v56   ;;  %v590_v61 = vadd.f32 %v1455_v42, %v589_v59  ;;  %v630_v62 = vadd.f32 %v1455_v42, %v629_v60  ;;  %v512_v63 = vpop.f32.mrf.mxu0  ;;  %v552_v0 = vpop.f32.mrf.mxu1 }
  0xb9   : > { %v513_v7 = vadd.f32 %v1455_v42, %v512_v63  ;;  %v553_v8 = vadd.f32 %v1455_v42, %v552_v0 }
  0xba   : > { %v700_v3 = vmax.f32 %v590_v61, 0.0  ;;  %v716_v4 = vmax.f32 %v630_v62, 0.0 }
  0xbb   : > { %v669_v15 = vmax.f32 %v513_v7, 0.0  ;;  %v685_v16 = vmax.f32 %v553_v8, 0.0 }
  0xbc   : > { %v1209_v5 = vpack.c.bf16 %v700_v3, %v699_v1  ;;  %v1249_v6 = vpack.c.bf16 %v716_v4, %v715_v2 }
  0xbe   : > { %1301 = vst [vmem:[%s1466_s13 + $0x80] sm:$0xff] %v1209_v5  }
  0xbf   : > { %1309 = vst [vmem:[%s1466_s13 + $0xc0] sm:$0xff] %v1249_v6   ;;  %v592_v9 = vpop.f32.mrf.mxu2  ;;  %v632_v10 = vpop.f32.mrf.mxu3 }
  0xc0   : > { %v514_v11 = vpop.f32.mrf.mxu0  ;;  %v554_v12 = vpop.f32.mrf.mxu1  ;;  %v593_v21 = vadd.f32 %v1455_v42, %v592_v9  ;;  %v633_v22 = vadd.f32 %v1455_v42, %v632_v10 }
  0xc1   : > { %v515_v13 = vadd.f32 %v1455_v42, %v514_v11  ;;  %v555_v14 = vadd.f32 %v1455_v42, %v554_v12 }
  0xc2   : > { %v701_v29 = vmax.f32 %v593_v21, 0.0  ;;  %v717_v30 = vmax.f32 %v633_v22, 0.0 }
  0xc3   : > { %v670_v17 = vmax.f32 %v515_v13, 0.0  ;;  %v686_v18 = vmax.f32 %v555_v14, 0.0 }
  0xc5   : > { %v1134_v19 = vpack.c.bf16 %v670_v17, %v669_v15  ;;  %v1174_v20 = vpack.c.bf16 %v686_v18, %v685_v16 }
  0xc7   : > { %1286 = vst [vmem:[%s1466_s13 + $0x8] sm:$0xff] %v1134_v19   ;;  %v594_v23 = vpop.f32.mrf.mxu2  ;;  %v634_v24 = vpop.f32.mrf.mxu3 }
  0xc8   : > { %1294 = vst [vmem:[%s1466_s13 + $0x48] sm:$0xff] %v1174_v20   ;;  %v595_v25 = vadd.f32 %v1455_v42, %v594_v23  ;;  %v635_v26 = vadd.f32 %v1455_v42, %v634_v24  ;;  %v517_v27 = vpop.f32.mrf.mxu0  ;;  %v557_v28 = vpop.f32.mrf.mxu1 }
  0xc9   : > { %v518_v35 = vadd.f32 %v1455_v42, %v517_v27  ;;  %v558_v36 = vadd.f32 %v1455_v42, %v557_v28 }
  0xca   : > { %v702_v31 = vmax.f32 %v595_v25, 0.0  ;;  %v718_v32 = vmax.f32 %v635_v26, 0.0 }
  0xcb   : > { %v671_v44 = vmax.f32 %v518_v35, 0.0  ;;  %v687_v45 = vmax.f32 %v558_v36, 0.0 }
  0xcc   : > { %v1214_v33 = vpack.c.bf16 %v702_v31, %v701_v29  ;;  %v1254_v34 = vpack.c.bf16 %v718_v32, %v717_v30 }
  0xce   : > { %1302 = vst [vmem:[%s1466_s13 + $0x88] sm:$0xff] %v1214_v33  }
  0xcf   : > { %1310 = vst [vmem:[%s1466_s13 + $0xc8] sm:$0xff] %v1254_v34   ;;  %v597_v37 = vpop.f32.mrf.mxu2  ;;  %v637_v38 = vpop.f32.mrf.mxu3 }
  0xd0   : > { %v519_v39 = vpop.f32.mrf.mxu0  ;;  %v559_v40 = vpop.f32.mrf.mxu1  ;;  %v598_v50 = vadd.f32 %v1455_v42, %v597_v37  ;;  %v638_v51 = vadd.f32 %v1455_v42, %v637_v38 }
  0xd1   : > { %v520_v41 = vadd.f32 %v1455_v42, %v519_v39  ;;  %v560_v43 = vadd.f32 %v1455_v42, %v559_v40 }
  0xd2   : > { %v703_v58 = vmax.f32 %v598_v50, 0.0  ;;  %v719_v59 = vmax.f32 %v638_v51, 0.0 }
  0xd3   : > { %v672_v46 = vmax.f32 %v520_v41, 0.0  ;;  %v688_v47 = vmax.f32 %v560_v43, 0.0 }
  0xd5   : > { %v1139_v48 = vpack.c.bf16 %v672_v46, %v671_v44  ;;  %v1179_v49 = vpack.c.bf16 %v688_v47, %v687_v45 }
  0xd7   : > { %1287 = vst [vmem:[%s1466_s13 + $0x10] sm:$0xff] %v1139_v48   ;;  %v599_v52 = vpop.f32.mrf.mxu2  ;;  %v639_v53 = vpop.f32.mrf.mxu3 }
  0xd8   : > { %1295 = vst [vmem:[%s1466_s13 + $0x50] sm:$0xff] %v1179_v49   ;;  %v600_v54 = vadd.f32 %v1455_v42, %v599_v52  ;;  %v640_v55 = vadd.f32 %v1455_v42, %v639_v53  ;;  %v522_v56 = vpop.f32.mrf.mxu0  ;;  %v562_v57 = vpop.f32.mrf.mxu1 }
  0xd9   : > { %v523_v0 = vadd.f32 %v1455_v42, %v522_v56  ;;  %v563_v1 = vadd.f32 %v1455_v42, %v562_v57 }
  0xda   : > { %v704_v60 = vmax.f32 %v600_v54, 0.0  ;;  %v720_v61 = vmax.f32 %v640_v55, 0.0 }
  0xdb   : > { %v673_v8 = vmax.f32 %v523_v0, 0.0  ;;  %v689_v9 = vmax.f32 %v563_v1, 0.0 }
  0xdc   : > { %v1219_v62 = vpack.c.bf16 %v704_v60, %v703_v58  ;;  %v1259_v63 = vpack.c.bf16 %v720_v61, %v719_v59 }
  0xde   : > { %1303 = vst [vmem:[%s1466_s13 + $0x90] sm:$0xff] %v1219_v62  }
  0xdf   : > { %1311 = vst [vmem:[%s1466_s13 + $0xd0] sm:$0xff] %v1259_v63   ;;  %v602_v2 = vpop.f32.mrf.mxu2  ;;  %v642_v3 = vpop.f32.mrf.mxu3 }
  0xe0   : > { %v524_v4 = vpop.f32.mrf.mxu0  ;;  %v564_v5 = vpop.f32.mrf.mxu1  ;;  %v603_v14 = vadd.f32 %v1455_v42, %v602_v2  ;;  %v643_v15 = vadd.f32 %v1455_v42, %v642_v3 }
  0xe1   : > { %v525_v6 = vadd.f32 %v1455_v42, %v524_v4  ;;  %v565_v7 = vadd.f32 %v1455_v42, %v564_v5 }
  0xe2   : > { %v705_v22 = vmax.f32 %v603_v14, 0.0  ;;  %v721_v23 = vmax.f32 %v643_v15, 0.0 }
  0xe3   : > { %v674_v10 = vmax.f32 %v525_v6, 0.0  ;;  %v690_v11 = vmax.f32 %v565_v7, 0.0 }
  0xe5   : > { %v1144_v12 = vpack.c.bf16 %v674_v10, %v673_v8  ;;  %v1184_v13 = vpack.c.bf16 %v690_v11, %v689_v9 }
  0xe7   : > { %1288 = vst [vmem:[%s1466_s13 + $0x18] sm:$0xff] %v1144_v12   ;;  %v604_v16 = vpop.f32.mrf.mxu2  ;;  %v644_v17 = vpop.f32.mrf.mxu3 }
  0xe8   : > { %1296 = vst [vmem:[%s1466_s13 + $0x58] sm:$0xff] %v1184_v13   ;;  %v605_v18 = vadd.f32 %v1455_v42, %v604_v16  ;;  %v645_v19 = vadd.f32 %v1455_v42, %v644_v17  ;;  %v527_v20 = vpop.f32.mrf.mxu0  ;;  %v567_v21 = vpop.f32.mrf.mxu1 }
  0xe9   : > { %v528_v28 = vadd.f32 %v1455_v42, %v527_v20  ;;  %v568_v29 = vadd.f32 %v1455_v42, %v567_v21 }
  0xea   : > { %v706_v24 = vmax.f32 %v605_v18, 0.0  ;;  %v722_v25 = vmax.f32 %v645_v19, 0.0 }
  0xeb   : > { %v675_v36 = vmax.f32 %v528_v28, 0.0  ;;  %v691_v37 = vmax.f32 %v568_v29, 0.0 }
  0xec   : > { %v1224_v26 = vpack.c.bf16 %v706_v24, %v705_v22  ;;  %v1264_v27 = vpack.c.bf16 %v722_v25, %v721_v23 }
  0xee   : > { %1304 = vst [vmem:[%s1466_s13 + $0x98] sm:$0xff] %v1224_v26  }
  0xef   : > { %1312 = vst [vmem:[%s1466_s13 + $0xd8] sm:$0xff] %v1264_v27   ;;  %v607_v30 = vpop.f32.mrf.mxu2  ;;  %v647_v31 = vpop.f32.mrf.mxu3 }
  0xf0   : > { %v529_v32 = vpop.f32.mrf.mxu0  ;;  %v569_v33 = vpop.f32.mrf.mxu1  ;;  %v608_v43 = vadd.f32 %v1455_v42, %v607_v30  ;;  %v648_v44 = vadd.f32 %v1455_v42, %v647_v31 }
  0xf1   : > { %v530_v34 = vadd.f32 %v1455_v42, %v529_v32  ;;  %v570_v35 = vadd.f32 %v1455_v42, %v569_v33 }
  0xf2   : > { %v707_v51 = vmax.f32 %v608_v43, 0.0  ;;  %v723_v52 = vmax.f32 %v648_v44, 0.0 }
  0xf3   : > { %v676_v38 = vmax.f32 %v530_v34, 0.0  ;;  %v692_v39 = vmax.f32 %v570_v35, 0.0 }
  0xf5   : > { %v1149_v40 = vpack.c.bf16 %v676_v38, %v675_v36  ;;  %v1189_v41 = vpack.c.bf16 %v692_v39, %v691_v37 }
  0xf7   : > { %1289 = vst [vmem:[%s1466_s13 + $0x20] sm:$0xff] %v1149_v40   ;;  %v609_v45 = vpop.f32.mrf.mxu2  ;;  %v649_v46 = vpop.f32.mrf.mxu3 }
  0xf8   : > { %1297 = vst [vmem:[%s1466_s13 + $0x60] sm:$0xff] %v1189_v41   ;;  %v610_v47 = vadd.f32 %v1455_v42, %v609_v45  ;;  %v650_v48 = vadd.f32 %v1455_v42, %v649_v46  ;;  %v532_v49 = vpop.f32.mrf.mxu0  ;;  %v572_v50 = vpop.f32.mrf.mxu1 }
  0xf9   : > { %v533_v57 = vadd.f32 %v1455_v42, %v532_v49  ;;  %v573_v58 = vadd.f32 %v1455_v42, %v572_v50 }
  0xfa   : > { %v708_v53 = vmax.f32 %v610_v47, 0.0  ;;  %v724_v54 = vmax.f32 %v650_v48, 0.0 }
  0xfb   : > { %v677_v1 = vmax.f32 %v533_v57, 0.0  ;;  %v693_v2 = vmax.f32 %v573_v58, 0.0 }
  0xfc   : > { %v1229_v55 = vpack.c.bf16 %v708_v53, %v707_v51  ;;  %v1269_v56 = vpack.c.bf16 %v724_v54, %v723_v52 }
  0xfe   : > { %1305 = vst [vmem:[%s1466_s13 + $0xa0] sm:$0xff] %v1229_v55  }
  0xff   : > { %1313 = vst [vmem:[%s1466_s13 + $0xe0] sm:$0xff] %v1269_v56   ;;  %v612_v59 = vpop.f32.mrf.mxu2  ;;  %v652_v60 = vpop.f32.mrf.mxu3 }
 0x100   : > { %v534_v61 = vpop.f32.mrf.mxu0  ;;  %v574_v62 = vpop.f32.mrf.mxu1  ;;  %v613_v7 = vadd.f32 %v1455_v42, %v612_v59  ;;  %v653_v8 = vadd.f32 %v1455_v42, %v652_v60 }
 0x101   : > { %v535_v63 = vadd.f32 %v1455_v42, %v534_v61  ;;  %v575_v0 = vadd.f32 %v1455_v42, %v574_v62 }
 0x102   : > { %v709_v15 = vmax.f32 %v613_v7, 0.0  ;;  %v725_v16 = vmax.f32 %v653_v8, 0.0 }
 0x103   : > { %v678_v3 = vmax.f32 %v535_v63, 0.0  ;;  %v694_v4 = vmax.f32 %v575_v0, 0.0 }
 0x105   : > { %v1154_v5 = vpack.c.bf16 %v678_v3, %v677_v1  ;;  %v1194_v6 = vpack.c.bf16 %v694_v4, %v693_v2 }
 0x107   : > { %1290 = vst [vmem:[%s1466_s13 + $0x28] sm:$0xff] %v1154_v5   ;;  %v614_v9 = vpop.f32.mrf.mxu2  ;;  %v654_v10 = vpop.f32.mrf.mxu3 }
 0x108   : > { %1298 = vst [vmem:[%s1466_s13 + $0x68] sm:$0xff] %v1194_v6   ;;  %v615_v11 = vadd.f32 %v1455_v42, %v614_v9  ;;  %v655_v12 = vadd.f32 %v1455_v42, %v654_v10  ;;  %v537_v13 = vpop.f32.mrf.mxu0  ;;  %v577_v14 = vpop.f32.mrf.mxu1 }
 0x109   : > { %v538_v21 = vadd.f32 %v1455_v42, %v537_v13  ;;  %v578_v22 = vadd.f32 %v1455_v42, %v577_v14 }
 0x10a   : > { %v710_v17 = vmax.f32 %v615_v11, 0.0  ;;  %v726_v18 = vmax.f32 %v655_v12, 0.0 }
 0x10b   : > { %v679_v29 = vmax.f32 %v538_v21, 0.0  ;;  %v695_v30 = vmax.f32 %v578_v22, 0.0 }
 0x10c   : > { %v1234_v19 = vpack.c.bf16 %v710_v17, %v709_v15  ;;  %v1274_v20 = vpack.c.bf16 %v726_v18, %v725_v16 }
 0x10e   : > { %1306 = vst [vmem:[%s1466_s13 + $0xa8] sm:$0xff] %v1234_v19  }
 0x10f   : > { %1314 = vst [vmem:[%s1466_s13 + $0xe8] sm:$0xff] %v1274_v20   ;;  %v617_v23 = vpop.f32.mrf.mxu2  ;;  %v657_v24 = vpop.f32.mrf.mxu3 }
 0x110   : > { %v539_v25 = vpop.f32.mrf.mxu0  ;;  %v579_v26 = vpop.f32.mrf.mxu1  ;;  %v618_v35 = vadd.f32 %v1455_v42, %v617_v23  ;;  %v658_v36 = vadd.f32 %v1455_v42, %v657_v24 }
 0x111   : > { %v540_v27 = vadd.f32 %v1455_v42, %v539_v25  ;;  %v580_v28 = vadd.f32 %v1455_v42, %v579_v26 }
 0x112   : > { %v711_v44 = vmax.f32 %v618_v35, 0.0  ;;  %v727_v45 = vmax.f32 %v658_v36, 0.0 }
 0x113   : > { %v680_v31 = vmax.f32 %v540_v27, 0.0  ;;  %v696_v32 = vmax.f32 %v580_v28, 0.0 }
 0x115   : > { %v1159_v33 = vpack.c.bf16 %v680_v31, %v679_v29  ;;  %v1199_v34 = vpack.c.bf16 %v696_v32, %v695_v30 }
 0x117   : > { %1291 = vst [vmem:[%s1466_s13 + $0x30] sm:$0xff] %v1159_v33   ;;  %v619_v37 = vpop.f32.mrf.mxu2  ;;  %v659_v38 = vpop.f32.mrf.mxu3 }
 0x118   : > { %1299 = vst [vmem:[%s1466_s13 + $0x70] sm:$0xff] %v1199_v34   ;;  %v620_v39 = vadd.f32 %v1455_v42, %v619_v37  ;;  %v660_v40 = vadd.f32 %v1455_v42, %v659_v38  ;;  %v542_v41 = vpop.f32.mrf.mxu0  ;;  %v582_v43 = vpop.f32.mrf.mxu1 }
 0x119   : > { %v543_v50 = vadd.f32 %v1455_v42, %v542_v41  ;;  %v583_v51 = vadd.f32 %v1455_v42, %v582_v43 }
 0x11a   : > { %v712_v46 = vmax.f32 %v620_v39, 0.0  ;;  %v728_v47 = vmax.f32 %v660_v40, 0.0 }
 0x11b   : > { %v681_v58 = vmax.f32 %v543_v50, 0.0  ;;  %v697_v59 = vmax.f32 %v583_v51, 0.0 }
 0x11c   : > { %v1239_v48 = vpack.c.bf16 %v712_v46, %v711_v44  ;;  %v1279_v49 = vpack.c.bf16 %v728_v47, %v727_v45 }
 0x11e   : > { %1307 = vst [vmem:[%s1466_s13 + $0xb0] sm:$0xff] %v1239_v48  }
 0x11f   : > { %1315 = vst [vmem:[%s1466_s13 + $0xf0] sm:$0xff] %v1279_v49   ;;  %v622_v52 = vpop.f32.mrf.mxu2  ;;  %v662_v53 = vpop.f32.mrf.mxu3 }
 0x120   : > { %v544_v54 = vpop.f32.mrf.mxu0  ;;  %v584_v55 = vpop.f32.mrf.mxu1  ;;  %v623_v0 = vadd.f32 %v1455_v42, %v622_v52  ;;  %v663_v1 = vadd.f32 %v1455_v42, %v662_v53 }
 0x121   : > { %v545_v56 = vadd.f32 %v1455_v42, %v544_v54  ;;  %v585_v57 = vadd.f32 %v1455_v42, %v584_v55 }
 0x122   : > { %v713_v6 = vmax.f32 %v623_v0, 0.0  ;;  %v729_v7 = vmax.f32 %v663_v1, 0.0 }
 0x123   : > { %v682_v60 = vmax.f32 %v545_v56, 0.0  ;;  %v698_v61 = vmax.f32 %v585_v57, 0.0 }
 0x125   : > { %v1164_v62 = vpack.c.bf16 %v682_v60, %v681_v58  ;;  %v1204_v63 = vpack.c.bf16 %v698_v61, %v697_v59 }
 0x127   : > { %1292 = vst [vmem:[%s1466_s13 + $0x38] sm:$0xff] %v1164_v62   ;;  %v624_v2 = vpop.f32.mrf.mxu2  ;;  %v664_v3 = vpop.f32.mrf.mxu3 }
 0x128   : > { %1300 = vst [vmem:[%s1466_s13 + $0x78] sm:$0xff] %v1204_v63   ;;  %v625_v4 = vadd.f32 %v1455_v42, %v624_v2  ;;  %v665_v5 = vadd.f32 %v1455_v42, %v664_v3 }
 0x12a   : > { %v714_v8 = vmax.f32 %v625_v4, 0.0  ;;  %v730_v9 = vmax.f32 %v665_v5, 0.0 }
 0x12c   : > { %v1244_v10 = vpack.c.bf16 %v714_v8, %v713_v6  ;;  %v1284_v11 = vpack.c.bf16 %v730_v9, %v729_v7 }
 0x12e   : > { %1308 = vst [vmem:[%s1466_s13 + $0xb8] sm:$0xff] %v1244_v10  }
 0x12f   : > { %1316 = vst [vmem:[%s1466_s13 + $0xf8] sm:$0xff] %v1284_v11  }
 0x130 PF: > { %s13_s12 = sadd.s32 1, %s1356_s12  }
 0x131   : > { %p10_p4 = scmp.ge.s32.totalorder %s13_s12, 6  }
 0x133   :  { %12 = sbr.rel (!%p10_p4) target bundleno = 1 (0x1), region = 62 }

// kernel: fwd.5
= control target key start
LH: loop header
LB: loop body
LE: loop exit
PB: predicated region body
PF: predicated region fallthrough
CT: control target
= control target key end

     0   :  { %s2094_s12 = smov 0   ;;  %s2497_s0 = inlined_call_operand.vmem [shape: bf16[416,640], index: 0, kind: input, shape index: {}]   ;;  %s2498_s1 = inlined_call_operand.vmem [shape: bf16[640,128], index: 1, kind: input, shape index: {}]   ;;  %s2499_s2 = inlined_call_operand.vmem [shape: f32[1,128], index: 2, kind: input, shape index: {}]   ;;  %s2500_s3 = inlined_call_operand.vmem [shape: bf16[416,128], index: 3, kind: output, shape index: {}]  }
   0x1 LB: > { %s1421_s13 = sadd.s32 4294967295, %s2072_s12   ;;  %p1425_p0 = scmp.ge.s32.totalorder %s2072_s12, 1  ;;  %s2072_s12 = sphi %s2094_s12, %s13_s12  }
   0x2   : > { %p139_p1 = scmp.lt.s32.totalorder %s2072_s12, 3 }
   0x4   : > { %p140_p2 = pnand %p1425_p0, %p139_p1 }
   0x5   : > { %s164_s20 = smul.u32 (!%p140_p2), 26, %s1421_s13 }
   0x6   : > { %143 = sbr.rel (%p140_p2) target bundleno = 446 (0x1be), region = 32 }
   0x7   : > { %p165_p3 = scmp.lt.s32.totalorder (!%p140_p2), %s164_s20, 51 }
   0xb   : > { %v1922_v0 = vld [vmem:[%s2498_s1 + $0x38] sm:$0xff]  ;;  %v1921_v1 = vld [vmem:[%s2498_s1 + $0x30] sm:$0xff]  ;;  %v1920_v2 = vld [vmem:[%s2498_s1 + $0x28] sm:$0xff]  ;;  %s2502_s20 = smov (!%p165_p3, %s164_s20), 51 }
   0xc   : > { %917 = vmatpush.bf16.msra.mxu0 %v1922_v0  ;;  %2032 = vmatpush.bf16.msra.mxu1 %v1922_v0  ;;  %v1919_v3 = vld [vmem:[%s2498_s1 + $0x20] sm:$0xff]  ;;  %v1918_v4 = vld [vmem:[%s2498_s1 + $0x18] sm:$0xff]  ;;  %v1917_v5 = vld [vmem:[%s2498_s1 + $0x10] sm:$0xff]  ;;  %s2056_s27 = smul.u32 20, %s2502_s20  ;;  %s1427_s28 = sshll.u32 %s2502_s20, 2 }
   0xd   : > { %2034 = vmatpush.bf16.msra.mxu3 %v1922_v0  ;;  %2033 = vmatpush.bf16.msra.mxu2 %v1922_v0  ;;  %v1916_v6 = vld [vmem:[%s2498_s1 + $0x8] sm:$0xff]  ;;  %v1915_v7 = vld [vmem:[%s2498_s1] sm:$0xff]  ;;  %v1930_v12 = vld [vmem:[%s2498_s1 + $0x78] sm:$0xff]  ;;  %s2429_s4 = scalar_lea.vmem %s2500_s3, %s1427_s28 }
   0xe   : > { %s2129_s5 = scalar_lea.vmem %s2497_s0, %s2056_s27  ;;  %v1954_v15 = vld [vmem:[%s2498_s1 + $0x138] sm:$0xff]  ;;  %v1929_v22 = vld [vmem:[%s2498_s1 + $0x70] sm:$0xff]  ;;  %v1928_v27 = vld [vmem:[%s2498_s1 + $0x68] sm:$0xff] }
   0xf   : > { %v1430_v8 = vld [vmem:[%s2129_s5] sm:$0xf]  ;;  %v1852_v9 = vld [vmem:[%s2129_s5 + $0x10] sm:$0xf0]  ;;  %v1630_v13 = vld [vmem:[%s2129_s5 + $0x190] sm:$0xf] }
  0x10   : > { %918 = vmatpush.bf16.msra.mxu0 %v1921_v1  ;;  %2035 = vmatpush.bf16.msra.mxu1 %v1921_v1  ;;  %v1510_v10 = vld [vmem:[%s2129_s5 + $0xa0] sm:$0xf]  ;;  %v1872_v11 = vld [vmem:[%s2129_s5 + $0xb0] sm:$0xf0]  ;;  %v1902_v14 = vld [vmem:[%s2129_s5 + $0x1a0] sm:$0xf0]  ;;  %v1431_v17 = vor.u32 %v1852_v9, %v1430_v8 }
  0x11   : > { %2037 = vmatpush.bf16.msra.mxu3 %v1921_v1  ;;  %2036 = vmatpush.bf16.msra.mxu2 %v1921_v1  ;;  %v1946_v16 = vld [vmem:[%s2498_s1 + $0xf8] sm:$0xff]  ;;  %v1511_v18 = vor.u32 %v1872_v11, %v1510_v10  ;;  %v1631_v19 = vor.u32 %v1902_v14, %v1630_v13  ;;  %v1590_v20 = vld [vmem:[%s2129_s5 + $0x140] sm:$0xf]  ;;  %v1892_v21 = vld [vmem:[%s2129_s5 + $0x150] sm:$0xf0] }
  0x12   : > { %v1938_v23 = vld [vmem:[%s2498_s1 + $0xb8] sm:$0xff]  ;;  %v1953_v24 = vld [vmem:[%s2498_s1 + $0x130] sm:$0xff]  ;;  %v1591_v26 = vor.u32 %v1892_v21, %v1590_v20  ;;  %v1952_v29 = vld [vmem:[%s2498_s1 + $0x128] sm:$0xff] }
  0x13   : > { %v1945_v25 = vld [vmem:[%s2498_s1 + $0xf0] sm:$0xff]  ;;  %v1944_v30 = vld [vmem:[%s2498_s1 + $0xe8] sm:$0xff]  ;;  %v1927_v31 = vld [vmem:[%s2498_s1 + $0x60] sm:$0xff] }
  0x14   : > { %919 = vmatpush.bf16.msra.mxu0 %v1920_v2  ;;  %2038 = vmatpush.bf16.msra.mxu1 %v1920_v2  ;;  %v1937_v28 = vld [vmem:[%s2498_s1 + $0xb0] sm:$0xff]  ;;  %v1936_v32 = vld [vmem:[%s2498_s1 + $0xa8] sm:$0xff]  ;;  %v1951_v33 = vld [vmem:[%s2498_s1 + $0x120] sm:$0xff] }
  0x15   : > { %2040 = vmatpush.bf16.msra.mxu3 %v1920_v2  ;;  %2039 = vmatpush.bf16.msra.mxu2 %v1920_v2  ;;  %v1943_v34 = vld [vmem:[%s2498_s1 + $0xe0] sm:$0xff]  ;;  %v1450_v35 = vld [vmem:[%s2129_s5 + $0x28] sm:$0xf]  ;;  %v1857_v36 = vld [vmem:[%s2129_s5 + $0x38] sm:$0xf0] }
  0x16   : > { %v1530_v37 = vld [vmem:[%s2129_s5 + $0xc8] sm:$0xf]  ;;  %v1877_v38 = vld [vmem:[%s2129_s5 + $0xd8] sm:$0xf0]  ;;  %v1650_v39 = vld [vmem:[%s2129_s5 + $0x1b8] sm:$0xf]  ;;  %v1451_v45 = vor.u32 %v1857_v36, %v1450_v35 }
  0x17   : > { %v1907_v40 = vld [vmem:[%s2129_s5 + $0x1c8] sm:$0xf0]  ;;  %v1926_v41 = vld [vmem:[%s2498_s1 + $0x58] sm:$0xff]  ;;  %v1935_v42 = vld [vmem:[%s2498_s1 + $0xa0] sm:$0xff]  ;;  %v1531_v46 = vor.u32 %v1877_v38, %v1530_v37 }
  0x18   : > { %920 = vmatpush.bf16.msra.mxu0 %v1919_v3  ;;  %2041 = vmatpush.bf16.msra.mxu1 %v1919_v3  ;;  %v1942_v43 = vld [vmem:[%s2498_s1 + $0xd8] sm:$0xff]  ;;  %v1651_v47 = vor.u32 %v1907_v40, %v1650_v39  ;;  %v1610_v48 = vld [vmem:[%s2129_s5 + $0x168] sm:$0xf]  ;;  %v1925_v51 = vld [vmem:[%s2498_s1 + $0x50] sm:$0xff] }
  0x19   : > { %2043 = vmatpush.bf16.msra.mxu3 %v1919_v3  ;;  %2042 = vmatpush.bf16.msra.mxu2 %v1919_v3  ;;  %v1950_v44 = vld [vmem:[%s2498_s1 + $0x118] sm:$0xff]  ;;  %v1941_v52 = vld [vmem:[%s2498_s1 + $0xd0] sm:$0xff]  ;;  %v1924_v56 = vld [vmem:[%s2498_s1 + $0x48] sm:$0xff] }
  0x1a   : > { %v1897_v49 = vld [vmem:[%s2129_s5 + $0x178] sm:$0xf0]  ;;  %v1949_v53 = vld [vmem:[%s2498_s1 + $0x110] sm:$0xff]  ;;  %v1940_v57 = vld [vmem:[%s2498_s1 + $0xc8] sm:$0xff] }
  0x1b   : > { %v1934_v50 = vld [vmem:[%s2498_s1 + $0x98] sm:$0xff]  ;;  %v1611_v54 = vor.u32 %v1897_v49, %v1610_v48  ;;  %v1933_v55 = vld [vmem:[%s2498_s1 + $0x90] sm:$0xff]  ;;  %v1948_v58 = vld [vmem:[%s2498_s1 + $0x108] sm:$0xff] }
  0x1c   : > { %921 = vmatpush.bf16.msra.mxu0 %v1918_v4  ;;  %2044 = vmatpush.bf16.msra.mxu1 %v1918_v4  ;;  %v1932_v59 = vld [vmem:[%s2498_s1 + $0x88] sm:$0xff]  ;;  %v1923_v60 = vld [vmem:[%s2498_s1 + $0x40] sm:$0xff]  ;;  %v1470_v63 = vld [vmem:[%s2129_s5 + $0x50] sm:$0xf] }
  0x1d   : > { %2046 = vmatpush.bf16.msra.mxu3 %v1918_v4  ;;  %2045 = vmatpush.bf16.msra.mxu2 %v1918_v4  ;;  %v1939_v61 = vld [vmem:[%s2498_s1 + $0xc0] sm:$0xff]  ;;  %v1550_v1 = vld [vmem:[%s2129_s5 + $0xf0] sm:$0xf]  ;;  %v1912_v4 = vld [vmem:[%s2129_s5 + $0x1f0] sm:$0xf0] }
  0x1e   : > { %v1947_v62 = vld [vmem:[%s2498_s1 + $0x100] sm:$0xff]  ;;  %v1438_v9 = vld [vmem:[%s2129_s5 + $0x8] sm:$0xf]  ;;  %v1853_v10 = vld [vmem:[%s2129_s5 + $0x18] sm:$0xf0] }
  0x1f   : > { %v1862_v0 = vld [vmem:[%s2129_s5 + $0x60] sm:$0xf0]  ;;  %v1670_v3 = vld [vmem:[%s2129_s5 + $0x1e0] sm:$0xf]  ;;  %v1439_v11 = vor.u32 %v1853_v10, %v1438_v9  ;;  %v1867_v13 = vld [vmem:[%s2129_s5 + $0x88] sm:$0xf0] }
  0x20   : > { %922 = vmatpush.bf16.msra.mxu0 %v1917_v5  ;;  %2047 = vmatpush.bf16.msra.mxu1 %v1917_v5  ;;  %v1882_v2 = vld [vmem:[%s2129_s5 + $0x100] sm:$0xf0]  ;;  %v1671_v8 = vor.u32 %v1912_v4, %v1670_v3  ;;  %v1570_v14 = vld [vmem:[%s2129_s5 + $0x118] sm:$0xf]  ;;  %v1458_v21 = vld [vmem:[%s2129_s5 + $0x30] sm:$0xf] }
  0x21   : > { %2049 = vmatpush.bf16.msra.mxu3 %v1917_v5  ;;  %2048 = vmatpush.bf16.msra.mxu2 %v1917_v5  ;;  %v1931_v5 = vld [vmem:[%s2498_s1 + $0x80] sm:$0xff]  ;;  %v1855_v36 = vld [vmem:[%s2129_s5 + $0x2c] sm:$0xf]  ;;  %v1466_v38 = vld [vmem:[%s2129_s5 + $0x38] sm:$0xf] }
  0x22   : > { %v1452_v37 = vld [vmem:[%s2129_s5 + $0x3c] sm:$0xf0]  ;;  %v1859_v39 = vld [vmem:[%s2129_s5 + $0x48] sm:$0xf0]  ;;  %v1861_v40 = vld [vmem:[%s2129_s5 + $0x5c] sm:$0xf] }
  0x23   : > { %v1860_v48 = vld [vmem:[%s2129_s5 + $0x54] sm:$0xf]  ;;  %v1472_v49 = vld [vmem:[%s2129_s5 + $0x64] sm:$0xf0]  ;;  %v1512_v9 = vld [vmem:[%s2129_s5 + $0xb4] sm:$0xf0] }
  0x24   : > { %923 = vmatpush.bf16.msra.mxu0 %v1916_v6  ;;  %2050 = vmatpush.bf16.msra.mxu1 %v1916_v6  ;;  %v1526_v10 = vld [vmem:[%s2129_s5 + $0xb0] sm:$0xf] }
  0x25   : > { %2052 = vmatpush.bf16.msra.mxu3 %v1916_v6  ;;  %2051 = vmatpush.bf16.msra.mxu2 %v1916_v6  ;;  %v1471_v6 = vor.u32 %v1862_v0, %v1470_v63  ;;  %v1869_v63 = vld [vmem:[%s2129_s5 + $0x98] sm:$0xf0]  ;;  %v1871_v0 = vld [vmem:[%s2129_s5 + $0xac] sm:$0xf] }
  0x28   : > { %924 = vmatpush.bf16.msra.mxu0 %v1915_v7  ;;  %2053 = vmatpush.bf16.msra.mxu1 %v1915_v7 }
  0x29   : > { %2055 = vmatpush.bf16.msra.mxu3 %v1915_v7  ;;  %2054 = vmatpush.bf16.msra.mxu2 %v1915_v7  ;;  %v1551_v7 = vor.u32 %v1882_v2, %v1550_v1  ;;  %v1520_v1 = vld [vmem:[%s2129_s5 + $0xbc] sm:$0xf0] }
  0x2a   : > { %v1523_v4 = vor.u32 %v1871_v0, %v1520_v1 }
  0x2b   : > { %925 = vmatmul.bf16.vlgmr.msra.gmra.mxu0 %v1431_v17  ;;  %945 = vmatmul.bf16.vlgmr.msra.gmra.mxu1 %v1511_v18  ;;  %v1440_v17 = vld [vmem:[%s2129_s5 + $0x1c] sm:$0xf0] }
  0x2c   : > { %991 = vmatpush.bf16.msrb.mxu1 %v1930_v12  ;;  %1213 = vmatpush.bf16.msrb.mxu0 %v1954_v15  ;;  %v1490_v12 = vld [vmem:[%s2129_s5 + $0x78] sm:$0xf]  ;;  %v1887_v15 = vld [vmem:[%s2129_s5 + $0x128] sm:$0xf0] }
  0x2d   : > { %1139 = vmatpush.bf16.msrb.mxu3 %v1946_v16  ;;  %1065 = vmatpush.bf16.msrb.mxu2 %v1938_v23  ;;  %v1851_v16 = vld [vmem:[%s2129_s5 + $0xc] sm:$0xf]  ;;  %v1491_v18 = vor.u32 %v1867_v13, %v1490_v12  ;;  %v2301_v12 = vld [vmem:[%s2499_s2] ss:$0 sm:$0xff]  ;;  %v1876_v13 = vld [vmem:[%s2129_s5 + $0xd4] sm:$0xf] }
  0x2e   : > { %975 = vmatmul.bf16.vlgmr.msra.gmra.mxu3 %v1631_v19  ;;  %965 = vmatmul.bf16.vlgmr.msra.gmra.mxu2 %v1591_v26  ;;  %v1571_v19 = vor.u32 %v1887_v15, %v1570_v14  ;;  %v1443_v20 = vor.u32 %v1851_v16, %v1440_v17  ;;  %v1446_v26 = vld [vmem:[%s2129_s5 + $0x10] sm:$0xf]  ;;  %v1540_v14 = vld [vmem:[%s2129_s5 + $0xe4] sm:$0xf0] }
  0x30   : > { %992 = vmatpush.bf16.msrb.mxu1 %v1929_v22  ;;  %1214 = vmatpush.bf16.msrb.mxu0 %v1953_v24  ;;  %v1858_v22 = vld [vmem:[%s2129_s5 + $0x40] sm:$0xf0] }
  0x31   : > { %1140 = vmatpush.bf16.msrb.mxu3 %v1945_v25  ;;  %1066 = vmatpush.bf16.msrb.mxu2 %v1937_v28  ;;  %v1459_v23 = vor.u32 %v1858_v22, %v1458_v21  ;;  %v1850_v24 = vld [vmem:[%s2129_s5 + $0x4] sm:$0xf]  ;;  %v1432_v25 = vld [vmem:[%s2129_s5 + $0x14] sm:$0xf0]  ;;  %v1856_v28 = vld [vmem:[%s2129_s5 + $0x34] sm:$0xf] }
  0x32   : > { %v1883_v21 = vld [vmem:[%s2129_s5 + $0x108] sm:$0xf0] }
  0x34   : > { %993 = vmatpush.bf16.msrb.mxu1 %v1928_v27  ;;  %1215 = vmatpush.bf16.msrb.mxu0 %v1952_v29  ;;  %v1854_v27 = vld [vmem:[%s2129_s5 + $0x20] sm:$0xf0]  ;;  %v1460_v29 = vld [vmem:[%s2129_s5 + $0x44] sm:$0xf0] }
  0x35   : > { %1141 = vmatpush.bf16.msrb.mxu3 %v1944_v30  ;;  %1067 = vmatpush.bf16.msrb.mxu2 %v1936_v32  ;;  %v1435_v30 = vor.u32 %v1850_v24, %v1432_v25  ;;  %v1463_v32 = vor.u32 %v1856_v28, %v1460_v29 }
  0x38   : > { %994 = vmatpush.bf16.msrb.mxu1 %v1927_v31  ;;  %1216 = vmatpush.bf16.msrb.mxu0 %v1951_v33  ;;  %v1447_v31 = vor.u32 %v1854_v27, %v1446_v26  ;;  %v1478_v33 = vld [vmem:[%s2129_s5 + $0x58] sm:$0xf] }
  0x39   : > { %1142 = vmatpush.bf16.msrb.mxu3 %v1943_v34  ;;  %1068 = vmatpush.bf16.msrb.mxu2 %v1935_v42  ;;  %v1863_v34 = vld [vmem:[%s2129_s5 + $0x68] sm:$0xf0]  ;;  %v1455_v42 = vor.u32 %v1855_v36, %v1452_v37  ;;  %v1560_v36 = vld [vmem:[%s2129_s5 + $0x10c] sm:$0xf0] }
  0x3a   : > { %v1479_v35 = vor.u32 %v1863_v34, %v1478_v33  ;;  %v1546_v33 = vld [vmem:[%s2129_s5 + $0xd8] sm:$0xf]  ;;  %v1879_v34 = vld [vmem:[%s2129_s5 + $0xe8] sm:$0xf0] }
  0x3b   : > { %930 = vmatmul.bf16.gmra.mxu0 %v1451_v45  ;;  %950 = vmatmul.bf16.gmra.mxu1 %v1531_v46  ;;  %v1498_v45 = vld [vmem:[%s2129_s5 + $0x80] sm:$0xf]  ;;  %v1868_v46 = vld [vmem:[%s2129_s5 + $0x90] sm:$0xf0] }
  0x3c   : > { %995 = vmatpush.bf16.msrb.mxu1 %v1926_v41  ;;  %1217 = vmatpush.bf16.msrb.mxu0 %v1950_v44  ;;  %v1480_v41 = vld [vmem:[%s2129_s5 + $0x6c] sm:$0xf0] }
  0x3d   : > { %1143 = vmatpush.bf16.msrb.mxu3 %v1942_v43  ;;  %1069 = vmatpush.bf16.msrb.mxu2 %v1934_v50  ;;  %v1467_v43 = vor.u32 %v1859_v39, %v1466_v38  ;;  %v1483_v44 = vor.u32 %v1861_v40, %v1480_v41  ;;  %v1486_v50 = vld [vmem:[%s2129_s5 + $0x60] sm:$0xf]  ;;  %v1547_v38 = vor.u32 %v1879_v34, %v1546_v33 }
  0x3e   : > { %980 = vmatmul.bf16.gmra.mxu3 %v1651_v47  ;;  %970 = vmatmul.bf16.gmra.mxu2 %v1611_v54  ;;  %v1499_v47 = vor.u32 %v1868_v46, %v1498_v45  ;;  %v1475_v54 = vor.u32 %v1860_v48, %v1472_v49  ;;  %v1888_v45 = vld [vmem:[%s2129_s5 + $0x130] sm:$0xf0] }
  0x40   : > { %996 = vmatpush.bf16.msrb.mxu1 %v1925_v51  ;;  %1218 = vmatpush.bf16.msrb.mxu0 %v1949_v53  ;;  %v1864_v51 = vld [vmem:[%s2129_s5 + $0x70] sm:$0xf0]  ;;  %v1500_v53 = vld [vmem:[%s2129_s5 + $0x94] sm:$0xf0] }
  0x41   : > { %1144 = vmatpush.bf16.msrb.mxu3 %v1941_v52  ;;  %1070 = vmatpush.bf16.msrb.mxu2 %v1933_v55  ;;  %v1866_v52 = vld [vmem:[%s2129_s5 + $0x84] sm:$0xf]  ;;  %v1487_v55 = vor.u32 %v1864_v51, %v1486_v50 }
  0x44   : > { %997 = vmatpush.bf16.msrb.mxu1 %v1924_v56  ;;  %1219 = vmatpush.bf16.msrb.mxu0 %v1948_v58  ;;  %v1503_v56 = vor.u32 %v1866_v52, %v1500_v53  ;;  %v1873_v58 = vld [vmem:[%s2129_s5 + $0xb8] sm:$0xf0] }
  0x45   : > { %1145 = vmatpush.bf16.msrb.mxu3 %v1940_v57  ;;  %1071 = vmatpush.bf16.msrb.mxu2 %v1932_v59  ;;  %v1518_v57 = vld [vmem:[%s2129_s5 + $0xa8] sm:$0xf] }
  0x46   : > { %v1519_v59 = vor.u32 %v1873_v58, %v1518_v57  ;;  %v1552_v58 = vld [vmem:[%s2129_s5 + $0x104] sm:$0xf0] }
  0x48   : > { %998 = vmatpush.bf16.msrb.mxu1 %v1923_v60  ;;  %1220 = vmatpush.bf16.msrb.mxu0 %v1947_v62  ;;  %v1865_v60 = vld [vmem:[%s2129_s5 + $0x7c] sm:$0xf]  ;;  %v1506_v62 = vld [vmem:[%s2129_s5 + $0x88] sm:$0xf] }
  0x49   : > { %1146 = vmatpush.bf16.msrb.mxu3 %v1939_v61  ;;  %1072 = vmatpush.bf16.msrb.mxu2 %v1931_v5  ;;  %v1492_v61 = vld [vmem:[%s2129_s5 + $0x8c] sm:$0xf0]  ;;  %v1507_v3 = vor.u32 %v1869_v63, %v1506_v62  ;;  %v1580_v62 = vld [vmem:[%s2129_s5 + $0x134] sm:$0xf0] }
  0x4a   : > { %v1495_v2 = vor.u32 %v1865_v60, %v1492_v61  ;;  %v1538_v5 = vld [vmem:[%s2129_s5 + $0xd0] sm:$0xf]  ;;  %v1884_v60 = vld [vmem:[%s2129_s5 + $0x110] sm:$0xf0]  ;;  %v1886_v61 = vld [vmem:[%s2129_s5 + $0x124] sm:$0xf] }
  0x4b   : > { %935 = vmatmul.bf16.gmra.mxu0 %v1471_v6  ;;  %955 = vmatmul.bf16.gmra.mxu1 %v1551_v7  ;;  %v1878_v6 = vld [vmem:[%s2129_s5 + $0xe0] sm:$0xf0] }
  0x4c   : > { %v1539_v7 = vor.u32 %v1878_v6, %v1538_v5  ;;  %v1583_v5 = vor.u32 %v1886_v61, %v1580_v62  ;;  %v1598_v6 = vld [vmem:[%s2129_s5 + $0x148] sm:$0xf] }
  0x4d   : > { %v1620_v61 = vld [vmem:[%s2129_s5 + $0x184] sm:$0xf0] }
  0x4e   : > { %985 = vmatmul.bf16.gmra.mxu3 %v1671_v8  ;;  %1073 = vmatmul.bf16.vlgmr.msrb.gmra.mxu2 %v1439_v11  ;;  %v1870_v8 = vld [vmem:[%s2129_s5 + $0xa4] sm:$0xf] }
  0x4f   : > { %v1874_v11 = vld [vmem:[%s2129_s5 + $0xc0] sm:$0xf0]  ;;  %v1515_v15 = vor.u32 %v1870_v8, %v1512_v9 }
  0x50   : > { %v1527_v16 = vor.u32 %v1874_v11, %v1526_v10 }
  0x5b   : > { %940 = vmatmul.bf16.gmra.mxu0 %v1491_v18  ;;  %960 = vmatmul.bf16.gmra.mxu1 %v1571_v19  ;;  %v1543_v19 = vor.u32 %v1876_v13, %v1540_v14 }
  0x5e   : > { %1147 = vmatmul.bf16.vlgmr.msrb.gmra.mxu3 %v1443_v20  ;;  %1078 = vmatmul.bf16.gmra.mxu2 %v1459_v23  ;;  %v1558_v20 = vld [vmem:[%s2129_s5 + $0xf8] sm:$0xf] }
  0x5f   : > { %v1559_v23 = vor.u32 %v1883_v21, %v1558_v20  ;;  %v1885_v20 = vld [vmem:[%s2129_s5 + $0x11c] sm:$0xf]  ;;  %v1572_v21 = vld [vmem:[%s2129_s5 + $0x12c] sm:$0xf0] }
  0x6b   : > { %999 = vmatmul.bf16.vlgmr.msrb.gmra.mxu1 %v1435_v30  ;;  %1221 = vmatmul.bf16.vlgmr.msrb.gmra.mxu0 %v1447_v31  ;;  %v1875_v30 = vld [vmem:[%s2129_s5 + $0xcc] sm:$0xf] }
  0x6e   : > { %1152 = vmatmul.bf16.gmra.mxu3 %v1463_v32  ;;  %1083 = vmatmul.bf16.gmra.mxu2 %v1479_v35  ;;  %v1532_v32 = vld [vmem:[%s2129_s5 + $0xdc] sm:$0xf0]  ;;  %v1881_v35 = vld [vmem:[%s2129_s5 + $0xfc] sm:$0xf] }
  0x6f   : > { %v1535_v37 = vor.u32 %v1875_v30, %v1532_v32  ;;  %v1575_v30 = vor.u32 %v1885_v20, %v1572_v21 }
  0x7b   : > { %1004 = vmatmul.bf16.gmra.mxu1 %v1455_v42  ;;  %1226 = vmatmul.bf16.gmra.mxu0 %v1467_v43  ;;  %v1563_v43 = vor.u32 %v1881_v35, %v1560_v36 }
  0x7e   : > { %1157 = vmatmul.bf16.gmra.mxu3 %v1483_v44  ;;  %1088 = vmatmul.bf16.gmra.mxu2 %v1499_v47  ;;  %v1578_v44 = vld [vmem:[%s2129_s5 + $0x120] sm:$0xf] }
  0x7f   : > { %v1579_v49 = vor.u32 %v1888_v45, %v1578_v44 }
  0x8b   : > { %1009 = vmatmul.bf16.gmra.mxu1 %v1475_v54  ;;  %1231 = vmatmul.bf16.gmra.mxu0 %v1487_v55 }
  0x8e   : > { %1162 = vmatmul.bf16.gmra.mxu3 %v1503_v56  ;;  %1093 = vmatmul.bf16.gmra.mxu2 %v1519_v59  ;;  %v1880_v56 = vld [vmem:[%s2129_s5 + $0xf4] sm:$0xf]  ;;  %v1566_v59 = vld [vmem:[%s2129_s5 + $0x100] sm:$0xf] }
  0x8f   : > { %v1555_v63 = vor.u32 %v1880_v56, %v1552_v58  ;;  %v1567_v0 = vor.u32 %v1884_v60, %v1566_v59  ;;  %v1592_v56 = vld [vmem:[%s2129_s5 + $0x154] sm:$0xf0]  ;;  %v1606_v58 = vld [vmem:[%s2129_s5 + $0x150] sm:$0xf]  ;;  %v1894_v59 = vld [vmem:[%s2129_s5 + $0x160] sm:$0xf0] }
  0x90   : > { %v1896_v60 = vld [vmem:[%s2129_s5 + $0x174] sm:$0xf] }
  0x9b   : > { %1014 = vmatmul.bf16.gmra.mxu1 %v1495_v2  ;;  %1236 = vmatmul.bf16.gmra.mxu0 %v1507_v3 }
  0x9e   : > { %1167 = vmatmul.bf16.gmra.mxu3 %v1523_v4  ;;  %1098 = vmatmul.bf16.gmra.mxu2 %v1539_v7  ;;  %v1893_v7 = vld [vmem:[%s2129_s5 + $0x158] sm:$0xf0] }
  0x9f   : > { %v1599_v11 = vor.u32 %v1893_v7, %v1598_v6  ;;  %v1623_v6 = vor.u32 %v1896_v60, %v1620_v61  ;;  %v1638_v7 = vld [vmem:[%s2129_s5 + $0x198] sm:$0xf]  ;;  %v1658_v61 = vld [vmem:[%s2129_s5 + $0x1c0] sm:$0xf] }
  0xa8   : > { %v2305_v17 = vpop.f32.mrf.mxu0  ;;  %v946_v18 = vpop.f32.mrf.mxu1 }
  0xa9   : > { %v2310_v22 = vadd.f32 %v2301_v12, %v946_v18  ;;  %v927_v62 = vadd.f32 %v2301_v12, %v2305_v17 }
  0xab   : > { %1019 = vmatmul.bf16.gmra.mxu1 %v1515_v15  ;;  %1241 = vmatmul.bf16.gmra.mxu0 %v1527_v16 }
  0xae   : > { %1172 = vmatmul.bf16.gmra.mxu3 %v1543_v19  ;;  %1103 = vmatmul.bf16.gmra.mxu2 %v1559_v23  ;;  %v1586_v23 = vld [vmem:[%s2129_s5 + $0x128] sm:$0xf] }
  0xb0   : > { %v2312_v25 = vpop.f32.mrf.mxu0  ;;  %v948_v26 = vpop.f32.mrf.mxu1 }
  0xb1   : > { %v976_v24 = vpop.f32.mrf.mxu3  ;;  %v2318_v28 = vadd.f32 %v2301_v12, %v948_v26  ;;  %v966_v29 = vpop.f32.mrf.mxu2  ;;  %v1891_v26 = vld [vmem:[%s2129_s5 + $0x14c] sm:$0xf]  ;;  %v929_v17 = vadd.f32 %v2301_v12, %v2312_v25  ;;  %v1901_v25 = vld [vmem:[%s2129_s5 + $0x19c] sm:$0xf] }
  0xb2   : > { %v2315_v27 = vadd.f32 %v2301_v12, %v976_v24  ;;  %v2322_v31 = vadd.f32 %v2301_v12, %v966_v29  ;;  %v1889_v24 = vld [vmem:[%s2129_s5 + $0x138] sm:$0xf0]  ;;  %v1600_v29 = vld [vmem:[%s2129_s5 + $0x15c] sm:$0xf0] }
  0xb3   : > { %v1587_v32 = vor.u32 %v1889_v24, %v1586_v23 }
  0xb8   : > { %v2329_v40 = vpop.f32.mrf.mxu0  ;;  %v951_v41 = vpop.f32.mrf.mxu1 }
  0xb9   : > { %v978_v39 = vpop.f32.mrf.mxu3  ;;  %v2337_v46 = vadd.f32 %v2301_v12, %v951_v41  ;;  %v968_v47 = vpop.f32.mrf.mxu2 }
  0xba   : > { %v2332_v42 = vadd.f32 %v2301_v12, %v978_v39  ;;  %v2340_v48 = vadd.f32 %v2301_v12, %v968_v47  ;;  %v1898_v39 = vld [vmem:[%s2129_s5 + $0x180] sm:$0xf0] }
  0xbb   : > { %1024 = vmatmul.bf16.gmra.mxu1 %v1535_v37  ;;  %1246 = vmatmul.bf16.gmra.mxu0 %v1547_v38  ;;  %v1603_v37 = vor.u32 %v1891_v26, %v1600_v29  ;;  %v1618_v38 = vld [vmem:[%s2129_s5 + $0x170] sm:$0xf] }
  0xbc   : > { %v1619_v44 = vor.u32 %v1898_v39, %v1618_v38 }
  0xbe   : > { %1177 = vmatmul.bf16.gmra.mxu3 %v1563_v43  ;;  %1108 = vmatmul.bf16.gmra.mxu2 %v1579_v49 }
  0xc0   : > { %v2342_v51 = vpop.f32.mrf.mxu0  ;;  %v953_v52 = vpop.f32.mrf.mxu1 }
  0xc1   : > { %v981_v50 = vpop.f32.mrf.mxu3  ;;  %v2348_v54 = vadd.f32 %v2301_v12, %v953_v52  ;;  %v971_v55 = vpop.f32.mrf.mxu2 }
  0xc2   : > { %v2345_v53 = vadd.f32 %v2301_v12, %v981_v50  ;;  %v2352_v57 = vadd.f32 %v2301_v12, %v971_v55  ;;  %v1890_v55 = vld [vmem:[%s2129_s5 + $0x144] sm:$0xf] }
  0xc8   : > { %v2359_v2 = vpop.f32.mrf.mxu0  ;;  %v956_v3 = vpop.f32.mrf.mxu1 }
  0xc9   : > { %v983_v1 = vpop.f32.mrf.mxu3  ;;  %v2367_v8 = vadd.f32 %v2301_v12, %v956_v3  ;;  %v973_v9 = vpop.f32.mrf.mxu2 }
  0xca   : > { %v2362_v4 = vadd.f32 %v2301_v12, %v983_v1  ;;  %v2370_v10 = vadd.f32 %v2301_v12, %v973_v9  ;;  %v1903_v9 = vld [vmem:[%s2129_s5 + $0x1a8] sm:$0xf0] }
  0xcb   : > { %1029 = vmatmul.bf16.gmra.mxu1 %v1555_v63  ;;  %1251 = vmatmul.bf16.gmra.mxu0 %v1567_v0  ;;  %v1595_v63 = vor.u32 %v1890_v55, %v1592_v56  ;;  %v1607_v0 = vor.u32 %v1894_v59, %v1606_v58 }
  0xce   : > { %1182 = vmatmul.bf16.gmra.mxu3 %v1583_v5  ;;  %1113 = vmatmul.bf16.gmra.mxu2 %v1599_v11 }
  0xd0   : > { %v2372_v14 = vpop.f32.mrf.mxu0  ;;  %v958_v15 = vpop.f32.mrf.mxu1 }
  0xd1   : > { %v986_v13 = vpop.f32.mrf.mxu3  ;;  %v2378_v18 = vadd.f32 %v2301_v12, %v958_v15  ;;  %v1074_v19 = vpop.f32.mrf.mxu2  ;;  %v1639_v15 = vor.u32 %v1903_v9, %v1638_v7  ;;  %v934_v7 = vadd.f32 %v2301_v12, %v2342_v51  ;;  %v1660_v51 = vld [vmem:[%s2129_s5 + $0x1d4] sm:$0xf0] }
  0xd2   : > { %v2375_v16 = vadd.f32 %v2301_v12, %v986_v13 }
  0xd8   : > { %v2386_v34 = vpop.f32.mrf.mxu0  ;;  %v961_v35 = vpop.f32.mrf.mxu1 }
  0xd9   : > { %v988_v33 = vpop.f32.mrf.mxu3  ;;  %v2394_v41 = vadd.f32 %v2301_v12, %v961_v35  ;;  %v1076_v43 = vpop.f32.mrf.mxu2  ;;  %v1612_v35 = vld [vmem:[%s2129_s5 + $0x17c] sm:$0xf0] }
  0xda   : > { %v2389_v36 = vadd.f32 %v2301_v12, %v988_v33  ;;  %v1895_v33 = vld [vmem:[%s2129_s5 + $0x16c] sm:$0xf] }
  0xdb   : > { %1034 = vmatmul.bf16.gmra.mxu1 %v1575_v30  ;;  %1256 = vmatmul.bf16.gmra.mxu0 %v1587_v32 }
  0xde   : > { %1187 = vmatmul.bf16.gmra.mxu3 %v1603_v37  ;;  %1118 = vmatmul.bf16.gmra.mxu2 %v1619_v44  ;;  %v1626_v37 = vld [vmem:[%s2129_s5 + $0x178] sm:$0xf]  ;;  %v1640_v44 = vld [vmem:[%s2129_s5 + $0x1ac] sm:$0xf0] }
  0xdf   : > { %v1643_v60 = vor.u32 %v1901_v25, %v1640_v44 }
  0xe0   : > { %v2396_v47 = vpop.f32.mrf.mxu0  ;;  %v963_v49 = vpop.f32.mrf.mxu1 }
  0xe1   : > { %v1148_v45 = vpop.f32.mrf.mxu3  ;;  %v2399_v50 = vadd.f32 %v2301_v12, %v963_v49  ;;  %v1079_v52 = vpop.f32.mrf.mxu2  ;;  %v932_v49 = vadd.f32 %v2301_v12, %v2329_v40 }
  0xe8   : > { %v1000_v3 = vpop.f32.mrf.mxu1  ;;  %v1222_v5 = vpop.f32.mrf.mxu0 }
  0xe9   : > { %v1150_v1 = vpop.f32.mrf.mxu3  ;;  %v1001_v11 = vadd.f32 %v1000_v3, %v927_v62  ;;  %v1081_v13 = vpop.f32.mrf.mxu2  ;;  %v1908_v62 = vld [vmem:[%s2129_s5 + $0x1d0] sm:$0xf0] }
  0xeb   : > { %1039 = vmatmul.bf16.gmra.mxu1 %v1595_v63  ;;  %1261 = vmatmul.bf16.gmra.mxu0 %v1607_v0  ;;  %v1075_v20 = vadd.f32 %v1074_v19, %v1001_v11  ;;  %v1899_v19 = vld [vmem:[%s2129_s5 + $0x188] sm:$0xf0] }
  0xec   : > { %v1627_v56 = vor.u32 %v1899_v19, %v1626_v37  ;;  %v1906_v37 = vld [vmem:[%s2129_s5 + $0x1c4] sm:$0xf]  ;;  %v937_v19 = vadd.f32 %v2301_v12, %v2359_v2 }
  0xed   : > { %v1149_v26 = vadd.f32 %v1148_v45, %v1075_v20  ;;  %v1615_v45 = vor.u32 %v1895_v33, %v1612_v35 }
  0xee   : > { %1192 = vmatmul.bf16.gmra.mxu3 %v1623_v6  ;;  %1123 = vmatmul.bf16.gmra.mxu2 %v1639_v15 }
  0xef   : > { %v1223_v38 = vadd.f32 %v1222_v5, %v1149_v26  ;;  %v1659_v5 = vor.u32 %v1908_v62, %v1658_v61  ;;  %v1900_v26 = vld [vmem:[%s2129_s5 + $0x194] sm:$0xf]  ;;  %v939_v62 = vadd.f32 %v2301_v12, %v2372_v14  ;;  %v942_v14 = vadd.f32 %v2301_v12, %v2386_v34 }
  0xf0   : > { %v1002_v23 = vpop.f32.mrf.mxu1  ;;  %v1224_v24 = vpop.f32.mrf.mxu0 }
  0xf1   : > { %v1153_v21 = vpop.f32.mrf.mxu3  ;;  %v1003_v29 = vadd.f32 %v1002_v23, %v929_v17  ;;  %v2413_v30 = vpop.f32.mrf.mxu2  ;;  %v1287_v63 = vmax.f32 %v1223_v38, 0.0 }
  0xf3   : > { %v1077_v32 = vadd.f32 %v1076_v43, %v1003_v29  ;;  %v1632_v29 = vld [vmem:[%s2129_s5 + $0x1a4] sm:$0xf0] }
  0xf5   : > { %v1151_v39 = vadd.f32 %v1150_v1, %v1077_v32  ;;  %v1646_v32 = vld [vmem:[%s2129_s5 + $0x1a0] sm:$0xf] }
  0xf7   : > { %v1225_v55 = vadd.f32 %v1224_v24, %v1151_v39  ;;  %v1635_v39 = vor.u32 %v1900_v26, %v1632_v29  ;;  %v1680_v29 = vld [vmem:[%s2129_s5 + $0x1fc] sm:$0xf0] }
  0xf8   : > { %v1005_v59 = vpop.f32.mrf.mxu1  ;;  %v1227_v43 = vpop.f32.mrf.mxu0 }
  0xf9   : > { %v1155_v58 = vpop.f32.mrf.mxu3  ;;  %v1288_v0 = vmax.f32 %v1225_v55, 0.0  ;;  %v1006_v3 = vadd.f32 %v1005_v59, %v932_v49  ;;  %v1086_v40 = vpop.f32.mrf.mxu2  ;;  %v1663_v49 = vor.u32 %v1906_v37, %v1660_v51  ;;  %v1678_v55 = vld [vmem:[%s2129_s5 + $0x1e8] sm:$0xf] }
  0xfb   : > { %v1958_v1 = vpack.c.bf16 %v1288_v0, %v1287_v63  ;;  %1044 = vmatmul.bf16.gmra.mxu1 %v1615_v45  ;;  %1266 = vmatmul.bf16.gmra.mxu0 %v1627_v56  ;;  %v1080_v6 = vadd.f32 %v1079_v52, %v1006_v3  ;;  %v1904_v52 = vld [vmem:[%s2129_s5 + $0x1b0] sm:$0xf0]  ;;  %v1913_v45 = vld [vmem:[%s2129_s5 + $0x1f8] sm:$0xf0] }
  0xfc   : > { %v1679_v2 = vor.u32 %v1913_v45, %v1678_v55 }
  0xfd   : > { %1959 = vst [vmem:[%s2429_s4] sm:$0xff] %v1958_v1   ;;  %v1154_v20 = vadd.f32 %v1153_v21, %v1080_v6  ;;  %v1647_v21 = vor.u32 %v1904_v52, %v1646_v32 }
  0xfe   : > { %1197 = vmatmul.bf16.gmra.mxu3 %v1643_v60  ;;  %1128 = vmatmul.bf16.gmra.mxu2 %v1659_v5 }
  0xff   : > { %v1228_v33 = vadd.f32 %v1227_v43, %v1154_v20  ;;  %v1666_v20 = vld [vmem:[%s2129_s5 + $0x1c8] sm:$0xf] }
 0x100   : > { %v1007_v11 = vpop.f32.mrf.mxu1  ;;  %v1229_v15 = vpop.f32.mrf.mxu0 }
 0x101   : > { %v1158_v9 = vpop.f32.mrf.mxu3  ;;  %v1008_v17 = vadd.f32 %v1007_v11, %v934_v7  ;;  %v2434_v23 = vpop.f32.mrf.mxu2  ;;  %v1289_v56 = vmax.f32 %v1228_v33, 0.0  ;;  %v1905_v11 = vld [vmem:[%s2129_s5 + $0x1bc] sm:$0xf] }
 0x103   : > { %v1082_v24 = vadd.f32 %v1081_v13, %v1008_v17  ;;  %v1909_v17 = vld [vmem:[%s2129_s5 + $0x1d8] sm:$0xf0] }
 0x104   : > { %v1667_v33 = vor.u32 %v1909_v17, %v1666_v20 }
 0x105   : > { %v1156_v35 = vadd.f32 %v1155_v58, %v1082_v24 }
 0x107   : > { %v1230_v38 = vadd.f32 %v1229_v15, %v1156_v35  ;;  %v1652_v15 = vld [vmem:[%s2129_s5 + $0x1cc] sm:$0xf0] }
 0x108   : > { %v1010_v44 = vpop.f32.mrf.mxu1  ;;  %v1232_v13 = vpop.f32.mrf.mxu0  ;;  %v1655_v52 = vor.u32 %v1905_v11, %v1652_v15 }
 0x109   : > { %v1160_v25 = vpop.f32.mrf.mxu3  ;;  %v1290_v59 = vmax.f32 %v1230_v38, 0.0  ;;  %v1011_v60 = vadd.f32 %v1010_v44, %v937_v19  ;;  %v1091_v43 = vpop.f32.mrf.mxu2 }
 0x10b   : > { %v1963_v58 = vpack.c.bf16 %v1290_v59, %v1289_v56  ;;  %1049 = vmatmul.bf16.gmra.mxu1 %v1635_v39  ;;  %1271 = vmatmul.bf16.gmra.mxu0 %v1647_v21  ;;  %v1085_v61 = vadd.f32 %v2413_v30, %v1011_v60  ;;  %v1911_v30 = vld [vmem:[%s2129_s5 + $0x1ec] sm:$0xf]  ;;  %v1910_v60 = vld [vmem:[%s2129_s5 + $0x1e4] sm:$0xf] }
 0x10c   : > { %v1683_v51 = vor.u32 %v1911_v30, %v1680_v29 }
 0x10d   : > { %2020 = vst [vmem:[%s2429_s4 + $0x8] sm:$0xff] %v1963_v58   ;;  %v1159_v1 = vadd.f32 %v1158_v9, %v1085_v61  ;;  %v1672_v58 = vld [vmem:[%s2129_s5 + $0x1f4] sm:$0xf0]  ;;  %v1914_v61 = vld [vmem:[%s2129_s5 + $0x200] sm:$0xf0] }
 0x10e   : > { %1202 = vmatmul.bf16.gmra.mxu3 %v1663_v49  ;;  %1133 = vmatmul.bf16.gmra.mxu2 %v1679_v2  ;;  %v1686_v2 = vld [vmem:[%s2129_s5 + $0x1f0] sm:$0xf] }
 0x10f   : > { %v1233_v24 = vadd.f32 %v1232_v13, %v1159_v1  ;;  %v1675_v1 = vor.u32 %v1910_v60, %v1672_v58 }
 0x110   : > { %v1012_v0 = vpop.f32.mrf.mxu1  ;;  %v1234_v3 = vpop.f32.mrf.mxu0 }
 0x111   : > { %v1163_v63 = vpop.f32.mrf.mxu3  ;;  %v1013_v5 = vadd.f32 %v1012_v0, %v939_v62  ;;  %v1094_v6 = vpop.f32.mrf.mxu2 }
 0x113   : > { %v1087_v7 = vadd.f32 %v1086_v40, %v1013_v5  ;;  %v1291_v40 = vmax.f32 %v1233_v24, 0.0 }
 0x115   : > { %v1161_v26 = vadd.f32 %v1160_v25, %v1087_v7  ;;  %v944_v25 = vadd.f32 %v2301_v12, %v2396_v47 }
 0x117   : > { %v1235_v32 = vadd.f32 %v1234_v3, %v1161_v26 }
 0x118   : > { %v1015_v9 = vpop.f32.mrf.mxu1  ;;  %v1237_v37 = vpop.f32.mrf.mxu0 }
 0x119   : > { %v1165_v35 = vpop.f32.mrf.mxu3  ;;  %v1292_v19 = vmax.f32 %v1235_v32, 0.0  ;;  %v1016_v38 = vadd.f32 %v1015_v9, %v942_v14  ;;  %v1096_v39 = vpop.f32.mrf.mxu2 }
 0x11b   : > { %v1968_v21 = vpack.c.bf16 %v1292_v19, %v1291_v40  ;;  %1054 = vmatmul.bf16.gmra.mxu1 %v1655_v52  ;;  %1276 = vmatmul.bf16.gmra.mxu0 %v1667_v33  ;;  %v1090_v34 = vadd.f32 %v2434_v23, %v1016_v38  ;;  %v1687_v23 = vor.u32 %v1914_v61, %v1686_v2 }
 0x11d   : > { %2021 = vst [vmem:[%s2429_s4 + $0x10] sm:$0xff] %v1968_v21   ;;  %v1164_v55 = vadd.f32 %v1163_v63, %v1090_v34 }
 0x11e   : > { %1207 = vmatmul.bf16.gmra.mxu3 %v1683_v51 }
 0x11f   : > { %v1238_v62 = vadd.f32 %v1237_v37, %v1164_v55 }
 0x120   : > { %v1017_v13 = vpop.f32.mrf.mxu1  ;;  %v1239_v49 = vpop.f32.mrf.mxu0 }
 0x121   : > { %v1168_v44 = vpop.f32.mrf.mxu3  ;;  %v1018_v45 = vadd.f32 %v1017_v13, %v944_v25  ;;  %v1099_v56 = vpop.f32.mrf.mxu2  ;;  %v1293_v47 = vmax.f32 %v1238_v62, 0.0 }
 0x123   : > { %v1092_v59 = vadd.f32 %v1091_v43, %v1018_v45 }
 0x125   : > { %v1166_v0 = vadd.f32 %v1165_v35, %v1092_v59 }
 0x127   : > { %v1240_v3 = vadd.f32 %v1239_v49, %v1166_v0 }
 0x128   : > { %v1020_v7 = vpop.f32.mrf.mxu1  ;;  %v1242_v12 = vpop.f32.mrf.mxu0 }
 0x129   : > { %v1170_v5 = vpop.f32.mrf.mxu3  ;;  %v1294_v11 = vmax.f32 %v1240_v3, 0.0  ;;  %v1021_v63 = vadd.f32 %v1020_v7, %v2310_v22  ;;  %v1101_v15 = vpop.f32.mrf.mxu2 }
 0x12b   : > { %v1973_v20 = vpack.c.bf16 %v1294_v11, %v1293_v47  ;;  %1059 = vmatmul.bf16.gmra.mxu1 %v1675_v1  ;;  %1281 = vmatmul.bf16.gmra.mxu0 %v1687_v23  ;;  %v1095_v43 = vadd.f32 %v1094_v6, %v1021_v63 }
 0x12d   : > { %2022 = vst [vmem:[%s2429_s4 + $0x18] sm:$0xff] %v1973_v20   ;;  %v1169_v30 = vadd.f32 %v1168_v44, %v1095_v43 }
 0x12f   : > { %v1243_v52 = vadd.f32 %v1242_v12, %v1169_v30 }
 0x130   : > { %v1022_v24 = vpop.f32.mrf.mxu1  ;;  %v1244_v26 = vpop.f32.mrf.mxu0 }
 0x131   : > { %v1173_v17 = vpop.f32.mrf.mxu3  ;;  %v1023_v29 = vadd.f32 %v1022_v24, %v2318_v28  ;;  %v1104_v14 = vpop.f32.mrf.mxu2  ;;  %v1295_v51 = vmax.f32 %v1243_v52, 0.0 }
 0x133   : > { %v1097_v32 = vadd.f32 %v1096_v39, %v1023_v29 }
 0x135   : > { %v1171_v33 = vadd.f32 %v1170_v5, %v1097_v32 }
 0x137   : > { %v1245_v35 = vadd.f32 %v1244_v26, %v1171_v33 }
 0x138   : > { %v1025_v22 = vpop.f32.mrf.mxu1  ;;  %v1247_v37 = vpop.f32.mrf.mxu0 }
 0x139   : > { %v1175_v9 = vpop.f32.mrf.mxu3  ;;  %v1296_v40 = vmax.f32 %v1245_v35, 0.0  ;;  %v1026_v19 = vadd.f32 %v1025_v22, %v2337_v46  ;;  %v1106_v6 = vpop.f32.mrf.mxu2 }
 0x13b   : > { %v1978_v38 = vpack.c.bf16 %v1296_v40, %v1295_v51  ;;  %v1100_v21 = vadd.f32 %v1099_v56, %v1026_v19 }
 0x13d   : > { %2023 = vst [vmem:[%s2429_s4 + $0x20] sm:$0xff] %v1978_v38   ;;  %v1174_v44 = vadd.f32 %v1173_v17, %v1100_v21 }
 0x13f   : > { %v1248_v55 = vadd.f32 %v1247_v37, %v1174_v44 }
 0x140   : > { %v1027_v25 = vpop.f32.mrf.mxu1  ;;  %v1249_v28 = vpop.f32.mrf.mxu0 }
 0x141   : > { %v1178_v34 = vpop.f32.mrf.mxu3  ;;  %v1028_v39 = vadd.f32 %v1027_v25, %v2348_v54  ;;  %v1109_v49 = vpop.f32.mrf.mxu2  ;;  %v1297_v46 = vmax.f32 %v1248_v55, 0.0 }
 0x143   : > { %v1102_v13 = vadd.f32 %v1101_v15, %v1028_v39 }
 0x145   : > { %v1176_v45 = vadd.f32 %v1175_v9, %v1102_v13 }
 0x147   : > { %v1250_v59 = vadd.f32 %v1249_v28, %v1176_v45 }
 0x148   : > { %v1030_v58 = vpop.f32.mrf.mxu1  ;;  %v1252_v2 = vpop.f32.mrf.mxu0 }
 0x149   : > { %v1180_v60 = vpop.f32.mrf.mxu3  ;;  %v1298_v61 = vmax.f32 %v1250_v59, 0.0  ;;  %v1031_v62 = vadd.f32 %v1030_v58, %v2367_v8  ;;  %v1111_v3 = vpop.f32.mrf.mxu2 }
 0x14b   : > { %v1983_v56 = vpack.c.bf16 %v1298_v61, %v1297_v46  ;;  %v1105_v0 = vadd.f32 %v1104_v14, %v1031_v62 }
 0x14d   : > { %2024 = vst [vmem:[%s2429_s4 + $0x28] sm:$0xff] %v1983_v56   ;;  %v1179_v5 = vadd.f32 %v1178_v34, %v1105_v0 }
 0x14f   : > { %v1253_v47 = vadd.f32 %v1252_v2, %v1179_v5 }
 0x150   : > { %v1032_v23 = vpop.f32.mrf.mxu1  ;;  %v1254_v54 = vpop.f32.mrf.mxu0 }
 0x151   : > { %v1183_v1 = vpop.f32.mrf.mxu3  ;;  %v1033_v7 = vadd.f32 %v1032_v23, %v2378_v18  ;;  %v1114_v20 = vpop.f32.mrf.mxu2  ;;  %v1299_v8 = vmax.f32 %v1253_v47, 0.0 }
 0x153   : > { %v1107_v12 = vadd.f32 %v1106_v6, %v1033_v7 }
 0x155   : > { %v1181_v11 = vadd.f32 %v1180_v60, %v1107_v12 }
 0x157   : > { %v1255_v63 = vadd.f32 %v1254_v54, %v1181_v11 }
 0x158   : > { %v1035_v43 = vpop.f32.mrf.mxu1  ;;  %v1257_v17 = vpop.f32.mrf.mxu0 }
 0x159   : > { %v1185_v15 = vpop.f32.mrf.mxu3  ;;  %v1300_v24 = vmax.f32 %v1255_v63, 0.0  ;;  %v1036_v26 = vadd.f32 %v1035_v43, %v2394_v41  ;;  %v1116_v35 = vpop.f32.mrf.mxu2 }
 0x15b   : > { %v1988_v30 = vpack.c.bf16 %v1300_v24, %v1299_v8  ;;  %v1110_v29 = vadd.f32 %v1109_v49, %v1036_v26 }
 0x15d   : > { %2025 = vst [vmem:[%s2429_s4 + $0x30] sm:$0xff] %v1988_v30   ;;  %v1184_v18 = vadd.f32 %v1183_v1, %v1110_v29 }
 0x15f   : > { %v1258_v22 = vadd.f32 %v1257_v17, %v1184_v18 }
 0x160   : > { %v1037_v32 = vpop.f32.mrf.mxu1  ;;  %v1259_v52 = vpop.f32.mrf.mxu0 }
 0x161   : > { %v1188_v14 = vpop.f32.mrf.mxu3  ;;  %v1038_v33 = vadd.f32 %v1037_v32, %v2399_v50  ;;  %v1301_v38 = vmax.f32 %v1258_v22, 0.0  ;;  %v1119_v25 = vpop.f32.mrf.mxu2 }
 0x163   : > { %v1112_v9 = vadd.f32 %v1111_v3, %v1038_v33 }
 0x165   : > { %v1186_v37 = vadd.f32 %v1185_v15, %v1112_v9 }
 0x167   : > { %v1260_v51 = vadd.f32 %v1259_v52, %v1186_v37 }
 0x168   : > { %v1040_v19 = vpop.f32.mrf.mxu1  ;;  %v1262_v6 = vpop.f32.mrf.mxu0 }
 0x169   : > { %v1190_v40 = vpop.f32.mrf.mxu3  ;;  %v1302_v41 = vmax.f32 %v1260_v51, 0.0  ;;  %v1041_v21 = vadd.f32 %v1040_v19, %v2322_v31  ;;  %v1121_v60 = vpop.f32.mrf.mxu2 }
 0x16b   : > { %v1993_v34 = vpack.c.bf16 %v1302_v41, %v1301_v38  ;;  %v1115_v28 = vadd.f32 %v1114_v20, %v1041_v21 }
 0x16d   : > { %2026 = vst [vmem:[%s2429_s4 + $0x38] sm:$0xff] %v1993_v34   ;;  %v1189_v13 = vadd.f32 %v1188_v14, %v1115_v28 }
 0x16f   : > { %v1263_v45 = vadd.f32 %v1262_v6, %v1189_v13 }
 0x170   : > { %v1042_v39 = vpop.f32.mrf.mxu1  ;;  %v1264_v50 = vpop.f32.mrf.mxu0 }
 0x171   : > { %v1193_v44 = vpop.f32.mrf.mxu3  ;;  %v1043_v49 = vadd.f32 %v1042_v39, %v2340_v48  ;;  %v1303_v31 = vmax.f32 %v1263_v45, 0.0  ;;  %v1124_v1 = vpop.f32.mrf.mxu2 }
 0x173   : > { %v1117_v55 = vadd.f32 %v1116_v35, %v1043_v49 }
 0x175   : > { %v1191_v59 = vadd.f32 %v1190_v40, %v1117_v55 }
 0x177   : > { %v1265_v58 = vadd.f32 %v1264_v50, %v1191_v59 }
 0x178   : > { %v1045_v46 = vpop.f32.mrf.mxu1  ;;  %v1267_v61 = vpop.f32.mrf.mxu0 }
 0x179   : > { %v1195_v2 = vpop.f32.mrf.mxu3  ;;  %v1304_v62 = vmax.f32 %v1265_v58, 0.0  ;;  %v1046_v56 = vadd.f32 %v1045_v46, %v2352_v57  ;;  %v1126_v8 = vpop.f32.mrf.mxu2 }
 0x17b   : > { %v1998_v0 = vpack.c.bf16 %v1304_v62, %v1303_v31  ;;  %v1120_v3 = vadd.f32 %v1119_v25, %v1046_v56 }
 0x17d   : > { %2027 = vst [vmem:[%s2429_s4 + $0x40] sm:$0xff] %v1998_v0   ;;  %v1194_v48 = vadd.f32 %v1193_v44, %v1120_v3 }
 0x17f   : > { %v1268_v47 = vadd.f32 %v1267_v61, %v1194_v48 }
 0x180   : > { %v1047_v23 = vpop.f32.mrf.mxu1  ;;  %v1269_v54 = vpop.f32.mrf.mxu0 }
 0x181   : > { %v1048_v5 = vadd.f32 %v1047_v23, %v2370_v10  ;;  %v1198_v7 = vpop.f32.mrf.mxu3  ;;  %v1305_v43 = vmax.f32 %v1268_v47, 0.0  ;;  %v1129_v18 = vpop.f32.mrf.mxu2 }
 0x183   : > { %v1122_v12 = vadd.f32 %v1121_v60, %v1048_v5 }
 0x185   : > { %v1196_v11 = vadd.f32 %v1195_v2, %v1122_v12 }
 0x187   : > { %v1270_v63 = vadd.f32 %v1269_v54, %v1196_v11 }
 0x188   : > { %v1050_v15 = vpop.f32.mrf.mxu1  ;;  %v1272_v20 = vpop.f32.mrf.mxu0 }
 0x189   : > { %v1306_v17 = vmax.f32 %v1270_v63, 0.0  ;;  %v1051_v57 = vadd.f32 %v1050_v15, %v2315_v27  ;;  %v1200_v26 = vpop.f32.mrf.mxu3  ;;  %v1131_v41 = vpop.f32.mrf.mxu2 }
 0x18b   : > { %v2003_v24 = vpack.c.bf16 %v1306_v17, %v1305_v43  ;;  %v1125_v30 = vadd.f32 %v1124_v1, %v1051_v57 }
 0x18d   : > { %2028 = vst [vmem:[%s2429_s4 + $0x48] sm:$0xff] %v2003_v24   ;;  %v1199_v10 = vadd.f32 %v1198_v7, %v1125_v30 }
 0x18f   : > { %v1273_v33 = vadd.f32 %v1272_v20, %v1199_v10 }
 0x190   : > { %v1052_v29 = vpop.f32.mrf.mxu1  ;;  %v1274_v14 = vpop.f32.mrf.mxu0 }
 0x191   : > { %v1053_v32 = vadd.f32 %v1052_v29, %v2332_v42  ;;  %v1203_v9 = vpop.f32.mrf.mxu3  ;;  %v1307_v27 = vmax.f32 %v1273_v33, 0.0  ;;  %v1134_v49 = vpop.f32.mrf.mxu2 }
 0x193   : > { %v1127_v52 = vadd.f32 %v1126_v8, %v1053_v32 }
 0x195   : > { %v1201_v35 = vadd.f32 %v1200_v26, %v1127_v52 }
 0x197   : > { %v1275_v22 = vadd.f32 %v1274_v14, %v1201_v35 }
 0x198   : > { %v1055_v37 = vpop.f32.mrf.mxu1  ;;  %v1277_v51 = vpop.f32.mrf.mxu0 }
 0x199   : > { %v1308_v40 = vmax.f32 %v1275_v22, 0.0  ;;  %v1056_v19 = vadd.f32 %v1055_v37, %v2345_v53  ;;  %v1205_v21 = vpop.f32.mrf.mxu3  ;;  %v1136_v62 = vpop.f32.mrf.mxu2 }
 0x19b   : > { %v2008_v6 = vpack.c.bf16 %v1308_v40, %v1307_v27  ;;  %v1130_v38 = vadd.f32 %v1129_v18, %v1056_v19 }
 0x19d   : > { %2029 = vst [vmem:[%s2429_s4 + $0x50] sm:$0xff] %v2008_v6   ;;  %v1204_v42 = vadd.f32 %v1203_v9, %v1130_v38 }
 0x19f   : > { %v1278_v39 = vadd.f32 %v1277_v51, %v1204_v42 }
 0x1a0   : > { %v1057_v34 = vpop.f32.mrf.mxu1  ;;  %v1279_v28 = vpop.f32.mrf.mxu0 }
 0x1a1   : > { %v1058_v25 = vadd.f32 %v1057_v34, %v2362_v4  ;;  %v1309_v45 = vmax.f32 %v1278_v39, 0.0  ;;  %v1208_v60 = vpop.f32.mrf.mxu3 }
 0x1a3   : > { %v1132_v44 = vadd.f32 %v1131_v41, %v1058_v25 }
 0x1a5   : > { %v1206_v50 = vadd.f32 %v1205_v21, %v1132_v44 }
 0x1a7   : > { %v1280_v13 = vadd.f32 %v1279_v28, %v1206_v50 }
 0x1a8   : > { %v1060_v55 = vpop.f32.mrf.mxu1  ;;  %v1282_v2 = vpop.f32.mrf.mxu0 }
 0x1a9   : > { %v1310_v59 = vmax.f32 %v1280_v13, 0.0  ;;  %v1061_v53 = vadd.f32 %v1060_v55, %v2375_v16  ;;  %v1210_v0 = vpop.f32.mrf.mxu3 }
 0x1ab   : > { %v2013_v58 = vpack.c.bf16 %v1310_v59, %v1309_v45  ;;  %v1135_v46 = vadd.f32 %v1134_v49, %v1061_v53 }
 0x1ad   : > { %2030 = vst [vmem:[%s2429_s4 + $0x58] sm:$0xff] %v2013_v58   ;;  %v1209_v31 = vadd.f32 %v1208_v60, %v1135_v46 }
 0x1af   : > { %v1283_v3 = vadd.f32 %v1282_v2, %v1209_v31 }
 0x1b0   : > { %v1062_v61 = vpop.f32.mrf.mxu1  ;;  %v1284_v23 = vpop.f32.mrf.mxu0 }
 0x1b1   : > { %v1063_v4 = vadd.f32 %v1062_v61, %v2389_v36  ;;  %v1311_v48 = vmax.f32 %v1283_v3, 0.0 }
 0x1b3   : > { %v1137_v56 = vadd.f32 %v1136_v62, %v1063_v4 }
 0x1b5   : > { %v1211_v1 = vadd.f32 %v1210_v0, %v1137_v56 }
 0x1b7   : > { %v1285_v54 = vadd.f32 %v1284_v23, %v1211_v1 }
 0x1b9   : > { %v1312_v5 = vmax.f32 %v1285_v54, 0.0 }
 0x1bb   : > { %v2018_v16 = vpack.c.bf16 %v1312_v5, %v1311_v48 }
 0x1bd   : > { %2031 = vst [vmem:[%s2429_s4 + $0x60] sm:$0xff] %v2018_v16  }
 0x1be PF: > { %s13_s12 = sadd.s32 1, %s2072_s12  }
 0x1bf   : > { %p10_p4 = scmp.ge.s32.totalorder %s13_s12, 4  }
 0x1c1   :  { %12 = sbr.rel (!%p10_p4) target bundleno = 1 (0x1), region = 62 }

// kernel: fwd.6
= control target key start
LH: loop header
LB: loop body
LE: loop exit
PB: predicated region body
PF: predicated region fallthrough
CT: control target
= control target key end

     0   :  { %s1942_s1 = inlined_call_operand.vmem [shape: bf16[1024,128], index: 1, kind: input, shape index: {}]   ;;  %s1943_s2 = inlined_call_operand.vmem [shape: f32[1,128], index: 2, kind: input, shape index: {}]   ;;  %s1944_s0 = inlined_call_operand.vmem [shape: bf16[64,1024], index: 0, kind: input, shape index: {}]   ;;  %s1945_s3 = inlined_call_operand.vmem [shape: bf16[64,128], index: 3, kind: output, shape index: {}]  }
   0x1   :  { %v1405_v0 = vld [vmem:[%s1942_s1 + $0x38] sm:$0xff]  ;;  %v1404_v4 = vld [vmem:[%s1942_s1 + $0x30] sm:$0xff]  ;;  %v1403_v8 = vld [vmem:[%s1942_s1 + $0x28] sm:$0xff] }
   0x2   :  { %v1413_v1 = vld [vmem:[%s1942_s1 + $0x78] sm:$0xff]  ;;  %722 = vmatpush.bf16.msra.mxu0 %v1405_v0  ;;  %v1412_v5 = vld [vmem:[%s1942_s1 + $0x70] sm:$0xff]  ;;  %v1411_v9 = vld [vmem:[%s1942_s1 + $0x68] sm:$0xff] }
   0x3   :  { %v1421_v2 = vld [vmem:[%s1942_s1 + $0xb8] sm:$0xff]  ;;  %751 = vmatpush.bf16.msra.mxu1 %v1413_v1  ;;  %v1420_v6 = vld [vmem:[%s1942_s1 + $0xb0] sm:$0xff]  ;;  %v1419_v10 = vld [vmem:[%s1942_s1 + $0xa8] sm:$0xff] }
   0x4   :  { %v1429_v3 = vld [vmem:[%s1942_s1 + $0xf8] sm:$0xff]  ;;  %780 = vmatpush.bf16.msra.mxu2 %v1421_v2  ;;  %v1428_v7 = vld [vmem:[%s1942_s1 + $0xf0] sm:$0xff]  ;;  %v1427_v11 = vld [vmem:[%s1942_s1 + $0xe8] sm:$0xff] }
   0x5   :  { %809 = vmatpush.bf16.msra.mxu3 %v1429_v3  ;;  %v1402_v12 = vld [vmem:[%s1942_s1 + $0x20] sm:$0xff]  ;;  %v1401_v16 = vld [vmem:[%s1942_s1 + $0x18] sm:$0xff]  ;;  %v1400_v20 = vld [vmem:[%s1942_s1 + $0x10] sm:$0xff] }
   0x6   :  { %723 = vmatpush.bf16.msra.mxu0 %v1404_v4  ;;  %v1410_v13 = vld [vmem:[%s1942_s1 + $0x60] sm:$0xff]  ;;  %v1409_v17 = vld [vmem:[%s1942_s1 + $0x58] sm:$0xff]  ;;  %v1408_v21 = vld [vmem:[%s1942_s1 + $0x50] sm:$0xff] }
   0x7   :  { %752 = vmatpush.bf16.msra.mxu1 %v1412_v5  ;;  %v1418_v14 = vld [vmem:[%s1942_s1 + $0xa0] sm:$0xff]  ;;  %v1417_v18 = vld [vmem:[%s1942_s1 + $0x98] sm:$0xff]  ;;  %v1416_v22 = vld [vmem:[%s1942_s1 + $0x90] sm:$0xff] }
   0x8   :  { %781 = vmatpush.bf16.msra.mxu2 %v1420_v6  ;;  %v1426_v15 = vld [vmem:[%s1942_s1 + $0xe0] sm:$0xff]  ;;  %v1425_v19 = vld [vmem:[%s1942_s1 + $0xd8] sm:$0xff]  ;;  %v1424_v23 = vld [vmem:[%s1942_s1 + $0xd0] sm:$0xff] }
   0x9   :  { %810 = vmatpush.bf16.msra.mxu3 %v1428_v7  ;;  %v1399_v24 = vld [vmem:[%s1942_s1 + $0x8] sm:$0xff]  ;;  %v1398_v28 = vld [vmem:[%s1942_s1] sm:$0xff]  ;;  %v1453_v40 = vld [vmem:[%s1942_s1 + $0x1b8] sm:$0xff] }
   0xa   :  { %724 = vmatpush.bf16.msra.mxu0 %v1403_v8  ;;  %v1407_v25 = vld [vmem:[%s1942_s1 + $0x48] sm:$0xff]  ;;  %v1406_v29 = vld [vmem:[%s1942_s1 + $0x40] sm:$0xff]  ;;  %v1437_v41 = vld [vmem:[%s1942_s1 + $0x138] sm:$0xff] }
   0xb   :  { %753 = vmatpush.bf16.msra.mxu1 %v1411_v9  ;;  %v1415_v26 = vld [vmem:[%s1942_s1 + $0x88] sm:$0xff]  ;;  %v1414_v30 = vld [vmem:[%s1942_s1 + $0x80] sm:$0xff]  ;;  %v1461_v46 = vld [vmem:[%s1942_s1 + $0x1f8] sm:$0xff] }
   0xc   :  { %782 = vmatpush.bf16.msra.mxu2 %v1419_v10  ;;  %v1423_v27 = vld [vmem:[%s1942_s1 + $0xc8] sm:$0xff]  ;;  %v1422_v31 = vld [vmem:[%s1942_s1 + $0xc0] sm:$0xff]  ;;  %v1445_v47 = vld [vmem:[%s1942_s1 + $0x178] sm:$0xff] }
   0xd   :  { %811 = vmatpush.bf16.msra.mxu3 %v1427_v11  ;;  %v984_v32 = vld [vmem:[%s1944_s0] sm:$0xf]  ;;  %v1366_v34 = vld [vmem:[%s1944_s0 + $0x4] sm:$0xf]  ;;  %v992_v36 = vld [vmem:[%s1944_s0 + $0x8] sm:$0xf] }
   0xe   :  { %725 = vmatpush.bf16.msra.mxu0 %v1402_v12  ;;  %v1370_v33 = vld [vmem:[%s1944_s0 + $0x1c] sm:$0xf0]  ;;  %v986_v35 = vld [vmem:[%s1944_s0 + $0x20] sm:$0xf0]  ;;  %v1371_v37 = vld [vmem:[%s1944_s0 + $0x24] sm:$0xf0] }
   0xf   :  { %754 = vmatpush.bf16.msra.mxu1 %v1410_v13  ;;  %v1367_v38 = vld [vmem:[%s1944_s0 + $0xc] sm:$0xf]  ;;  %v985_v42 = vor.u32 %v1370_v33, %v984_v32  ;;  %v989_v43 = vor.u32 %v1366_v34, %v986_v35  ;;  %v993_v44 = vor.u32 %v1371_v37, %v992_v36  ;;  %v1452_v48 = vld [vmem:[%s1942_s1 + $0x1b0] sm:$0xff]  ;;  %v1016_v56 = vld [vmem:[%s1944_s0 + $0x40] sm:$0xf] }
  0x10   :  { %783 = vmatpush.bf16.msra.mxu2 %v1418_v14  ;;  %v994_v39 = vld [vmem:[%s1944_s0 + $0x28] sm:$0xf0]  ;;  %v1436_v49 = vld [vmem:[%s1942_s1 + $0x130] sm:$0xff]  ;;  %v1450_v57 = vld [vmem:[%s1942_s1 + $0x1a0] sm:$0xff] }
  0x11   :  { %812 = vmatpush.bf16.msra.mxu3 %v1426_v15  ;;  %v997_v45 = vor.u32 %v1367_v38, %v994_v39  ;;  %v1460_v50 = vld [vmem:[%s1942_s1 + $0x1f0] sm:$0xff]  ;;  %v1451_v52 = vld [vmem:[%s1942_s1 + $0x1a8] sm:$0xff]  ;;  %v1434_v58 = vld [vmem:[%s1942_s1 + $0x120] sm:$0xff] }
  0x12   :  { %726 = vmatpush.bf16.msra.mxu0 %v1401_v16  ;;  %v1444_v51 = vld [vmem:[%s1942_s1 + $0x170] sm:$0xff]  ;;  %v1435_v53 = vld [vmem:[%s1942_s1 + $0x128] sm:$0xff]  ;;  %v1378_v59 = vld [vmem:[%s1944_s0 + $0x5c] sm:$0xf0] }
  0x13   :  { %755 = vmatpush.bf16.msra.mxu1 %v1409_v17  ;;  %v1459_v54 = vld [vmem:[%s1942_s1 + $0x1e8] sm:$0xff]  ;;  %v1374_v60 = vld [vmem:[%s1944_s0 + $0x44] sm:$0xf]  ;;  %v1449_v4 = vld [vmem:[%s1942_s1 + $0x198] sm:$0xff]  ;;  %v1017_v6 = vor.u32 %v1378_v59, %v1016_v56 }
  0x14   :  { %784 = vmatpush.bf16.msra.mxu2 %v1417_v18  ;;  %v1443_v55 = vld [vmem:[%s1942_s1 + $0x168] sm:$0xff]  ;;  %v1018_v61 = vld [vmem:[%s1944_s0 + $0x60] sm:$0xf0]  ;;  %v1433_v5 = vld [vmem:[%s1942_s1 + $0x118] sm:$0xff] }
  0x15   :  { %813 = vmatpush.bf16.msra.mxu3 %v1425_v19  ;;  %v1024_v62 = vld [vmem:[%s1944_s0 + $0x48] sm:$0xf]  ;;  %v1375_v0 = vld [vmem:[%s1944_s0 + $0x4c] sm:$0xf]  ;;  %v1458_v2 = vld [vmem:[%s1942_s1 + $0x1e0] sm:$0xff]  ;;  %v1021_v7 = vor.u32 %v1374_v60, %v1018_v61 }
  0x16   :  { %727 = vmatpush.bf16.msra.mxu0 %v1400_v20  ;;  %v1379_v63 = vld [vmem:[%s1944_s0 + $0x64] sm:$0xf0]  ;;  %v1026_v1 = vld [vmem:[%s1944_s0 + $0x68] sm:$0xf0]  ;;  %v1442_v3 = vld [vmem:[%s1942_s1 + $0x160] sm:$0xff] }
  0x17   :  { %756 = vmatpush.bf16.msra.mxu1 %v1408_v21  ;;  %v1025_v8 = vor.u32 %v1379_v63, %v1024_v62  ;;  %v1029_v9 = vor.u32 %v1375_v0, %v1026_v1  ;;  %v1457_v10 = vld [vmem:[%s1942_s1 + $0x1d8] sm:$0xff]  ;;  %v1448_v12 = vld [vmem:[%s1942_s1 + $0x190] sm:$0xff]  ;;  %v1447_v16 = vld [vmem:[%s1942_s1 + $0x188] sm:$0xff] }
  0x18   :  { %785 = vmatpush.bf16.msra.mxu2 %v1416_v22  ;;  %v1441_v11 = vld [vmem:[%s1942_s1 + $0x158] sm:$0xff]  ;;  %v1432_v13 = vld [vmem:[%s1942_s1 + $0x110] sm:$0xff]  ;;  %v1431_v17 = vld [vmem:[%s1942_s1 + $0x108] sm:$0xff] }
  0x19   :  { %814 = vmatpush.bf16.msra.mxu3 %v1424_v23  ;;  %v1456_v14 = vld [vmem:[%s1942_s1 + $0x1d0] sm:$0xff]  ;;  %v1455_v18 = vld [vmem:[%s1942_s1 + $0x1c8] sm:$0xff]  ;;  %v1048_v20 = vld [vmem:[%s1944_s0 + $0x80] sm:$0xf] }
  0x1a   :  { %728 = vmatpush.bf16.msra.mxu0 %v1399_v24  ;;  %v1440_v15 = vld [vmem:[%s1942_s1 + $0x150] sm:$0xff]  ;;  %v1439_v19 = vld [vmem:[%s1942_s1 + $0x148] sm:$0xff]  ;;  %v1446_v21 = vld [vmem:[%s1942_s1 + $0x180] sm:$0xff] }
  0x1b   :  { %757 = vmatpush.bf16.msra.mxu1 %v1407_v25  ;;  %v1430_v22 = vld [vmem:[%s1942_s1 + $0x100] sm:$0xff]  ;;  %v1032_v60 = vld [vmem:[%s1944_s0 + $0x50] sm:$0xf]  ;;  %v1376_v62 = vld [vmem:[%s1944_s0 + $0x54] sm:$0xf] }
  0x1c   :  { %786 = vmatpush.bf16.msra.mxu2 %v1415_v26  ;;  %v1386_v23 = vld [vmem:[%s1944_s0 + $0x9c] sm:$0xf0]  ;;  %v1382_v24 = vld [vmem:[%s1944_s0 + $0x84] sm:$0xf]  ;;  %v1056_v26 = vld [vmem:[%s1944_s0 + $0x88] sm:$0xf] }
  0x1d   :  { %815 = vmatpush.bf16.msra.mxu3 %v1423_v27  ;;  %v1050_v25 = vld [vmem:[%s1944_s0 + $0xa0] sm:$0xf0]  ;;  %v1387_v27 = vld [vmem:[%s1944_s0 + $0xa4] sm:$0xf0]  ;;  %v1049_v32 = vor.u32 %v1386_v23, %v1048_v20  ;;  %v1080_v36 = vld [vmem:[%s1944_s0 + $0xc0] sm:$0xf] }
  0x1e   :  { %729 = vmatpush.bf16.msra.mxu0 %v1398_v28  ;;  %v1383_v28 = vld [vmem:[%s1944_s0 + $0x8c] sm:$0xf]  ;;  %v1053_v33 = vor.u32 %v1382_v24, %v1050_v25  ;;  %v1057_v34 = vor.u32 %v1387_v27, %v1056_v26  ;;  %v1394_v37 = vld [vmem:[%s1944_s0 + $0xdc] sm:$0xf0]  ;;  %v1390_v38 = vld [vmem:[%s1944_s0 + $0xc4] sm:$0xf] }
  0x1f   :  { %758 = vmatpush.bf16.msra.mxu1 %v1406_v29  ;;  %v1058_v29 = vld [vmem:[%s1944_s0 + $0xa8] sm:$0xf0]  ;;  %v1082_v39 = vld [vmem:[%s1944_s0 + $0xe0] sm:$0xf0]  ;;  %v1380_v61 = vld [vmem:[%s1944_s0 + $0x6c] sm:$0xf0] }
  0x20   :  { %787 = vmatpush.bf16.msra.mxu2 %v1414_v30  ;;  %v1454_v30 = vld [vmem:[%s1942_s1 + $0x1c0] sm:$0xff]  ;;  %v1061_v35 = vor.u32 %v1383_v28, %v1058_v29  ;;  %v1034_v63 = vld [vmem:[%s1944_s0 + $0x70] sm:$0xf0]  ;;  %v1040_v0 = vld [vmem:[%s1944_s0 + $0x58] sm:$0xf] }
  0x21   :  { %816 = vmatpush.bf16.msra.mxu3 %v1422_v31  ;;  %730 = vmatmul.bf16.vlgmr.msra.gmra.mxu0 %v985_v42  ;;  %v1438_v31 = vld [vmem:[%s1942_s1 + $0x140] sm:$0xff]  ;;  %v1391_v42 = vld [vmem:[%s1944_s0 + $0xcc] sm:$0xf]  ;;  %v1381_v1 = vld [vmem:[%s1944_s0 + $0x74] sm:$0xf0] }
  0x22   :  { %838 = vmatpush.bf16.msrb.mxu0 %v1437_v41  ;;  %759 = vmatmul.bf16.vlgmr.msra.gmra.mxu1 %v989_v43  ;;  %v1395_v41 = vld [vmem:[%s1944_s0 + $0xe4] sm:$0xf0]  ;;  %v1090_v43 = vld [vmem:[%s1944_s0 + $0xe8] sm:$0xf0]  ;;  %v1096_v20 = vld [vmem:[%s1944_s0 + $0xd0] sm:$0xf] }
  0x23   :  { %788 = vmatmul.bf16.vlgmr.msra.gmra.mxu2 %v993_v44  ;;  %867 = vmatpush.bf16.msrb.mxu1 %v1445_v47  ;;  %v1081_v44 = vor.u32 %v1394_v37, %v1080_v36  ;;  %v1093_v47 = vor.u32 %v1391_v42, %v1090_v43  ;;  %v1098_v23 = vld [vmem:[%s1944_s0 + $0xf0] sm:$0xf0]  ;;  %v1104_v24 = vld [vmem:[%s1944_s0 + $0xd8] sm:$0xf]  ;;  %v1393_v26 = vld [vmem:[%s1944_s0 + $0xdc] sm:$0xf] }
  0x24   :  { %896 = vmatpush.bf16.msrb.mxu2 %v1453_v40  ;;  %817 = vmatmul.bf16.vlgmr.msra.gmra.mxu3 %v997_v45  ;;  %v1088_v40 = vld [vmem:[%s1944_s0 + $0xc8] sm:$0xf]  ;;  %v1085_v45 = vor.u32 %v1390_v38, %v1082_v39  ;;  %v1397_v25 = vld [vmem:[%s1944_s0 + $0xf4] sm:$0xf0]  ;;  %v1106_v27 = vld [vmem:[%s1944_s0 + $0xf8] sm:$0xf0] }
  0x25   :  { %925 = vmatpush.bf16.msrb.mxu3 %v1461_v46  ;;  %v1089_v46 = vor.u32 %v1395_v41, %v1088_v40 }
  0x26   :  { %839 = vmatpush.bf16.msrb.mxu0 %v1436_v49  ;;  %v1372_v49 = vld [vmem:[%s1944_s0 + $0x2c] sm:$0xf0] }
  0x27   :  { %868 = vmatpush.bf16.msrb.mxu1 %v1444_v51  ;;  %v1002_v51 = vld [vmem:[%s1944_s0 + $0x30] sm:$0xf0] }
  0x28   :  { %897 = vmatpush.bf16.msrb.mxu2 %v1452_v48  ;;  %v1000_v48 = vld [vmem:[%s1944_s0 + $0x10] sm:$0xf] }
  0x29   :  { %926 = vmatpush.bf16.msrb.mxu3 %v1460_v50  ;;  %v1368_v50 = vld [vmem:[%s1944_s0 + $0x14] sm:$0xf]  ;;  %v1001_v56 = vor.u32 %v1372_v49, %v1000_v48 }
  0x2a   :  { %840 = vmatpush.bf16.msrb.mxu0 %v1435_v53  ;;  %v1373_v53 = vld [vmem:[%s1944_s0 + $0x34] sm:$0xf0] }
  0x2b   :  { %869 = vmatpush.bf16.msrb.mxu1 %v1443_v55  ;;  %v1010_v55 = vld [vmem:[%s1944_s0 + $0x38] sm:$0xf0] }
  0x2c   :  { %898 = vmatpush.bf16.msrb.mxu2 %v1451_v52  ;;  %v1008_v52 = vld [vmem:[%s1944_s0 + $0x18] sm:$0xf] }
  0x2d   :  { %927 = vmatpush.bf16.msrb.mxu3 %v1459_v54  ;;  %v1369_v54 = vld [vmem:[%s1944_s0 + $0x1c] sm:$0xf] }
  0x2e   :  { %841 = vmatpush.bf16.msrb.mxu0 %v1434_v58  ;;  %v1009_v58 = vor.u32 %v1373_v53, %v1008_v52  ;;  %v1013_v59 = vor.u32 %v1369_v54, %v1010_v55 }
  0x2f   :  { %870 = vmatpush.bf16.msrb.mxu1 %v1442_v3  ;;  %v1042_v3 = vld [vmem:[%s1944_s0 + $0x78] sm:$0xf0] }
  0x30   :  { %899 = vmatpush.bf16.msrb.mxu2 %v1450_v57  ;;  %v1005_v57 = vor.u32 %v1368_v50, %v1002_v51 }
  0x31   :  { %928 = vmatpush.bf16.msrb.mxu3 %v1458_v2  ;;  %735 = vmatmul.bf16.gmra.mxu0 %v1017_v6  ;;  %v1377_v2 = vld [vmem:[%s1944_s0 + $0x5c] sm:$0xf]  ;;  %v1041_v6 = vor.u32 %v1381_v1, %v1040_v0 }
  0x32   :  { %842 = vmatpush.bf16.msrb.mxu0 %v1433_v5  ;;  %764 = vmatmul.bf16.gmra.mxu1 %v1021_v7  ;;  %v1037_v5 = vor.u32 %v1376_v62, %v1034_v63  ;;  %v1045_v7 = vor.u32 %v1377_v2, %v1042_v3 }
  0x33   :  { %793 = vmatmul.bf16.gmra.mxu2 %v1025_v8  ;;  %871 = vmatpush.bf16.msrb.mxu1 %v1441_v11  ;;  %v1064_v8 = vld [vmem:[%s1944_s0 + $0x90] sm:$0xf]  ;;  %v1066_v11 = vld [vmem:[%s1944_s0 + $0xb0] sm:$0xf0] }
  0x34   :  { %900 = vmatpush.bf16.msrb.mxu2 %v1449_v4  ;;  %822 = vmatmul.bf16.gmra.mxu3 %v1029_v9  ;;  %v1033_v4 = vor.u32 %v1380_v61, %v1032_v60  ;;  %v1388_v9 = vld [vmem:[%s1944_s0 + $0xac] sm:$0xf0] }
  0x35   :  { %929 = vmatpush.bf16.msrb.mxu3 %v1457_v10  ;;  %v1384_v10 = vld [vmem:[%s1944_s0 + $0x94] sm:$0xf] }
  0x36   :  { %843 = vmatpush.bf16.msrb.mxu0 %v1432_v13  ;;  %v1389_v13 = vld [vmem:[%s1944_s0 + $0xb4] sm:$0xf0] }
  0x37   :  { %872 = vmatpush.bf16.msrb.mxu1 %v1440_v15  ;;  %v1074_v15 = vld [vmem:[%s1944_s0 + $0xb8] sm:$0xf0] }
  0x38   :  { %901 = vmatpush.bf16.msrb.mxu2 %v1448_v12  ;;  %v1072_v12 = vld [vmem:[%s1944_s0 + $0x98] sm:$0xf] }
  0x39   :  { %930 = vmatpush.bf16.msrb.mxu3 %v1456_v14  ;;  %v1385_v14 = vld [vmem:[%s1944_s0 + $0x9c] sm:$0xf] }
  0x3a   :  { %844 = vmatpush.bf16.msrb.mxu0 %v1431_v17  ;;  %v1069_v17 = vor.u32 %v1384_v10, %v1066_v11 }
  0x3b   :  { %873 = vmatpush.bf16.msrb.mxu1 %v1439_v19  ;;  %v1077_v19 = vor.u32 %v1385_v14, %v1074_v15 }
  0x3c   :  { %902 = vmatpush.bf16.msrb.mxu2 %v1447_v16  ;;  %v1065_v16 = vor.u32 %v1388_v9, %v1064_v8 }
  0x3d   :  { %931 = vmatpush.bf16.msrb.mxu3 %v1455_v18  ;;  %v1073_v18 = vor.u32 %v1389_v13, %v1072_v12 }
  0x3e   :  { %845 = vmatpush.bf16.msrb.mxu0 %v1430_v22  ;;  %v1392_v22 = vld [vmem:[%s1944_s0 + $0xd4] sm:$0xf] }
  0x3f   :  { %874 = vmatpush.bf16.msrb.mxu1 %v1438_v31  ;;  %v1101_v29 = vor.u32 %v1392_v22, %v1098_v23  ;;  %v1109_v31 = vor.u32 %v1393_v26, %v1106_v27 }
  0x40   :  { %903 = vmatpush.bf16.msrb.mxu2 %v1446_v21  ;;  %v1396_v21 = vld [vmem:[%s1944_s0 + $0xec] sm:$0xf0] }
  0x41   :  { %932 = vmatpush.bf16.msrb.mxu3 %v1454_v30  ;;  %740 = vmatmul.bf16.gmra.mxu0 %v1049_v32  ;;  %v1097_v28 = vor.u32 %v1396_v21, %v1096_v20  ;;  %v1105_v30 = vor.u32 %v1397_v25, %v1104_v24  ;;  %v1893_v32 = vld [vmem:[%s1943_s2] ss:$0 sm:$0xff] }
  0x42   :  { %769 = vmatmul.bf16.gmra.mxu1 %v1053_v33 }
  0x43   :  { %798 = vmatmul.bf16.gmra.mxu2 %v1057_v34 }
  0x44   :  { %827 = vmatmul.bf16.gmra.mxu3 %v1061_v35 }
  0x51   :  { %745 = vmatmul.bf16.gmra.mxu0 %v1081_v44 }
  0x52   :  { %774 = vmatmul.bf16.gmra.mxu1 %v1085_v45 }
  0x53   :  { %803 = vmatmul.bf16.gmra.mxu2 %v1089_v46 }
  0x54   :  { %832 = vmatmul.bf16.gmra.mxu3 %v1093_v47 }
  0x61   :  { %846 = vmatmul.bf16.vlgmr.msrb.gmra.mxu0 %v1001_v56 }
  0x62   :  { %875 = vmatmul.bf16.vlgmr.msrb.gmra.mxu1 %v1005_v57 }
  0x63   :  { %904 = vmatmul.bf16.vlgmr.msrb.gmra.mxu2 %v1009_v58 }
  0x64   :  { %933 = vmatmul.bf16.vlgmr.msrb.gmra.mxu3 %v1013_v59 }
  0x71   :  { %851 = vmatmul.bf16.gmra.mxu0 %v1033_v4 }
  0x72   :  { %880 = vmatmul.bf16.gmra.mxu1 %v1037_v5 }
  0x73   :  { %909 = vmatmul.bf16.gmra.mxu2 %v1041_v6 }
  0x74   :  { %938 = vmatmul.bf16.gmra.mxu3 %v1045_v7 }
  0x81   :  { %856 = vmatmul.bf16.gmra.mxu0 %v1065_v16 }
  0x82   :  { %885 = vmatmul.bf16.gmra.mxu1 %v1069_v17 }
  0x83   :  { %914 = vmatmul.bf16.gmra.mxu2 %v1073_v18 }
  0x84   :  { %943 = vmatmul.bf16.gmra.mxu3 %v1077_v19 }
  0x91   :  { %861 = vmatmul.bf16.gmra.mxu0 %v1097_v28 }
  0x92   :  { %890 = vmatmul.bf16.gmra.mxu1 %v1101_v29 }
  0x93   :  { %919 = vmatmul.bf16.gmra.mxu2 %v1105_v30 }
  0x94   :  { %948 = vmatmul.bf16.gmra.mxu3 %v1109_v31 }
  0x9e   :  { %v731_v33 = vpop.f32.mrf.mxu0 }
  0x9f   :  { %v760_v34 = vpop.f32.mrf.mxu1  ;;  %v732_v35 = vadd.f32 %v1893_v32, %v731_v33 }
  0xa1   :  { %v761_v36 = vadd.f32 %v760_v34, %v732_v35 }
  0xa6   :  { %v789_v37 = vpop.f32.mrf.mxu2  ;;  %v733_v40 = vpop.f32.mrf.mxu0 }
  0xa7   :  { %v818_v38 = vpop.f32.mrf.mxu3  ;;  %v790_v39 = vadd.f32 %v789_v37, %v761_v36  ;;  %v762_v41 = vpop.f32.mrf.mxu1  ;;  %v734_v15 = vadd.f32 %v1893_v32, %v733_v40 }
  0xa9   :  { %v819_v42 = vadd.f32 %v818_v38, %v790_v39  ;;  %v763_v20 = vadd.f32 %v762_v41, %v734_v15 }
  0xae   :  { %v791_v43 = vpop.f32.mrf.mxu2  ;;  %v736_v45 = vpop.f32.mrf.mxu0 }
  0xaf   :  { %v820_v44 = vpop.f32.mrf.mxu3  ;;  %v765_v46 = vpop.f32.mrf.mxu1  ;;  %v737_v47 = vadd.f32 %v1893_v32, %v736_v45  ;;  %v792_v21 = vadd.f32 %v791_v43, %v763_v20 }
  0xb1   :  { %v766_v48 = vadd.f32 %v765_v46, %v737_v47  ;;  %v821_v25 = vadd.f32 %v820_v44, %v792_v21 }
  0xb6   :  { %v794_v49 = vpop.f32.mrf.mxu2  ;;  %v738_v52 = vpop.f32.mrf.mxu0 }
  0xb7   :  { %v823_v50 = vpop.f32.mrf.mxu3  ;;  %v795_v51 = vadd.f32 %v794_v49, %v766_v48  ;;  %v767_v53 = vpop.f32.mrf.mxu1  ;;  %v739_v31 = vadd.f32 %v1893_v32, %v738_v52 }
  0xb9   :  { %v824_v54 = vadd.f32 %v823_v50, %v795_v51  ;;  %v768_v40 = vadd.f32 %v767_v53, %v739_v31 }
  0xbe   :  { %v796_v55 = vpop.f32.mrf.mxu2  ;;  %v741_v57 = vpop.f32.mrf.mxu0 }
  0xbf   :  { %v825_v56 = vpop.f32.mrf.mxu3  ;;  %v770_v58 = vpop.f32.mrf.mxu1  ;;  %v742_v59 = vadd.f32 %v1893_v32, %v741_v57 }
  0xc1   :  { %v771_v60 = vadd.f32 %v770_v58, %v742_v59 }
  0xc6   :  { %v799_v61 = vpop.f32.mrf.mxu2  ;;  %v743_v0 = vpop.f32.mrf.mxu0 }
  0xc7   :  { %v828_v62 = vpop.f32.mrf.mxu3  ;;  %v800_v63 = vadd.f32 %v799_v61, %v771_v60  ;;  %v1898_v1 = vpop.f32.mrf.mxu1  ;;  %v744_v53 = vadd.f32 %v1893_v32, %v743_v0 }
  0xc9   :  { %v1900_v2 = vadd.f32 %v828_v62, %v800_v63 }
  0xce   :  { %v1902_v3 = vpop.f32.mrf.mxu2  ;;  %v746_v5 = vpop.f32.mrf.mxu0 }
  0xcf   :  { %v1904_v4 = vpop.f32.mrf.mxu3  ;;  %v775_v6 = vpop.f32.mrf.mxu1  ;;  %v747_v7 = vadd.f32 %v1893_v32, %v746_v5 }
  0xd1   :  { %v776_v8 = vadd.f32 %v775_v6, %v747_v7 }
  0xd6   :  { %v804_v9 = vpop.f32.mrf.mxu2  ;;  %v1907_v12 = vpop.f32.mrf.mxu0 }
  0xd7   :  { %v833_v10 = vpop.f32.mrf.mxu3  ;;  %v805_v11 = vadd.f32 %v804_v9, %v776_v8  ;;  %v1909_v13 = vpop.f32.mrf.mxu1 }
  0xd9   :  { %v1911_v14 = vadd.f32 %v833_v10, %v805_v11 }
  0xde   :  { %v1914_v16 = vpop.f32.mrf.mxu2  ;;  %v847_v18 = vpop.f32.mrf.mxu0 }
  0xdf   :  { %v1916_v17 = vpop.f32.mrf.mxu3  ;;  %v876_v19 = vpop.f32.mrf.mxu1  ;;  %v848_v22 = vadd.f32 %v847_v18, %v819_v42  ;;  %v797_v42 = vadd.f32 %v796_v55, %v768_v40 }
  0xe1   :  { %v877_v28 = vadd.f32 %v876_v19, %v848_v22  ;;  %v826_v49 = vadd.f32 %v825_v56, %v797_v42  ;;  %v773_v56 = vadd.f32 %v1898_v1, %v744_v53 }
  0xe3   :  { %v802_v6 = vadd.f32 %v1902_v3, %v773_v56  ;;  %v749_v3 = vadd.f32 %v1893_v32, %v1907_v12 }
  0xe5   :  { %v831_v0 = vadd.f32 %v1904_v4, %v802_v6  ;;  %v778_v4 = vadd.f32 %v1909_v13, %v749_v3 }
  0xe6   :  { %v905_v23 = vpop.f32.mrf.mxu2  ;;  %v849_v26 = vpop.f32.mrf.mxu0 }
  0xe7   :  { %v934_v24 = vpop.f32.mrf.mxu3  ;;  %v878_v27 = vpop.f32.mrf.mxu1  ;;  %v850_v29 = vadd.f32 %v849_v26, %v821_v25  ;;  %v906_v30 = vadd.f32 %v905_v23, %v877_v28 }
  0xe9   :  { %v879_v33 = vadd.f32 %v878_v27, %v850_v29  ;;  %v935_v36 = vadd.f32 %v934_v24, %v906_v30  ;;  %v807_v29 = vadd.f32 %v1914_v16, %v778_v4 }
  0xeb   :  { %v954_v43 = vmax.f32 %v935_v36, 0.0  ;;  %v836_v32 = vadd.f32 %v1916_v17, %v807_v29 }
  0xee   :  { %v907_v34 = vpop.f32.mrf.mxu2  ;;  %v852_v38 = vpop.f32.mrf.mxu0 }
  0xef   :  { %v936_v35 = vpop.f32.mrf.mxu3  ;;  %v908_v37 = vadd.f32 %v907_v34, %v879_v33  ;;  %v881_v39 = vpop.f32.mrf.mxu1  ;;  %v853_v46 = vadd.f32 %v852_v38, %v824_v54 }
  0xf1   :  { %v937_v41 = vadd.f32 %v936_v35, %v908_v37  ;;  %v882_v52 = vadd.f32 %v881_v39, %v853_v46 }
  0xf3   :  { %v955_v45 = vmax.f32 %v937_v41, 0.0 }
  0xf5   :  { %v1465_v44 = vpack.c.bf16 %v955_v45, %v954_v43 }
  0xf6   :  { %v910_v47 = vpop.f32.mrf.mxu2  ;;  %v854_v50 = vpop.f32.mrf.mxu0 }
  0xf7   :  { %v939_v48 = vpop.f32.mrf.mxu3  ;;  %1466 = vst [vmem:[%s1945_s3] sm:$0xff] %v1465_v44   ;;  %v883_v51 = vpop.f32.mrf.mxu1  ;;  %v855_v57 = vadd.f32 %v854_v50, %v826_v49  ;;  %v911_v58 = vadd.f32 %v910_v47, %v882_v52 }
  0xf9   :  { %v884_v59 = vadd.f32 %v883_v51, %v855_v57  ;;  %v940_v61 = vadd.f32 %v939_v48, %v911_v58 }
  0xfb   :  { %v956_v7 = vmax.f32 %v940_v61, 0.0 }
  0xfe   :  { %v912_v55 = vpop.f32.mrf.mxu2  ;;  %v857_v54 = vpop.f32.mrf.mxu0 }
  0xff   :  { %v941_v60 = vpop.f32.mrf.mxu3  ;;  %v913_v62 = vadd.f32 %v912_v55, %v884_v59  ;;  %v886_v63 = vpop.f32.mrf.mxu1  ;;  %v858_v10 = vadd.f32 %v857_v54, %v1900_v2 }
 0x101   :  { %v942_v5 = vadd.f32 %v941_v60, %v913_v62  ;;  %v887_v20 = vadd.f32 %v886_v63, %v858_v10 }
 0x103   :  { %v957_v8 = vmax.f32 %v942_v5, 0.0 }
 0x105   :  { %v1470_v9 = vpack.c.bf16 %v957_v8, %v956_v7 }
 0x106   :  { %v915_v11 = vpop.f32.mrf.mxu2  ;;  %v859_v18 = vpop.f32.mrf.mxu0 }
 0x107   :  { %v944_v15 = vpop.f32.mrf.mxu3  ;;  %1482 = vst [vmem:[%s1945_s3 + $0x8] sm:$0xff] %v1470_v9   ;;  %v888_v19 = vpop.f32.mrf.mxu1  ;;  %v860_v1 = vadd.f32 %v859_v18, %v831_v0  ;;  %v916_v21 = vadd.f32 %v915_v11, %v887_v20 }
 0x109   :  { %v889_v22 = vadd.f32 %v888_v19, %v860_v1  ;;  %v945_v2 = vadd.f32 %v944_v15, %v916_v21 }
 0x10b   :  { %v958_v30 = vmax.f32 %v945_v2, 0.0 }
 0x10e   :  { %v917_v23 = vpop.f32.mrf.mxu2  ;;  %v862_v26 = vpop.f32.mrf.mxu0 }
 0x10f   :  { %v946_v24 = vpop.f32.mrf.mxu3  ;;  %v918_v25 = vadd.f32 %v917_v23, %v889_v22  ;;  %v891_v28 = vpop.f32.mrf.mxu1  ;;  %v863_v34 = vadd.f32 %v862_v26, %v1911_v14 }
 0x111   :  { %v947_v27 = vadd.f32 %v946_v24, %v918_v25  ;;  %v892_v37 = vadd.f32 %v891_v28, %v863_v34 }
 0x113   :  { %v959_v31 = vmax.f32 %v947_v27, 0.0 }
 0x115   :  { %v1475_v33 = vpack.c.bf16 %v959_v31, %v958_v30 }
 0x116   :  { %v920_v35 = vpop.f32.mrf.mxu2  ;;  %v864_v12 = vpop.f32.mrf.mxu0 }
 0x117   :  { %v949_v36 = vpop.f32.mrf.mxu3  ;;  %1483 = vst [vmem:[%s1945_s3 + $0x10] sm:$0xff] %v1475_v33   ;;  %v865_v13 = vadd.f32 %v864_v12, %v836_v32  ;;  %v921_v38 = vadd.f32 %v920_v35, %v892_v37  ;;  %v893_v39 = vpop.f32.mrf.mxu1 }
 0x119   :  { %v894_v40 = vadd.f32 %v893_v39, %v865_v13  ;;  %v950_v41 = vadd.f32 %v949_v36, %v921_v38 }
 0x11b   :  { %v960_v14 = vmax.f32 %v950_v41, 0.0 }
 0x11e   :  { %v922_v16 = vpop.f32.mrf.mxu2 }
 0x11f   :  { %v923_v42 = vadd.f32 %v922_v16, %v894_v40  ;;  %v951_v43 = vpop.f32.mrf.mxu3 }
 0x121   :  { %v952_v45 = vadd.f32 %v951_v43, %v923_v42 }
 0x123   :  { %v961_v44 = vmax.f32 %v952_v45, 0.0 }
 0x125   :  { %v1480_v46 = vpack.c.bf16 %v961_v44, %v960_v14 }
 0x127   :  { %1484 = vst [vmem:[%s1945_s3 + $0x18] sm:$0xff] %v1480_v46  }

// kernel: fwd.7
= control target key start
LH: loop header
LB: loop body
LE: loop exit
PB: predicated region body
PF: predicated region fallthrough
CT: control target
= control target key end

     0   :  { %vm300_vm0 = vcmask 392192   ;;  %vm389_vm1 = vcmask 523264   ;;  %vm1354_vm2 = vcmask 1041408   ;;  %vm1350_vm3 = vcmask 15360   ;;  %s2910_s2 = inlined_call_operand.vmem [shape: bf16[432,64], index: 2, kind: input, shape index: {}]   ;;  %s2911_s0 = inlined_call_operand.vmem [shape: bf16[9,2,432], index: 0, kind: input, shape index: {}]   ;;  %s2912_s4 = inlined_call_operand.vmem [shape: bf16[9,64,64], index: 4, kind: input, shape index: {}]   ;;  %s2913_s3 = inlined_call_operand.vmem [shape: f32[1,64], index: 3, kind: input, shape index: {}]   ;;  %s2914_s5 = inlined_call_operand.vmem [shape: f32[1,64], index: 5, kind: input, shape index: {}]   ;;  %s2915_s7 = inlined_call_operand.vmem [shape: f32[1,32], index: 7, kind: input, shape index: {}]   ;;  %s2916_s8 = inlined_call_operand.vmem [shape: f32[1,32], index: 8, kind: input, shape index: {}]   ;;  %s2917_s9 = inlined_call_operand.vmem [shape: f32[1,32], index: 9, kind: input, shape index: {}]   ;;  %s2918_s6 = inlined_call_operand.vmem [shape: f32[2,32], index: 6, kind: input, shape index: {}]   ;;  %s2919_s1 = inlined_call_operand.vmem [shape: f32[2,2], index: 1, kind: input, shape index: {}]   ;;  %s2920_s11 = inlined_call_operand.vmem [shape: bf16[32,100], index: 11, kind: input, shape index: {}]   ;;  %s2921_s10 = inlined_call_operand.vmem [shape: bf16[64,100], index: 10, kind: input, shape index: {}]   ;;  %s2922_s12 = inlined_call_operand.vmem [shape: f32[1,100], index: 12, kind: input, shape index: {}]   ;;  %s2923_s13 = inlined_call_operand.vmem [shape: bf16[100,50], index: 13, kind: input, shape index: {}]   ;;  %s2924_s14 = inlined_call_operand.vmem [shape: f32[1,50], index: 14, kind: input, shape index: {}]   ;;  %s2925_s15 = inlined_call_operand.vmem [shape: bf16[50,10], index: 15, kind: input, shape index: {}]   ;;  %s2926_s16 = inlined_call_operand.vmem [shape: f32[1,10], index: 16, kind: input, shape index: {}]   ;;  %s2927_s17 = inlined_call_operand.vmem [shape: bf16[10,1], index: 17, kind: input, shape index: {}]   ;;  %s2928_s18 = inlined_call_operand.<no memory space> [shape: f32[1,1], index: 18, kind: input, shape index: {}]   ;;  %s2929_s19 = inlined_call_operand.vmem [shape: f32[2,1], index: 19, kind: output, shape index: {}]  }
   0x1   :  { %2933 = sst [smem:[#allocation3_spill]] %s2910_s2  ;;  %vm1415_vm4 = vcmask 261120   ;;  %vm1593_vm5 = vcmask 1040384   ;;  %vm1535_vm6 = vcmask 818176   ;;  %vm1627_vm7 = vcmask 1044480  }
   0x2   :  { %2934 = sst [smem:[#allocation4_spill]] %s2911_s0  ;;  %vm1589_vm8 = vcmask 408576   ;;  %vm1623_vm9 = vcmask 80896   ;;  %vm1644_vm10 = vcmask 1024  }
   0x3   :  { %2935 = sst [smem:[#allocation5_spill]] %s2912_s4 }
   0x4   :  { %2936 = sst [smem:[#allocation6_spill]] %s2913_s3 }
   0x5   :  { %s2937_s20 = sld [smem:[#allocation3_spill]] }
   0x6   :  { %s2938_s26 = sld [smem:[#allocation4_spill]] }
   0x7   :  { %s2939_s24 = sld [smem:[#allocation5_spill]] }
   0x8   :  { %s2940_s4 = sld [smem:[#allocation6_spill]] }
   0xb   :  { %v2257_v0 = vld [vmem:[%s2937_s20 + $0x38] sm:$0xff]  ;;  %v2274_v3 = vld [vmem:[%s2937_s20 + $0x30] sm:$0xff]  ;;  %v2297_v7 = vld [vmem:[%s2937_s20 + $0x28] sm:$0xff] }
   0xc   :  { %v2262_v1 = vld [vmem:[%s2937_s20 + $0x78] sm:$0xff]  ;;  %303 = vmatpush.bf16.msra.mxu0 %v2257_v0  ;;  %v2279_v4 = vld [vmem:[%s2937_s20 + $0x70] sm:$0xff]  ;;  %v2302_v8 = vld [vmem:[%s2937_s20 + $0x68] sm:$0xff] }
   0xd   :  { %v2267_v2 = vld [vmem:[%s2937_s20 + $0xb8] sm:$0xff]  ;;  %316 = vmatpush.bf16.msra.mxu1 %v2262_v1  ;;  %v2285_v5 = vld [vmem:[%s2937_s20 + $0xb0] sm:$0xff]  ;;  %v2308_v9 = vld [vmem:[%s2937_s20 + $0xa8] sm:$0xff] }
   0xe   :  { %329 = vmatpush.bf16.msra.mxu2 %v2267_v2  ;;  %v2290_v6 = vld [vmem:[%s2937_s20 + $0xd0] sm:$0xff]  ;;  %v2314_v10 = vld [vmem:[%s2937_s20 + $0xc8] sm:$0xff]  ;;  %v125_v11 = vld [vmem:[%s2938_s26] sm:$0xf] }
   0xf   :  { %347 = vmatpush.bf16.msra.mxu3 %v2290_v6  ;;  %130 = vst [vmem:[#allocation1] ss:$9 sm:$0xff] %v125_v11  ;;  %v2324_v12 = vld [vmem:[%s2937_s20 + $0x20] sm:$0xff]  ;;  %v2093_v16 = vld [vmem:[%s2939_s24 + $0x18] sm:$0xff]  ;;  %v2092_v22 = vld [vmem:[%s2939_s24 + $0x10] sm:$0xff] }
  0x10   :  { %304 = vmatpush.bf16.msra.mxu0 %v2274_v3  ;;  %v2329_v13 = vld [vmem:[%s2937_s20 + $0x60] sm:$0xff]  ;;  %v2351_v17 = vld [vmem:[%s2937_s20 + $0x18] sm:$0xff]  ;;  %v2376_v26 = vld [vmem:[%s2937_s20 + $0x10] sm:$0xff] }
  0x11   :  { %317 = vmatpush.bf16.msra.mxu1 %v2279_v4  ;;  %v2335_v14 = vld [vmem:[%s2937_s20 + $0xa0] sm:$0xff]  ;;  %v2356_v18 = vld [vmem:[%s2937_s20 + $0x58] sm:$0xff]  ;;  %v2381_v27 = vld [vmem:[%s2937_s20 + $0x50] sm:$0xff] }
  0x12   :  { %330 = vmatpush.bf16.msra.mxu2 %v2285_v5  ;;  %v2341_v15 = vld [vmem:[%s2937_s20 + $0xc0] sm:$0xff]  ;;  %v2362_v19 = vld [vmem:[%s2937_s20 + $0x98] sm:$0xff]  ;;  %v2387_v28 = vld [vmem:[%s2937_s20 + $0x90] sm:$0xff] }
  0x13   :  { %348 = vmatpush.bf16.msra.mxu3 %v2314_v10  ;;  %v1776_v20 = vld [vmem:[%s2938_s26 + $0x4] sm:$0xf]  ;;  %v2091_v29 = vld [vmem:[%s2939_s24 + $0x8] sm:$0xff]  ;;  %v2482_v39 = vld [vmem:[%s2940_s4] ss:$0 sm:$0xff] }
  0x14   :  { %305 = vmatpush.bf16.msra.mxu0 %v2297_v7  ;;  %v2398_v30 = vld [vmem:[%s2937_s20 + $0x8] sm:$0xff]  ;;  %v2090_v33 = vld [vmem:[%s2939_s24] sm:$0xff]  ;;  %v2097_v57 = vld [vmem:[%s2939_s24 + $0x38] sm:$0xff] }
  0x15   :  { %318 = vmatpush.bf16.msra.mxu1 %v2302_v8  ;;  %v2403_v31 = vld [vmem:[%s2937_s20 + $0x48] sm:$0xff]  ;;  %v2419_v34 = vld [vmem:[%s2937_s20] sm:$0xff]  ;;  %v2096_v61 = vld [vmem:[%s2939_s24 + $0x30] sm:$0xff] }
  0x16   :  { %331 = vmatpush.bf16.msra.mxu2 %v2308_v9  ;;  %v134_v21 = vld [vmem:[#allocation1 + $0x1b] sm:$0xff]  ;;  %v132_v24 = vld [vmem:[#allocation1 + $0x9] sm:$0xff]  ;;  %v133_v25 = vld [vmem:[#allocation1 + $0x12] sm:$0xff] }
  0x17   :  { %349 = vmatpush.bf16.msra.mxu3 %v2341_v15  ;;  %v131_v23 = vld [vmem:[#allocation1] sm:$0xff]  ;;  %v2409_v32 = vld [vmem:[%s2937_s20 + $0x88] sm:$0xff] }
  0x18   :  { %306 = vmatpush.bf16.msra.mxu0 %v2324_v12  ;;  %410 = vst [vmem:[#allocation1] ss:$9 sm:$0xff] %v1776_v20  ;;  %v2424_v35 = vld [vmem:[%s2937_s20 + $0x40] sm:$0xff]  ;;  %v1803_v45 = vld [vmem:[%s2938_s26 + $0x8] sm:$0xf] }
  0x19   :  { %319 = vmatpush.bf16.msra.mxu1 %v2329_v13  ;;  %v2430_v36 = vld [vmem:[%s2937_s20 + $0x80] sm:$0xff] }
  0x1a   :  { %332 = vmatpush.bf16.msra.mxu2 %v2335_v14  ;;  %1758 = vmatmul.msk.bf16.vlgmr.msra.gmra.mxu3 %vm300_vm0, %v134_v21  ;;  %v2094_v20 = vld [vmem:[%s2939_s24 + $0x20] sm:$0xff] }
  0x1b   :  { %397 = vmatpush.bf16.msrb.mxu3 %v2093_v16  ;;  %v2095_v16 = vld [vmem:[%s2939_s24 + $0x28] sm:$0xff] }
  0x1c   :  { %307 = vmatpush.bf16.msra.mxu0 %v2351_v17 }
  0x1d   :  { %320 = vmatpush.bf16.msra.mxu1 %v2356_v18 }
  0x1e   :  { %333 = vmatpush.bf16.msra.mxu2 %v2362_v19 }
  0x1f   :  { %398 = vmatpush.bf16.msrb.mxu3 %v2092_v22  ;;  %v414_v37 = vld [vmem:[#allocation1 + $0x1b] sm:$0xff]  ;;  %v412_v40 = vld [vmem:[#allocation1 + $0x9] sm:$0xff]  ;;  %v413_v44 = vld [vmem:[#allocation1 + $0x12] sm:$0xff] }
  0x20   :  { %308 = vmatpush.bf16.msra.mxu0 %v2376_v26  ;;  %v411_v43 = vld [vmem:[#allocation1] sm:$0xff] }
  0x21   :  { %321 = vmatpush.bf16.msra.mxu1 %v2381_v27  ;;  %527 = vst [vmem:[#allocation1] ss:$9 sm:$0xff] %v1803_v45 }
  0x22   :  { %334 = vmatpush.bf16.msra.mxu2 %v2387_v28 }
  0x23   :  { %399 = vmatpush.bf16.msrb.mxu3 %v2091_v29 }
  0x24   :  { %309 = vmatpush.bf16.msra.mxu0 %v2398_v30 }
  0x25   :  { %322 = vmatpush.bf16.msra.mxu1 %v2403_v31 }
  0x26   :  { %335 = vmatpush.bf16.msra.mxu2 %v2409_v32 }
  0x27   :  { %400 = vmatpush.bf16.msrb.mxu3 %v2090_v33 }
  0x28   :  { %310 = vmatpush.bf16.msra.mxu0 %v2419_v34  ;;  %v528_v21 = vld [vmem:[#allocation1] sm:$0xff]  ;;  %v529_v22 = vld [vmem:[#allocation1 + $0x9] sm:$0xff] }
  0x29   :  { %323 = vmatpush.bf16.msra.mxu1 %v2424_v35 }
  0x2a   :  { %336 = vmatpush.bf16.msra.mxu2 %v2430_v36 }
  0x2b   :  { %420 = vmatpush.bf16.msra.mxu3 %v2257_v0  ;;  %311 = vmatmul.bf16.vlgmr.msra.gmra.mxu0 %v131_v23  ;;  %v530_v23 = vld [vmem:[#allocation1 + $0x12] sm:$0xff] }
  0x2c   :  { %433 = vmatpush.bf16.msrb.mxu0 %v2262_v1  ;;  %324 = vmatmul.bf16.vlgmr.msra.gmra.mxu1 %v132_v24 }
  0x2d   :  { %446 = vmatpush.bf16.msrb.mxu1 %v2267_v2  ;;  %337 = vmatmul.bf16.vlgmr.msra.gmra.mxu2 %v133_v25 }
  0x2e   :  { %464 = vmatpush.bf16.msrb.mxu2 %v2290_v6 }
  0x2f   :  { %421 = vmatpush.bf16.msra.mxu3 %v2274_v3 }
  0x30   :  { %434 = vmatpush.bf16.msrb.mxu0 %v2279_v4 }
  0x31   :  { %447 = vmatpush.bf16.msrb.mxu1 %v2285_v5 }
  0x32   :  { %465 = vmatpush.bf16.msrb.mxu2 %v2314_v10 }
  0x33   :  { %422 = vmatpush.bf16.msra.mxu3 %v2297_v7 }
  0x34   :  { %435 = vmatpush.bf16.msrb.mxu0 %v2302_v8 }
  0x35   :  { %448 = vmatpush.bf16.msrb.mxu1 %v2308_v9 }
  0x36   :  { %466 = vmatpush.bf16.msrb.mxu2 %v2341_v15 }
  0x37   :  { %423 = vmatpush.bf16.msra.mxu3 %v2324_v12 }
  0x38   :  { %436 = vmatpush.bf16.msrb.mxu0 %v2329_v13 }
  0x39   :  { %449 = vmatpush.bf16.msrb.mxu1 %v2335_v14 }
  0x3a   :  { %514 = vmatpush.bf16.msra.mxu2 %v2097_v57 }
  0x3b   :  { %424 = vmatpush.bf16.msra.mxu3 %v2351_v17 }
  0x3c   :  { %437 = vmatpush.bf16.msrb.mxu0 %v2356_v18 }
  0x3d   :  { %450 = vmatpush.bf16.msrb.mxu1 %v2362_v19  ;;  %1777 = vmatmul.msk.bf16.vlgmr.msrb.gmra.mxu2 %vm300_vm0, %v414_v37 }
  0x3e   :  { %515 = vmatpush.bf16.msra.mxu2 %v2096_v61  ;;  %v2143_v61 = vld [vmem:[%s2914_s5] ss:$0 sm:$0xff] }
  0x3f   :  { %425 = vmatpush.bf16.msra.mxu3 %v2376_v26 }
  0x40   :  { %438 = vmatpush.bf16.msrb.mxu0 %v2381_v27 }
  0x41   :  { %451 = vmatpush.bf16.msrb.mxu1 %v2387_v28 }
  0x42   :  { %516 = vmatpush.bf16.msra.mxu2 %v2095_v16 }
  0x43   :  { %426 = vmatpush.bf16.msra.mxu3 %v2398_v30 }
  0x44   :  { %439 = vmatpush.bf16.msrb.mxu0 %v2403_v31 }
  0x45   :  { %452 = vmatpush.bf16.msrb.mxu1 %v2409_v32 }
  0x46   :  { %517 = vmatpush.bf16.msra.mxu2 %v2094_v20 }
  0x47   :  { %427 = vmatpush.bf16.msra.mxu3 %v2419_v34 }
  0x48   :  { %440 = vmatpush.bf16.msrb.mxu0 %v2424_v35 }
  0x49   :  { %453 = vmatpush.bf16.msrb.mxu1 %v2430_v36 }
  0x4a   :  { %581 = vmatpush.bf16.msrb.mxu2 %v2290_v6 }
  0x4b   :  { %441 = vmatmul.bf16.vlgmr.msrb.gmra.mxu0 %v412_v40 }
  0x4c   :  { %550 = vmatpush.bf16.msra.mxu0 %v2262_v1  ;;  %454 = vmatmul.bf16.vlgmr.msrb.gmra.mxu1 %v413_v44  ;;  %v531_v44 = vld [vmem:[#allocation1 + $0x1b] sm:$0xff] }
  0x4d   :  { %563 = vmatpush.bf16.msra.mxu1 %v2267_v2 }
  0x4e   :  { %582 = vmatpush.bf16.msrb.mxu2 %v2314_v10 }
  0x50   :  { %551 = vmatpush.bf16.msra.mxu0 %v2279_v4 }
  0x51   :  { %564 = vmatpush.bf16.msra.mxu1 %v2285_v5 }
  0x52   :  { %583 = vmatpush.bf16.msrb.mxu2 %v2341_v15 }
  0x54   :  { %552 = vmatpush.bf16.msra.mxu0 %v2302_v8 }
  0x55   :  { %565 = vmatpush.bf16.msra.mxu1 %v2308_v9 }
  0x58   :  { %553 = vmatpush.bf16.msra.mxu0 %v2329_v13 }
  0x59   :  { %566 = vmatpush.bf16.msra.mxu1 %v2335_v14 }
  0x5c   :  { %554 = vmatpush.bf16.msra.mxu0 %v2356_v18 }
  0x5d   :  { %567 = vmatpush.bf16.msra.mxu1 %v2362_v19 }
  0x60   :  { %555 = vmatpush.bf16.msra.mxu0 %v2381_v27 }
  0x61   :  { %568 = vmatpush.bf16.msra.mxu1 %v2387_v28 }
  0x64   :  { %556 = vmatpush.bf16.msra.mxu0 %v2403_v31 }
  0x65   :  { %569 = vmatpush.bf16.msra.mxu1 %v2409_v32 }
  0x68   :  { %557 = vmatpush.bf16.msra.mxu0 %v2424_v35 }
  0x69   :  { %570 = vmatpush.bf16.msra.mxu1 %v2430_v36 }
  0x6b   :  { %558 = vmatmul.bf16.vlgmr.msra.gmra.mxu0 %v529_v22 }
  0x6c   :  { %667 = vmatpush.bf16.msrb.mxu0 %v2262_v1  ;;  %571 = vmatmul.bf16.vlgmr.msra.gmra.mxu1 %v530_v23 }
  0x6d   :  { %680 = vmatpush.bf16.msrb.mxu1 %v2267_v2 }
  0x70   :  { %668 = vmatpush.bf16.msrb.mxu0 %v2279_v4 }
  0x71   :  { %681 = vmatpush.bf16.msrb.mxu1 %v2285_v5 }
  0x74   :  { %669 = vmatpush.bf16.msrb.mxu0 %v2302_v8 }
  0x75   :  { %682 = vmatpush.bf16.msrb.mxu1 %v2308_v9 }
  0x78   :  { %670 = vmatpush.bf16.msrb.mxu0 %v2329_v13 }
  0x79   :  { %683 = vmatpush.bf16.msrb.mxu1 %v2335_v14 }
  0x7c   :  { %671 = vmatpush.bf16.msrb.mxu0 %v2356_v18 }
  0x7d   :  { %684 = vmatpush.bf16.msrb.mxu1 %v2362_v19 }
  0x80   :  { %672 = vmatpush.bf16.msrb.mxu0 %v2381_v27 }
  0x81   :  { %685 = vmatpush.bf16.msrb.mxu1 %v2387_v28 }
  0x84   :  { %673 = vmatpush.bf16.msrb.mxu0 %v2403_v31 }
  0x85   :  { %686 = vmatpush.bf16.msrb.mxu1 %v2409_v32 }
  0x88   :  { %674 = vmatpush.bf16.msrb.mxu0 %v2424_v35 }
  0x89   :  { %687 = vmatpush.bf16.msrb.mxu1 %v2430_v36 }
  0x8c   :  { %784 = vmatpush.bf16.msra.mxu0 %v2262_v1 }
  0x8d   :  { %797 = vmatpush.bf16.msra.mxu1 %v2267_v2 }
  0x90   :  { %785 = vmatpush.bf16.msra.mxu0 %v2279_v4 }
  0x91   :  { %798 = vmatpush.bf16.msra.mxu1 %v2285_v5 }
  0x94   :  { %786 = vmatpush.bf16.msra.mxu0 %v2302_v8 }
  0x95   :  { %799 = vmatpush.bf16.msra.mxu1 %v2308_v9 }
  0x98   :  { %787 = vmatpush.bf16.msra.mxu0 %v2329_v13 }
  0x99   :  { %800 = vmatpush.bf16.msra.mxu1 %v2335_v14 }
  0x9c   :  { %788 = vmatpush.bf16.msra.mxu0 %v2356_v18 }
  0x9d   :  { %v351_v38 = vpop.f32.mrf.mxu3  ;;  %801 = vmatpush.bf16.msra.mxu1 %v2362_v19 }
  0xa0   :  { %789 = vmatpush.bf16.msra.mxu0 %v2381_v27 }
  0xa1   :  { %802 = vmatpush.bf16.msra.mxu1 %v2387_v28 }
  0xa4   :  { %790 = vmatpush.bf16.msra.mxu0 %v2403_v31 }
  0xa5   :  { %v353_v47 = vpop.f32.mrf.mxu3  ;;  %803 = vmatpush.bf16.msra.mxu1 %v2409_v32 }
  0xa6   :  { %v2101_v47 = vld [vmem:[%s2939_s24 + $0x58] sm:$0xff] }
  0xa8   :  { %v312_v41 = vpop.f32.mrf.mxu0  ;;  %791 = vmatpush.bf16.msra.mxu0 %v2424_v35 }
  0xa9   :  { %v325_v42 = vpop.f32.mrf.mxu1  ;;  %v313_v46 = vadd.f32 %v2482_v39, %v312_v41  ;;  %804 = vmatpush.bf16.msra.mxu1 %v2430_v36 }
  0xab   :  { %v326_v48 = vadd.f32 %v325_v42, %v313_v46 }
  0xb0   :  { %v338_v49 = vpop.f32.mrf.mxu2  ;;  %v314_v51 = vpop.f32.mrf.mxu0 }
  0xb1   :  { %v339_v50 = vadd.f32 %v338_v49, %v326_v48  ;;  %v327_v52 = vpop.f32.mrf.mxu1  ;;  %v2100_v49 = vld [vmem:[%s2939_s24 + $0x50] sm:$0xff] }
  0xb3   :  { %v352_v53 = vadd.f32 %v351_v38, %v339_v50 }
  0xb5   :  { %v355_v54 = vmax.f32 %v352_v53, 0.0  ;;  %v2099_v53 = vld [vmem:[%s2939_s24 + $0x48] sm:$0xff] }
  0xb7   :  { %v356_v55 = vpack.c.bf16 %v355_v54, %v355_v54  ;;  %v1830_v54 = vld [vmem:[%s2938_s26 + $0xc] sm:$0xf] }
  0xb8   :  { %v340_v56 = vpop.f32.mrf.mxu2  ;;  %644 = vst [vmem:[#allocation1] ss:$9 sm:$0xff] %v1830_v54 }
  0xb9   :  { %1775 = vmatmul.msk.bf16.vlgmr.msrb.gmra.mxu3 %vm389_vm1, %v356_v55  ;;  %v2098_v55 = vld [vmem:[%s2939_s24 + $0x40] sm:$0xff]  ;;  %v1857_v56 = vld [vmem:[%s2938_s26 + $0x10] sm:$0xf] }
  0xba   :  { %537 = vmatpush.bf16.msrb.mxu3 %v2257_v0 }
  0xbe   :  { %538 = vmatpush.bf16.msrb.mxu3 %v2274_v3 }
  0xbf   :  { %v645_v57 = vld [vmem:[#allocation1] sm:$0xff] }
  0xc0   :  { %v468_v58 = vpop.f32.mrf.mxu2 }
  0xc2   :  { %539 = vmatpush.bf16.msrb.mxu3 %v2297_v7 }
  0xc6   :  { %540 = vmatpush.bf16.msrb.mxu3 %v2324_v12 }
  0xc8   :  { %v442_v59 = vpop.f32.mrf.mxu0  ;;  %v470_v62 = vpop.f32.mrf.mxu2 }
  0xc9   :  { %428 = vmatmul.bf16.vlgmr.msra.gmra.mxu3 %v411_v43  ;;  %v455_v60 = vpop.f32.mrf.mxu1 }
  0xca   :  { %541 = vmatpush.bf16.msrb.mxu3 %v2351_v17 }
  0xce   :  { %542 = vmatpush.bf16.msrb.mxu3 %v2376_v26 }
  0xd0   :  { %v444_v63 = vpop.f32.mrf.mxu0 }
  0xd1   :  { %v457_v11 = vpop.f32.mrf.mxu1 }
  0xd2   :  { %543 = vmatpush.bf16.msrb.mxu3 %v2398_v30 }
  0xd6   :  { %544 = vmatpush.bf16.msrb.mxu3 %v2419_v34 }
  0xd9   :  { %545 = vmatmul.bf16.vlgmr.msrb.gmra.mxu3 %v528_v21 }
  0xda   :  { %654 = vmatpush.bf16.msra.mxu3 %v2257_v0 }
  0xde   :  { %655 = vmatpush.bf16.msra.mxu3 %v2274_v3 }
  0xe2   :  { %656 = vmatpush.bf16.msra.mxu3 %v2297_v7 }
  0xe6   :  { %657 = vmatpush.bf16.msra.mxu3 %v2324_v12 }
  0xe8   :  { %v559_v46 = vpop.f32.mrf.mxu0 }
  0xe9   :  { %v572_v48 = vpop.f32.mrf.mxu1 }
  0xea   :  { %658 = vmatpush.bf16.msra.mxu3 %v2351_v17 }
  0xee   :  { %659 = vmatpush.bf16.msra.mxu3 %v2376_v26 }
  0xf0   :  { %v561_v51 = vpop.f32.mrf.mxu0 }
  0xf1   :  { %v574_v52 = vpop.f32.mrf.mxu1 }
  0xf2   :  { %660 = vmatpush.bf16.msra.mxu3 %v2398_v30 }
  0xf6   :  { %661 = vmatpush.bf16.msra.mxu3 %v2419_v34 }
  0xf9   :  { %662 = vmatmul.bf16.vlgmr.msra.gmra.mxu3 %v645_v57 }
  0xfa   :  { %771 = vmatpush.bf16.msrb.mxu3 %v2257_v0 }
  0xfe   :  { %772 = vmatpush.bf16.msrb.mxu3 %v2274_v3 }
 0x102   :  { %773 = vmatpush.bf16.msrb.mxu3 %v2297_v7 }
 0x106   :  { %774 = vmatpush.bf16.msrb.mxu3 %v2324_v12 }
 0x10a   :  { %775 = vmatpush.bf16.msrb.mxu3 %v2351_v17 }
 0x10e   :  { %776 = vmatpush.bf16.msrb.mxu3 %v2376_v26 }
 0x112   :  { %777 = vmatpush.bf16.msrb.mxu3 %v2398_v30 }
 0x116   :  { %778 = vmatpush.bf16.msrb.mxu3 %v2419_v34 }
 0x11a   :  { %888 = vmatpush.bf16.msra.mxu3 %v2257_v0 }
 0x11e   :  { %889 = vmatpush.bf16.msra.mxu3 %v2274_v3 }
 0x122   :  { %890 = vmatpush.bf16.msra.mxu3 %v2297_v7 }
 0x126   :  { %891 = vmatpush.bf16.msra.mxu3 %v2324_v12 }
 0x12a   :  { %892 = vmatpush.bf16.msra.mxu3 %v2351_v17 }
 0x12e   :  { %893 = vmatpush.bf16.msra.mxu3 %v2376_v26 }
 0x132   :  { %894 = vmatpush.bf16.msra.mxu3 %v2398_v30 }
 0x136   :  { %895 = vmatpush.bf16.msra.mxu3 %v2419_v34 }
 0x13c   :  { %v2535_v24 = vpop.f32.mrf.mxu3 }
 0x13d   :  { %v406_v62 = vadd.f32 %v2143_v61, %v2535_v24 }
 0x144   :  { %v404_v25 = vpop.f32.mrf.mxu3 }
 0x14c   :  { %v429_v29 = vpop.f32.mrf.mxu3 }
 0x14d   :  { %v430_v33 = vadd.f32 %v2482_v39, %v429_v29 }
 0x14f   :  { %v443_v37 = vadd.f32 %v442_v59, %v430_v33  ;;  %v647_v59 = vld [vmem:[#allocation1 + $0x12] sm:$0xff] }
 0x150   :  { %688 = vmatmul.bf16.vlgmr.msrb.gmra.mxu1 %v647_v59 }
 0x151   :  { %v456_v38 = vadd.f32 %v455_v60, %v443_v37  ;;  %v648_v60 = vld [vmem:[#allocation1 + $0x1b] sm:$0xff]  ;;  %914 = vmatpush.bf16.msrb.mxu1 %v2267_v2 }
 0x153   :  { %v469_v40 = vadd.f32 %v468_v58, %v456_v38  ;;  %v646_v58 = vld [vmem:[#allocation1 + $0x9] sm:$0xff] }
 0x154   :  { %v431_v41 = vpop.f32.mrf.mxu3  ;;  %675 = vmatmul.bf16.vlgmr.msrb.gmra.mxu0 %v646_v58  ;;  %761 = vst [vmem:[#allocation1] ss:$9 sm:$0xff] %v1857_v56 }
 0x155   :  { %v472_v42 = vmax.f32 %v469_v40, 0.0  ;;  %901 = vmatpush.bf16.msrb.mxu0 %v2262_v1  ;;  %915 = vmatpush.bf16.msrb.mxu1 %v2285_v5  ;;  %v2105_v40 = vld [vmem:[%s2939_s24 + $0x78] sm:$0xff] }
 0x157   :  { %v473_v43 = vpack.c.bf16 %v472_v42, %v472_v42  ;;  %v2104_v42 = vld [vmem:[%s2939_s24 + $0x70] sm:$0xff] }
 0x159   :  { %1802 = vmatmul.msk.bf16.vlgmr.msra.gmra.mxu2 %vm389_vm1, %v473_v43  ;;  %902 = vmatpush.bf16.msrb.mxu0 %v2279_v4 }
 0x15a   :  { %631 = vmatpush.bf16.msra.mxu2 %v2101_v47  ;;  %916 = vmatpush.bf16.msrb.mxu1 %v2308_v9  ;;  %v2102_v47 = vld [vmem:[%s2939_s24 + $0x60] sm:$0xff] }
 0x15b   :  { %v764_v51 = vld [vmem:[#allocation1 + $0x12] sm:$0xff]  ;;  %v765_v52 = vld [vmem:[#allocation1 + $0x1b] sm:$0xff] }
 0x15c   :  { %v546_v45 = vpop.f32.mrf.mxu3 }
 0x15d   :  { %903 = vmatpush.bf16.msrb.mxu0 %v2302_v8  ;;  %v547_v16 = vadd.f32 %v2482_v39, %v546_v45 }
 0x15e   :  { %632 = vmatpush.bf16.msra.mxu2 %v2100_v49  ;;  %917 = vmatpush.bf16.msrb.mxu1 %v2335_v14  ;;  %v762_v49 = vld [vmem:[#allocation1] sm:$0xff] }
 0x15f   :  { %v560_v21 = vadd.f32 %v559_v46, %v547_v16  ;;  %v2103_v46 = vld [vmem:[%s2939_s24 + $0x68] sm:$0xff]  ;;  %779 = vmatmul.bf16.vlgmr.msrb.gmra.mxu3 %v762_v49 }
 0x160   :  { %805 = vmatmul.bf16.vlgmr.msra.gmra.mxu1 %v764_v51  ;;  %1005 = vmatpush.bf16.msrb.mxu3 %v2257_v0 }
 0x161   :  { %904 = vmatpush.bf16.msrb.mxu0 %v2329_v13  ;;  %v573_v22 = vadd.f32 %v572_v48, %v560_v21  ;;  %v1884_v48 = vld [vmem:[%s2938_s26 + $0x14] sm:$0xf] }
 0x162   :  { %633 = vmatpush.bf16.msra.mxu2 %v2099_v53  ;;  %918 = vmatpush.bf16.msrb.mxu1 %v2362_v19 }
 0x164   :  { %v548_v50 = vpop.f32.mrf.mxu3  ;;  %1006 = vmatpush.bf16.msrb.mxu3 %v2274_v3 }
 0x165   :  { %905 = vmatpush.bf16.msrb.mxu0 %v2356_v18  ;;  %v763_v50 = vld [vmem:[#allocation1 + $0x9] sm:$0xff] }
 0x166   :  { %634 = vmatpush.bf16.msra.mxu2 %v2098_v55  ;;  %919 = vmatpush.bf16.msrb.mxu1 %v2387_v28  ;;  %878 = vst [vmem:[#allocation1] ss:$9 sm:$0xff] %v1884_v48 }
 0x167   :  { %792 = vmatmul.bf16.vlgmr.msra.gmra.mxu0 %v763_v50 }
 0x168   :  { %1007 = vmatpush.bf16.msrb.mxu3 %v2297_v7 }
 0x169   :  { %1804 = vmatmul.msk.bf16.vlgmr.msrb.gmra.mxu2 %vm300_vm0, %v531_v44  ;;  %906 = vmatpush.bf16.msrb.mxu0 %v2381_v27 }
 0x16a   :  { %698 = vmatpush.bf16.msrb.mxu2 %v2290_v6  ;;  %920 = vmatpush.bf16.msrb.mxu1 %v2409_v32 }
 0x16c   :  { %1008 = vmatpush.bf16.msrb.mxu3 %v2324_v12 }
 0x16d   :  { %907 = vmatpush.bf16.msrb.mxu0 %v2403_v31 }
 0x16e   :  { %699 = vmatpush.bf16.msrb.mxu2 %v2314_v10  ;;  %921 = vmatpush.bf16.msrb.mxu1 %v2430_v36 }
 0x170   :  { %1009 = vmatpush.bf16.msrb.mxu3 %v2351_v17 }
 0x171   :  { %908 = vmatpush.bf16.msrb.mxu0 %v2424_v35 }
 0x172   :  { %700 = vmatpush.bf16.msrb.mxu2 %v2341_v15  ;;  %1031 = vmatpush.bf16.msra.mxu1 %v2267_v2 }
 0x174   :  { %1010 = vmatpush.bf16.msrb.mxu3 %v2376_v26 }
 0x175   :  { %1018 = vmatpush.bf16.msra.mxu0 %v2262_v1 }
 0x176   :  { %1032 = vmatpush.bf16.msra.mxu1 %v2285_v5 }
 0x178   :  { %1011 = vmatpush.bf16.msrb.mxu3 %v2398_v30 }
 0x179   :  { %1019 = vmatpush.bf16.msra.mxu0 %v2279_v4 }
 0x17a   :  { %1033 = vmatpush.bf16.msra.mxu1 %v2308_v9 }
 0x17c   :  { %v663_v41 = vpop.f32.mrf.mxu3  ;;  %1012 = vmatpush.bf16.msrb.mxu3 %v2419_v34 }
 0x17d   :  { %1020 = vmatpush.bf16.msra.mxu0 %v2302_v8  ;;  %v664_v55 = vadd.f32 %v2482_v39, %v663_v41  ;;  %v881_v41 = vld [vmem:[#allocation1 + $0x12] sm:$0xff] }
 0x17e   :  { %1034 = vmatpush.bf16.msra.mxu1 %v2335_v14 }
 0x17f   :  { %922 = vmatmul.bf16.vlgmr.msrb.gmra.mxu1 %v881_v41 }
 0x181   :  { %1021 = vmatpush.bf16.msra.mxu0 %v2329_v13 }
 0x182   :  { %1035 = vmatpush.bf16.msra.mxu1 %v2362_v19 }
 0x184   :  { %v665_v45 = vpop.f32.mrf.mxu3 }
 0x185   :  { %1022 = vmatpush.bf16.msra.mxu0 %v2356_v18 }
 0x186   :  { %1036 = vmatpush.bf16.msra.mxu1 %v2387_v28 }
 0x189   :  { %1023 = vmatpush.bf16.msra.mxu0 %v2381_v27 }
 0x18a   :  { %1037 = vmatpush.bf16.msra.mxu1 %v2409_v32 }
 0x18d   :  { %1024 = vmatpush.bf16.msra.mxu0 %v2403_v31 }
 0x18e   :  { %1038 = vmatpush.bf16.msra.mxu1 %v2430_v36 }
 0x191   :  { %1025 = vmatpush.bf16.msra.mxu0 %v2424_v35 }
 0x192   :  { %1148 = vmatpush.bf16.msrb.mxu1 %v2267_v2 }
 0x196   :  { %1149 = vmatpush.bf16.msrb.mxu1 %v2285_v5 }
 0x19a   :  { %1150 = vmatpush.bf16.msrb.mxu1 %v2308_v9 }
 0x19e   :  { %1151 = vmatpush.bf16.msrb.mxu1 %v2335_v14 }
 0x1a2   :  { %1152 = vmatpush.bf16.msrb.mxu1 %v2362_v19 }
 0x1a6   :  { %1153 = vmatpush.bf16.msrb.mxu1 %v2387_v28 }
 0x1aa   :  { %1154 = vmatpush.bf16.msrb.mxu1 %v2409_v32 }
 0x1ae   :  { %1155 = vmatpush.bf16.msrb.mxu1 %v2430_v36 }
 0x1cd   :  { %v689_v38 = vpop.f32.mrf.mxu1 }
 0x1d1   :  { %v676_v37 = vpop.f32.mrf.mxu0 }
 0x1d2   :  { %v677_v57 = vadd.f32 %v676_v37, %v664_v55  ;;  %v1911_v37 = vld [vmem:[%s2938_s26 + $0x18] sm:$0xf] }
 0x1d4   :  { %v690_v58 = vadd.f32 %v689_v38, %v677_v57  ;;  %v879_v38 = vld [vmem:[#allocation1] sm:$0xff] }
 0x1d5   :  { %v691_v44 = vpop.f32.mrf.mxu1  ;;  %896 = vmatmul.bf16.vlgmr.msra.gmra.mxu3 %v879_v38 }
 0x1d6   :  { %1122 = vmatpush.bf16.msra.mxu3 %v2257_v0 }
 0x1d9   :  { %v678_v43 = vpop.f32.mrf.mxu0 }
 0x1da   :  { %1123 = vmatpush.bf16.msra.mxu3 %v2274_v3 }
 0x1dc   :  { %v519_v63 = vpop.f32.mrf.mxu2 }
 0x1dd   :  { %v2596_v11 = vadd.f32 %v519_v63, %v406_v62  ;;  %v806_v16 = vpop.f32.mrf.mxu1 }
 0x1de   :  { %1124 = vmatpush.bf16.msra.mxu3 %v2297_v7 }
 0x1e2   :  { %v780_v21 = vpop.f32.mrf.mxu3  ;;  %1125 = vmatpush.bf16.msra.mxu3 %v2324_v12 }
 0x1e3   :  { %v781_v45 = vadd.f32 %v2482_v39, %v780_v21 }
 0x1e4   :  { %v521_v20 = vpop.f32.mrf.mxu2 }
 0x1e5   :  { %v2109_v20 = vld [vmem:[%s2939_s24 + $0x98] sm:$0xff] }
 0x1e6   :  { %1126 = vmatpush.bf16.msra.mxu3 %v2351_v17 }
 0x1ea   :  { %1127 = vmatpush.bf16.msra.mxu3 %v2376_v26 }
 0x1ec   :  { %v585_v23 = vpop.f32.mrf.mxu2 }
 0x1ed   :  { %v586_v24 = vadd.f32 %v585_v23, %v573_v22  ;;  %v2108_v22 = vld [vmem:[%s2939_s24 + $0x90] sm:$0xff] }
 0x1ee   :  { %1128 = vmatpush.bf16.msra.mxu3 %v2398_v30 }
 0x1ef   :  { %v589_v25 = vmax.f32 %v586_v24, 0.0  ;;  %v808_v24 = vpop.f32.mrf.mxu1 }
 0x1f1   :  { %v590_v29 = vpack.c.bf16 %v589_v25, %v589_v25  ;;  %v782_v25 = vpop.f32.mrf.mxu3 }
 0x1f2   :  { %1129 = vmatpush.bf16.msra.mxu3 %v2419_v34 }
 0x1f3   :  { %1829 = vmatmul.msk.bf16.vlgmr.msra.gmra.mxu2 %vm389_vm1, %v590_v29  ;;  %v2107_v29 = vld [vmem:[%s2939_s24 + $0x88] sm:$0xff] }
 0x1f4   :  { %v587_v33 = vpop.f32.mrf.mxu2  ;;  %748 = vmatpush.bf16.msra.mxu2 %v2105_v40  ;;  %v880_v40 = vld [vmem:[#allocation1 + $0x9] sm:$0xff] }
 0x1f5   :  { %v2106_v33 = vld [vmem:[%s2939_s24 + $0x80] sm:$0xff]  ;;  %909 = vmatmul.bf16.vlgmr.msrb.gmra.mxu0 %v880_v40 }
 0x1f6   :  { %1135 = vmatpush.bf16.msrb.mxu0 %v2262_v1 }
 0x1f8   :  { %749 = vmatpush.bf16.msra.mxu2 %v2104_v42  ;;  %v882_v42 = vld [vmem:[#allocation1 + $0x1b] sm:$0xff] }
 0x1f9   :  { %995 = vst [vmem:[#allocation1] ss:$9 sm:$0xff] %v1911_v37 }
 0x1fa   :  { %1136 = vmatpush.bf16.msrb.mxu0 %v2279_v4 }
 0x1fc   :  { %750 = vmatpush.bf16.msra.mxu2 %v2103_v46  ;;  %v923_v55 = vpop.f32.mrf.mxu1 }
 0x1fe   :  { %1137 = vmatpush.bf16.msrb.mxu0 %v2302_v8 }
 0x200   :  { %751 = vmatpush.bf16.msra.mxu2 %v2102_v47  ;;  %v998_v21 = vld [vmem:[#allocation1 + $0x12] sm:$0xff] }
 0x201   :  { %1039 = vmatmul.bf16.vlgmr.msra.gmra.mxu1 %v998_v21 }
 0x202   :  { %1138 = vmatpush.bf16.msrb.mxu0 %v2329_v13  ;;  %1265 = vmatpush.bf16.msra.mxu1 %v2267_v2 }
 0x203   :  { %1831 = vmatmul.msk.bf16.vlgmr.msrb.gmra.mxu2 %vm300_vm0, %v648_v60 }
 0x204   :  { %815 = vmatpush.bf16.msrb.mxu2 %v2290_v6 }
 0x206   :  { %1139 = vmatpush.bf16.msrb.mxu0 %v2356_v18  ;;  %1266 = vmatpush.bf16.msra.mxu1 %v2285_v5 }
 0x208   :  { %816 = vmatpush.bf16.msrb.mxu2 %v2314_v10 }
 0x20a   :  { %1140 = vmatpush.bf16.msrb.mxu0 %v2381_v27  ;;  %1267 = vmatpush.bf16.msra.mxu1 %v2308_v9 }
 0x20c   :  { %817 = vmatpush.bf16.msrb.mxu2 %v2341_v15 }
 0x20e   :  { %1141 = vmatpush.bf16.msrb.mxu0 %v2403_v31  ;;  %1268 = vmatpush.bf16.msra.mxu1 %v2335_v14  ;;  %v2117_v14 = vld [vmem:[%s2939_s24 + $0xd8] sm:$0xff] }
 0x212   :  { %1142 = vmatpush.bf16.msrb.mxu0 %v2424_v35  ;;  %1269 = vmatpush.bf16.msra.mxu1 %v2362_v19 }
 0x216   :  { %1270 = vmatpush.bf16.msra.mxu1 %v2387_v28  ;;  %v2115_v28 = vld [vmem:[%s2939_s24 + $0xc8] sm:$0xff] }
 0x21a   :  { %1271 = vmatpush.bf16.msra.mxu1 %v2409_v32 }
 0x21e   :  { %1272 = vmatpush.bf16.msra.mxu1 %v2430_v36 }
 0x258   :  { %v897_v57 = vpop.f32.mrf.mxu3 }
 0x276   :  { %v636_v53 = vpop.f32.mrf.mxu2 }
 0x277   :  { %v2644_v54 = vadd.f32 %v636_v53, %v2596_v11  ;;  %v793_v11 = vpop.f32.mrf.mxu0 }
 0x278   :  { %v794_v47 = vadd.f32 %v793_v11, %v781_v45  ;;  %v1938_v11 = vld [vmem:[%s2938_s26 + $0x1c] sm:$0xf] }
 0x27a   :  { %v807_v48 = vadd.f32 %v806_v16, %v794_v47  ;;  %v996_v16 = vld [vmem:[#allocation1] sm:$0xff]  ;;  %v2120_v47 = vld [vmem:[%s2939_s24 + $0xf0] sm:$0xff] }
 0x27b   :  { %1013 = vmatmul.bf16.vlgmr.msrb.gmra.mxu3 %v996_v16 }
 0x27c   :  { %1239 = vmatpush.bf16.msrb.mxu3 %v2257_v0  ;;  %v898_v0 = vadd.f32 %v2482_v39, %v897_v57  ;;  %v2152_v57 = vld [vmem:[%s2937_s20 + $0xc8] sm:$0xff] }
 0x27e   :  { %v638_v56 = vpop.f32.mrf.mxu2 }
 0x27f   :  { %v795_v23 = vpop.f32.mrf.mxu0  ;;  %v2113_v56 = vld [vmem:[%s2939_s24 + $0xb8] sm:$0xff] }
 0x280   :  { %1240 = vmatpush.bf16.msrb.mxu3 %v2274_v3 }
 0x284   :  { %1241 = vmatpush.bf16.msrb.mxu3 %v2297_v7 }
 0x286   :  { %v702_v59 = vpop.f32.mrf.mxu2 }
 0x287   :  { %v703_v60 = vadd.f32 %v702_v59, %v690_v58  ;;  %v2112_v58 = vld [vmem:[%s2939_s24 + $0xb0] sm:$0xff] }
 0x288   :  { %1242 = vmatpush.bf16.msrb.mxu3 %v2324_v12 }
 0x289   :  { %v706_v61 = vmax.f32 %v703_v60, 0.0  ;;  %v925_v60 = vpop.f32.mrf.mxu1 }
 0x28b   :  { %v707_v62 = vpack.c.bf16 %v706_v61, %v706_v61  ;;  %v899_v61 = vpop.f32.mrf.mxu3 }
 0x28c   :  { %1243 = vmatpush.bf16.msrb.mxu3 %v2351_v17 }
 0x28d   :  { %1856 = vmatmul.msk.bf16.vlgmr.msra.gmra.mxu2 %vm389_vm1, %v707_v62  ;;  %v2111_v62 = vld [vmem:[%s2939_s24 + $0xa8] sm:$0xff] }
 0x28e   :  { %v704_v63 = vpop.f32.mrf.mxu2  ;;  %865 = vmatpush.bf16.msra.mxu2 %v2109_v20  ;;  %v997_v20 = vld [vmem:[#allocation1 + $0x9] sm:$0xff] }
 0x28f   :  { %v2110_v63 = vld [vmem:[%s2939_s24 + $0xa0] sm:$0xff]  ;;  %1026 = vmatmul.bf16.vlgmr.msra.gmra.mxu0 %v997_v20 }
 0x290   :  { %1252 = vmatpush.bf16.msra.mxu0 %v2262_v1  ;;  %1244 = vmatpush.bf16.msrb.mxu3 %v2376_v26 }
 0x292   :  { %866 = vmatpush.bf16.msra.mxu2 %v2108_v22  ;;  %v999_v22 = vld [vmem:[#allocation1 + $0x1b] sm:$0xff] }
 0x293   :  { %1112 = vst [vmem:[#allocation1] ss:$9 sm:$0xff] %v1938_v11 }
 0x294   :  { %1253 = vmatpush.bf16.msra.mxu0 %v2279_v4  ;;  %1245 = vmatpush.bf16.msrb.mxu3 %v2398_v30  ;;  %v2114_v30 = vld [vmem:[%s2939_s24 + $0xc0] sm:$0xff] }
 0x296   :  { %867 = vmatpush.bf16.msra.mxu2 %v2107_v29 }
 0x298   :  { %1254 = vmatpush.bf16.msra.mxu0 %v2302_v8  ;;  %1246 = vmatpush.bf16.msrb.mxu3 %v2419_v34 }
 0x29a   :  { %868 = vmatpush.bf16.msra.mxu2 %v2106_v33  ;;  %v1113_v32 = vld [vmem:[#allocation1] sm:$0xff]  ;;  %v1114_v34 = vld [vmem:[#allocation1 + $0x9] sm:$0xff] }
 0x29b   :  { %1130 = vmatmul.bf16.vlgmr.msra.gmra.mxu3 %v1113_v32  ;;  %v1116_v36 = vld [vmem:[#allocation1 + $0x1b] sm:$0xff] }
 0x29c   :  { %1255 = vmatpush.bf16.msra.mxu0 %v2329_v13  ;;  %v1040_v13 = vpop.f32.mrf.mxu1 }
 0x29d   :  { %1858 = vmatmul.msk.bf16.vlgmr.msrb.gmra.mxu2 %vm300_vm0, %v765_v52 }
 0x29e   :  { %932 = vmatpush.bf16.msrb.mxu2 %v2290_v6 }
 0x29f   :  { %1143 = vmatmul.bf16.vlgmr.msrb.gmra.mxu0 %v1114_v34 }
 0x2a0   :  { %1256 = vmatpush.bf16.msra.mxu0 %v2356_v18  ;;  %v2116_v18 = vld [vmem:[%s2939_s24 + $0xd0] sm:$0xff] }
 0x2a2   :  { %933 = vmatpush.bf16.msrb.mxu2 %v2314_v10 }
 0x2a4   :  { %1257 = vmatpush.bf16.msra.mxu0 %v2381_v27  ;;  %v1042_v26 = vpop.f32.mrf.mxu1 }
 0x2a6   :  { %934 = vmatpush.bf16.msrb.mxu2 %v2341_v15 }
 0x2a8   :  { %1258 = vmatpush.bf16.msra.mxu0 %v2403_v31  ;;  %v1965_v31 = vld [vmem:[%s2938_s26 + $0x20] sm:$0xf] }
 0x2ac   :  { %1259 = vmatpush.bf16.msra.mxu0 %v2424_v35  ;;  %v1115_v35 = vld [vmem:[#allocation1 + $0x12] sm:$0xff] }
 0x2ad   :  { %1156 = vmatmul.bf16.vlgmr.msrb.gmra.mxu1 %v1115_v35  ;;  %1229 = vst [vmem:[#allocation1] ss:$9 sm:$0xff] %v1965_v31 }
 0x2fe   :  { %v1014_v17 = vpop.f32.mrf.mxu3 }
 0x306   :  { %v1016_v27 = vpop.f32.mrf.mxu3 }
 0x310   :  { %v753_v43 = vpop.f32.mrf.mxu2 }
 0x311   :  { %v2692_v44 = vadd.f32 %v753_v43, %v2644_v54  ;;  %v910_v54 = vpop.f32.mrf.mxu0 }
 0x312   :  { %v911_v2 = vadd.f32 %v910_v54, %v898_v0  ;;  %v1230_v54 = vld [vmem:[#allocation1] sm:$0xff] }
 0x313   :  { %1247 = vmatmul.bf16.vlgmr.msrb.gmra.mxu3 %v1230_v54  ;;  %v1345_v0 = vld [vmem:[%s2918_s6] sm:$0x3] }
 0x314   :  { %v924_v3 = vadd.f32 %v923_v55, %v911_v2  ;;  %v1231_v55 = vld [vmem:[#allocation1 + $0x9] sm:$0xff]  ;;  %1992 = vmatpush.msk.msra.mxu3 %vm1354_vm2, %v1345_v0 }
 0x315   :  { %1260 = vmatmul.bf16.vlgmr.msra.gmra.mxu0 %v1231_v55 }
 0x318   :  { %v755_v46 = vpop.f32.mrf.mxu2 }
 0x319   :  { %v912_v59 = vpop.f32.mrf.mxu0 }
 0x31e   :  { %v1131_v46 = vpop.f32.mrf.mxu3 }
 0x31f   :  { %v1132_v61 = vadd.f32 %v2482_v39, %v1131_v46 }
 0x320   :  { %v819_v49 = vpop.f32.mrf.mxu2 }
 0x321   :  { %v820_v50 = vadd.f32 %v819_v49, %v807_v48  ;;  %v1027_v12 = vpop.f32.mrf.mxu0 }
 0x323   :  { %v823_v51 = vmax.f32 %v820_v50, 0.0 }
 0x325   :  { %v824_v52 = vpack.c.bf16 %v823_v51, %v823_v51  ;;  %v2119_v51 = vld [vmem:[%s2939_s24 + $0xe8] sm:$0xff] }
 0x326   :  { %v1133_v50 = vpop.f32.mrf.mxu3 }
 0x327   :  { %1883 = vmatmul.msk.bf16.vlgmr.msra.gmra.mxu2 %vm389_vm1, %v824_v52  ;;  %v2118_v52 = vld [vmem:[%s2939_s24 + $0xe0] sm:$0xff] }
 0x328   :  { %v821_v53 = vpop.f32.mrf.mxu2  ;;  %982 = vmatpush.bf16.msra.mxu2 %v2113_v56  ;;  %v1232_v56 = vld [vmem:[#allocation1 + $0x12] sm:$0xff]  ;;  %v2136_v50 = vld [vmem:[%s2923_s13 + $0x20] sm:$0xff] }
 0x329   :  { %v1029_v19 = vpop.f32.mrf.mxu0  ;;  %v2151_v53 = vld [vmem:[%s2937_s20 + $0xd0] sm:$0xff]  ;;  %1273 = vmatmul.bf16.vlgmr.msra.gmra.mxu1 %v1232_v56  ;;  %v2135_v56 = vld [vmem:[%s2923_s13 + $0x18] sm:$0xff] }
 0x32a   :  { %v1157_v45 = vpop.f32.mrf.mxu1 }
 0x32c   :  { %983 = vmatpush.bf16.msra.mxu2 %v2112_v58  ;;  %v2153_v58 = vld [vmem:[%s2937_s20 + $0xc0] sm:$0xff] }
 0x330   :  { %984 = vmatpush.bf16.msra.mxu2 %v2111_v62 }
 0x332   :  { %v1159_v49 = vpop.f32.mrf.mxu1 }
 0x333   :  { %v2137_v49 = vld [vmem:[%s2923_s13 + $0x28] sm:$0xff] }
 0x334   :  { %985 = vmatpush.bf16.msra.mxu2 %v2110_v63 }
 0x337   :  { %1885 = vmatmul.msk.bf16.vlgmr.msrb.gmra.mxu2 %vm300_vm0, %v882_v42 }
 0x338   :  { %1049 = vmatpush.bf16.msrb.mxu2 %v2290_v6 }
 0x33c   :  { %1050 = vmatpush.bf16.msrb.mxu2 %v2314_v10 }
 0x340   :  { %1051 = vmatpush.bf16.msrb.mxu2 %v2341_v15 }
 0x3a6   :  { %v1274_v2 = vpop.f32.mrf.mxu1 }
 0x3aa   :  { %v870_v23 = vpop.f32.mrf.mxu2 }
 0x3ab   :  { %v874_v24 = vadd.f32 %v870_v23, %v2692_v44  ;;  %v1144_v44 = vpop.f32.mrf.mxu0 }
 0x3ac   :  { %v1145_v63 = vadd.f32 %v1144_v44, %v1132_v61  ;;  %v2132_v61 = vld [vmem:[%s2923_s13] sm:$0xff] }
 0x3ae   :  { %v1158_v11 = vadd.f32 %v1157_v45, %v1145_v63  ;;  %v2126_v45 = vld [vmem:[%s2921_s10] sm:$0xff] }
 0x3b2   :  { %v872_v1 = vpop.f32.mrf.mxu2 }
 0x3b3   :  { %v1146_v48 = vpop.f32.mrf.mxu0 }
 0x3ba   :  { %v936_v4 = vpop.f32.mrf.mxu2 }
 0x3bb   :  { %v937_v5 = vadd.f32 %v936_v4, %v924_v3  ;;  %v1261_v1 = vpop.f32.mrf.mxu0  ;;  %v2125_v3 = vld [vmem:[%s2939_s24 + $0x118] sm:$0xff]  ;;  %v1248_v4 = vpop.f32.mrf.mxu3 }
 0x3bc   :  { %v1249_v19 = vadd.f32 %v2482_v39, %v1248_v4  ;;  %v2138_v4 = vld [vmem:[%s2925_s15] sm:$0xff] }
 0x3bd   :  { %v940_v7 = vmax.f32 %v937_v5, 0.0  ;;  %v2124_v5 = vld [vmem:[%s2939_s24 + $0x110] sm:$0xff] }
 0x3be   :  { %v1262_v27 = vadd.f32 %v1261_v1, %v1249_v19 }
 0x3bf   :  { %v941_v8 = vpack.c.bf16 %v940_v7, %v940_v7  ;;  %v1344_v7 = vld [vmem:[%s2919_s1] sm:$0x3] }
 0x3c0   :  { %1993 = vmatmul.msk.f32.vlgmr.msra.gmra.mxu3 %vm1350_vm3, %v1344_v7  ;;  %v2141_v7 = vld [vmem:[%s2927_s17] sm:$0x10] }
 0x3c1   :  { %1910 = vmatmul.msk.bf16.vlgmr.msra.gmra.mxu2 %vm389_vm1, %v941_v8 }
 0x3c2   :  { %v938_v9 = vpop.f32.mrf.mxu2  ;;  %1099 = vmatpush.bf16.msra.mxu2 %v2117_v14  ;;  %v2122_v14 = vld [vmem:[%s2939_s24 + $0x100] sm:$0xff] }
 0x3c3   :  { %v1263_v8 = vpop.f32.mrf.mxu0  ;;  %v1276_v9 = vpop.f32.mrf.mxu1 }
 0x3c6   :  { %1100 = vmatpush.bf16.msra.mxu2 %v2116_v18 }
 0x3ca   :  { %1101 = vmatpush.bf16.msra.mxu2 %v2115_v28  ;;  %v1275_v28 = vadd.f32 %v1274_v2, %v1262_v27  ;;  %v2149_v27 = vld [vmem:[%s2926_s16] ss:$0 sm:$0xff] }
 0x3ce   :  { %1102 = vmatpush.bf16.msra.mxu2 %v2114_v30 }
 0x3d1   :  { %1912 = vmatmul.msk.bf16.vlgmr.msrb.gmra.mxu2 %vm300_vm0, %v999_v22 }
 0x3d2   :  { %1166 = vmatpush.bf16.msrb.mxu2 %v2290_v6  ;;  %v1015_v6 = vadd.f32 %v2482_v39, %v1014_v17  ;;  %v2128_v39 = vld [vmem:[%s2921_s10 + $0x10] sm:$0xff] }
 0x3d4   :  { %v1028_v37 = vadd.f32 %v1027_v12, %v1015_v6  ;;  %v1250_v12 = vpop.f32.mrf.mxu3  ;;  %v2127_v6 = vld [vmem:[%s2921_s10 + $0x8] sm:$0xff] }
 0x3d5   :  { %v2148_v12 = vld [vmem:[%s2924_s14] ss:$0 sm:$0xff] }
 0x3d6   :  { %1167 = vmatpush.bf16.msrb.mxu2 %v2314_v10  ;;  %v1041_v38 = vadd.f32 %v1040_v13, %v1028_v37  ;;  %v2123_v13 = vld [vmem:[%s2939_s24 + $0x108] sm:$0xff] }
 0x3da   :  { %1168 = vmatpush.bf16.msrb.mxu2 %v2341_v15  ;;  %v2121_v15 = vld [vmem:[%s2939_s24 + $0xf8] sm:$0xff] }
 0x443   :  { %v1375_v37 = vpop.f32.mrf.mxu3 }
 0x444   :  { %v987_v25 = vpop.f32.mrf.mxu2 }
 0x445   :  { %v991_v29 = vadd.f32 %v987_v25, %v874_v24  ;;  %v1233_v24 = vld [vmem:[#allocation1 + $0x1b] sm:$0xff] }
 0x446   :  { %v2129_v25 = vld [vmem:[%s2921_s10 + $0x18] sm:$0xff] }
 0x447   :  { %1463 = vmatpush.bf16.msrb.mxu1 %v2129_v25 }
 0x44b   :  { %1464 = vmatpush.bf16.msrb.mxu1 %v2128_v39 }
 0x44c   :  { %v989_v33 = vpop.f32.mrf.mxu2 }
 0x44d   :  { %v2144_v33 = vld [vmem:[%s2915_s7] ss:$0 sm:$0xff] }
 0x44f   :  { %1465 = vmatpush.bf16.msrb.mxu1 %v2127_v6 }
 0x453   :  { %1466 = vmatpush.bf16.msrb.mxu1 %v2126_v45 }
 0x454   :  { %v1053_v40 = vpop.f32.mrf.mxu2 }
 0x455   :  { %v1054_v41 = vadd.f32 %v1053_v40, %v1041_v38  ;;  %v1376_v38 = vadd.f32 %v2144_v33, %v1375_v37  ;;  %v2145_v40 = vld [vmem:[%s2916_s8] ss:$0 sm:$0xff] }
 0x457   :  { %v1057_v42 = vmax.f32 %v1054_v41, 0.0  ;;  %v1378_v41 = vmax.f32 %v1376_v38, 0.0 }
 0x459   :  { %v1058_v43 = vpack.c.bf16 %v1057_v42, %v1057_v42  ;;  %v2146_v42 = vld [vmem:[%s2917_s9] ss:$0 sm:$0xff] }
 0x45b   :  { %1937 = vmatmul.msk.bf16.vlgmr.msra.gmra.mxu2 %vm389_vm1, %v1058_v43  ;;  %v1383_v43 = vmul.f32 %v2145_v40, %v1378_v41 }
 0x45c   :  { %v1055_v10 = vpop.f32.mrf.mxu2  ;;  %1216 = vmatpush.bf16.msra.mxu2 %v2121_v15  ;;  %v1491_v15 = vld [vmem:[%s2923_s13 + $0x30] sm:$0x3] }
 0x45d   :  { %v1388_v10 = vadd.f32 %v2146_v42, %v1383_v43  ;;  %v1521_v46 = vunpack.c.l.b16 %v1491_v15 }
 0x45f   :  { %v1398_v44 = vpack.c.bf16 %v1388_v10, %v1388_v10 }
 0x460   :  { %1217 = vmatpush.bf16.msra.mxu2 %v2120_v47  ;;  %v1528_v47 = vpack.c.b16 %v1521_v46, %v1521_v46 }
 0x462   :  { %v1540_v48 = vsel %vm1354_vm2, %v1528_v47, 0 }
 0x464   :  { %1218 = vmatpush.bf16.msra.mxu2 %v2119_v51 }
 0x468   :  { %1219 = vmatpush.bf16.msra.mxu2 %v2118_v52 }
 0x46b   :  { %1939 = vmatmul.msk.bf16.vlgmr.msrb.gmra.mxu2 %vm300_vm0, %v1116_v36  ;;  %v2131_v36 = vld [vmem:[%s2920_s11 + $0x8] sm:$0xff] }
 0x46c   :  { %1283 = vmatpush.bf16.msrb.mxu2 %v2151_v53  ;;  %1425 = vmatpush.bf16.msrb.mxu0 %v2131_v36 }
 0x470   :  { %1284 = vmatpush.bf16.msrb.mxu2 %v2152_v57  ;;  %v2134_v57 = vld [vmem:[%s2923_s13 + $0x10] sm:$0xff] }
 0x474   :  { %1285 = vmatpush.bf16.msrb.mxu2 %v2153_v58 }
 0x4de   :  { %v1104_v59 = vpop.f32.mrf.mxu2 }
 0x4df   :  { %v1108_v60 = vadd.f32 %v1104_v59, %v991_v29  ;;  %v2130_v29 = vld [vmem:[%s2920_s11] sm:$0xff] }
 0x4e0   :  { %1426 = vmatpush.bf16.msrb.mxu0 %v2130_v29 }
 0x4e3   :  { %2002 = vmatmul.msk.bf16.vlgmr.msrb.gmra.mxu0 %vm1415_vm4, %v1398_v44 }
 0x4e6   :  { %v1106_v62 = vpop.f32.mrf.mxu2 }
 0x4e7   :  { %v1563_v62 = vld [vmem:[%s2925_s15 + $0x18] sm:$0x1] }
 0x4e8   :  { %v1581_v63 = vunpack.c.l.b16 %v1563_v62 }
 0x4ee   :  { %v1170_v16 = vpop.f32.mrf.mxu2 }
 0x4ef   :  { %v1171_v20 = vadd.f32 %v1170_v16, %v1158_v11  ;;  %v1585_v11 = vpack.c.b16 %v1581_v63, %v1581_v63 }
 0x4f1   :  { %v1174_v21 = vmax.f32 %v1171_v20, 0.0  ;;  %v1595_v16 = vsel %vm1593_vm5, %v1585_v11, 0  ;;  %v2140_v20 = vld [vmem:[%s2925_s15 + $0x10] sm:$0xff] }
 0x4f2   :  { %1601 = vmatpush.bf16.msrb.mxu3 %v1595_v16 }
 0x4f3   :  { %v1175_v22 = vpack.c.bf16 %v1174_v21, %v1174_v21  ;;  %v2147_v21 = vld [vmem:[%s2922_s12] ss:$0 sm:$0xff] }
 0x4f5   :  { %1964 = vmatmul.msk.bf16.vlgmr.msra.gmra.mxu2 %vm389_vm1, %v1175_v22 }
 0x4f6   :  { %v1172_v23 = vpop.f32.mrf.mxu2  ;;  %1333 = vmatpush.bf16.msra.mxu2 %v2125_v3  ;;  %1602 = vmatpush.bf16.msrb.mxu3 %v2140_v20  ;;  %v2139_v3 = vld [vmem:[%s2925_s15 + $0x8] sm:$0xff] }
 0x4fa   :  { %1334 = vmatpush.bf16.msra.mxu2 %v2124_v5  ;;  %1603 = vmatpush.bf16.msrb.mxu3 %v2139_v3  ;;  %v2060_v5 = vld [vmem:[%s2927_s17] sm:$0xf] }
 0x4fb   :  { %v2061_v8 = vor.u32 %v2141_v7, %v2060_v5 }
 0x4fd   :  { %v1629_v9 = vsel %vm1627_vm7, %v2061_v8, 0 }
 0x4fe   :  { %1335 = vmatpush.bf16.msra.mxu2 %v2123_v13  ;;  %1604 = vmatpush.bf16.msrb.mxu3 %v2138_v4 }
 0x4ff   :  { %1638 = vmatpush.bf16.msra.mxu0 %v1629_v9 }
 0x502   :  { %1336 = vmatpush.bf16.msra.mxu2 %v2122_v14 }
 0x505   :  { %1966 = vmatmul.msk.bf16.vlgmr.msrb.gmra.mxu2 %vm300_vm0, %v1233_v24 }
 0x506   :  { %1543 = vmatpush.bf16.msrb.mxu2 %v1540_v48 }
 0x50a   :  { %1544 = vmatpush.bf16.msrb.mxu2 %v2137_v49 }
 0x50e   :  { %1545 = vmatpush.bf16.msrb.mxu2 %v2136_v50 }
 0x512   :  { %1546 = vmatpush.bf16.msrb.mxu2 %v2135_v56 }
 0x516   :  { %1547 = vmatpush.bf16.msrb.mxu2 %v2134_v57 }
 0x560   :  { %v1428_v58 = vpop.f32.mrf.mxu0 }
 0x568   :  { %v1430_v59 = vpop.f32.mrf.mxu0 }
 0x578   :  { %v1221_v17 = vpop.f32.mrf.mxu2 }
 0x579   :  { %v1225_v18 = vadd.f32 %v1221_v17, %v1108_v60  ;;  %v2133_v60 = vld [vmem:[%s2923_s13 + $0x8] sm:$0xff] }
 0x57a   :  { %1548 = vmatpush.bf16.msrb.mxu2 %v2133_v60 }
 0x57e   :  { %1549 = vmatpush.bf16.msrb.mxu2 %v2132_v61 }
 0x580   :  { %v1223_v26 = vpop.f32.mrf.mxu2 }
 0x581   :  { %v24_v26 = vstv %s2928_s18 }
 0x582   :  { %25 = vst [vmem:[#allocation2] sm:$0x1] %v24_v26 }
 0x588   :  { %v1287_v30 = vpop.f32.mrf.mxu2 }
 0x589   :  { %v1288_v31 = vadd.f32 %v1287_v30, %v1275_v28 }
 0x58b   :  { %v1291_v32 = vmax.f32 %v1288_v31, 0.0 }
 0x58d   :  { %v1292_v34 = vpack.c.bf16 %v1291_v32, %v1291_v32 }
 0x58f   :  { %1991 = vmatmul.msk.bf16.vlgmr.msra.gmra.mxu2 %vm389_vm1, %v1292_v34 }
 0x590   :  { %v1289_v35 = vpop.f32.mrf.mxu2 }
 0x591   :  { %v2150_v35 = vld [vmem:[#allocation2] ss:$0 sm:$0xff] }
 0x612   :  { %v1338_v51 = vpop.f32.mrf.mxu2 }
 0x613   :  { %v1342_v52 = vadd.f32 %v1338_v51, %v1225_v18 }
 0x615   :  { %v1343_v53 = vmax.f32 %v1342_v52, 0.0 }
 0x617   :  { %v1389_v54 = vpack.c.bf16 %v1343_v53, %v1343_v53 }
 0x619   :  { %2019 = vmatmul.msk.bf16.vlgmr.msrb.gmra.mxu1 %vm389_vm1, %v1389_v54 }
 0x61a   :  { %v1340_v55 = vpop.f32.mrf.mxu2 }
 0x696   :  { %v1468_v22 = vpop.f32.mrf.mxu1 }
 0x697   :  { %v1469_v23 = vadd.f32 %v1468_v22, %v1428_v58 }
 0x699   :  { %v1476_v24 = vadd.f32 %v2147_v21, %v1469_v23 }
 0x69b   :  { %v1477_v0 = vmax.f32 %v1476_v24, 0.0 }
 0x69d   :  { %v1478_v1 = vpack.c.bf16 %v1477_v0, %v1477_v0 }
 0x69e   :  { %v1470_v2 = vpop.f32.mrf.mxu1 }
 0x69f   :  { %2044 = vmatmul.msk.bf16.vlgmr.msrb.gmra.mxu2 %vm1535_vm6, %v1478_v1 }
 0x722   :  { %v1551_v13 = vpop.f32.mrf.mxu2 }
 0x723   :  { %v1552_v14 = vadd.f32 %v2148_v12, %v1551_v13 }
 0x725   :  { %v1555_v17 = vmax.f32 %v1552_v14, 0.0 }
 0x727   :  { %v1556_v18 = vpack.c.bf16 %v1555_v17, %v1555_v17 }
 0x729   :  { %2057 = vmatmul.msk.bf16.vlgmr.msrb.gmra.mxu3 %vm1589_vm8, %v1556_v18 }
 0x72a   :  { %v1553_v19 = vpop.f32.mrf.mxu2 }
 0x7ac   :  { %v1606_v28 = vpop.f32.mrf.mxu3 }
 0x7ad   :  { %v1607_v30 = vadd.f32 %v2149_v27, %v1606_v28 }
 0x7af   :  { %v1610_v31 = vmax.f32 %v1607_v30, 0.0 }
 0x7b1   :  { %v1611_v32 = vpack.c.bf16 %v1610_v31, %v1610_v31 }
 0x7b3   :  { %2062 = vmatmul.msk.bf16.vlgmr.msra.gmra.mxu0 %vm1623_vm9, %v1611_v32 }
 0x7b4   :  { %v1608_v34 = vpop.f32.mrf.mxu3 }
 0x830   :  { %v1640_v36 = vpop.f32.mrf.mxu0 }
 0x831   :  { %v1641_v25 = vadd.f32 %v2150_v35, %v1640_v36 }
 0x833   :  { %1645 = vst.msk [vmem:[%s2929_s19] sm:$0x3] %vm1644_vm10, %v1641_v25 }
 0x838   :  { %v1642_v39 = vpop.f32.mrf.mxu0 }

</bundles_post_ra>
